<compile_context>
chip_gen: v7x
topology: tpu7x:2x2x1
jax: 0.10.0
libtpu: 0.0.40
codegen_flags: <defaults>
</compile_context>

<pallas_src>
import functools

import jax
import jax.numpy as jnp
import numpy as np
from jax import lax
from jax.experimental import pallas as pl
from jax.experimental.pallas import tpu as pltpu

N_HIDDEN = 128       # `n_hidden` global used by the PyTorch module
BN_EPS = 1e-5
NUM_PHASES = 4
PAD3 = 128           # layer-3 (64 features) padded to 128 lanes

# Packed small-vector table layout (rows of a (16, 256) f32 array):
#   0: [b_dr | b_p]   1: b1   2: g1   3: be1
#   4: b2             5: g2   6: be2
#   7: b3 (pad128)    8: g3 (pad lanes = 0)   9: be3
#  10: wo (pad128)   11..15: unused


# ---------------------------------------------------------------------------
# Pallas kernel
# ---------------------------------------------------------------------------
def dnn_kernel(dr_ref, p_ref,
               w_dr_ref, w_p_ref, w1a_ref, w1b_ref, w2_ref, w3_ref,
               vec_ref, bo_ref,
               out_ref,
               y1s, y2s, y3s,
               st1, st2, st3, cf1, cf2, cf3,
               *, tb, inv_b, b_real, masked):
    ph = pl.program_id(0)
    t = pl.program_id(1)
    row = pl.multiple_of(t * tb, tb)
    rows = pl.ds(row, tb)

    def mxu(a, w_ref):
        # bf16 operands on the MXU, f32 accumulation.
        return jnp.dot(a.astype(jnp.bfloat16), w_ref[...],
                       preferred_element_type=jnp.float32)

    def stat_mask(y):
        # Zero the padded batch rows' contribution to the BN statistics.
        if not masked:
            return y
        ridx = row + lax.broadcasted_iota(jnp.int32, y.shape, 0)
        return jnp.where(ridx < b_real, y, 0.0)

    def accum(y, st):
        ym = stat_mask(y)
        st[0:1, :] += jnp.sum(ym, axis=0, keepdims=True)
        st[1:2, :] += jnp.sum(ym * ym, axis=0, keepdims=True)

    def fold(st, cf, g, be):
        # Fold BN into per-feature scale/shift, computed ONCE per phase (t == 0).
        mean = st[0:1, :] * inv_b
        var = jnp.maximum(st[1:2, :] * inv_b - mean * mean, 0.0)
        scale = g * lax.rsqrt(var + BN_EPS)
        cf[0:1, :] = scale
        cf[1:2, :] = be - mean * scale

    def bn_relu(y, cf):
        return jnp.maximum(y * cf[0:1, :] + cf[1:2, :], 0.0)

    # Zero stats accumulators (and, defensively, the resident output block) at
    # the very first grid step.  The (0,0) output block is never written back
    # before phase 3 re-fills it (its index only changes after ph==3, t==0).
    @pl.when(jnp.logical_and(ph == 0, t == 0))
    def _init():
        st1[...] = jnp.zeros_like(st1)
        st2[...] = jnp.zeros_like(st2)
        st3[...] = jnp.zeros_like(st3)
        out_ref[...] = jnp.zeros_like(out_ref)

    # Phase 0: stream raw features; drug/protein hidden layers; layer 1 as two
    # K=128 matmuls (split w1 -> no concat / lane relayout); BN1 stats.
    @pl.when(ph == 0)
    def _phase0():
        h_dr = jnp.maximum(mxu(dr_ref[...], w_dr_ref) + vec_ref[0:1, 0:128], 0.0)
        h_p = jnp.maximum(mxu(p_ref[...], w_p_ref) + vec_ref[0:1, 128:256], 0.0)
        y1 = mxu(h_dr, w1a_ref) + mxu(h_p, w1b_ref) + vec_ref[1:2, :]
        y1s[rows, :] = y1.astype(y1s.dtype)
        accum(y1, st1)

    # Phase 1: folded BN1 + ReLU + layer-2.
    @pl.when(ph == 1)
    def _phase1():
        @pl.when(t == 0)
        def _():
            fold(st1, cf1, vec_ref[2:3, :], vec_ref[3:4, :])
        a1 = bn_relu(y1s[rows, :], cf1)
        y2 = mxu(a1, w2_ref) + vec_ref[4:5, 0:128]
        y2s[rows, :] = y2.astype(y2s.dtype)
        accum(y2, st2)

    # Phase 2: folded BN2 + ReLU + layer-3 (padded to 128 lanes).
    @pl.when(ph == 2)
    def _phase2():
        @pl.when(t == 0)
        def _():
            fold(st2, cf2, vec_ref[5:6, 0:128], vec_ref[6:7, 0:128])
        a2 = bn_relu(y2s[rows, :], cf2)
        y3 = mxu(a2, w3_ref) + vec_ref[7:8, 0:128]
        y3s[rows, :] = y3.astype(y3s.dtype)
        accum(y3, st3)

    # Phase 3: folded BN3 + ReLU + output layer (VPU mul + lane reduce) + sigmoid.
    @pl.when(ph == NUM_PHASES - 1)
    def _phase3():
        @pl.when(t == 0)
        def _():
            fold(st3, cf3, vec_ref[8:9, 0:128], vec_ref[9:10, 0:128])
        a3 = bn_relu(y3s[rows, :], cf3)
        logit = (jnp.sum(a3 * vec_ref[10:11, 0:128], axis=-1, keepdims=True)
                 + bo_ref[...])
        out_ref[...] = jax.nn.sigmoid(logit)


# ---------------------------------------------------------------------------
# Wrapper
# ---------------------------------------------------------------------------
def _choose_tiling(B):
    """Pick a large batch tile; pad B up to a multiple of it if needed."""
    for tb in (2048, 1024, 512, 256, 128):
        if B % tb == 0:
            return tb, B
    b_pad128 = ((B + 127) // 128) * 128
    tb = min(1024, b_pad128)
    b_pad = ((B + tb - 1) // tb) * tb
    return tb, b_pad


@jax.jit
def dnn_forward(Drug_feature, Protein_feature, x_dr, x_p, kp):
    # Embedding gathers + squeeze(1): plain-JAX glue (same semantics as torch
    # fancy indexing).  bf16 halves the streamed input DMA bytes.
    dr_feat = jnp.squeeze(Drug_feature[x_dr], axis=1).astype(jnp.bfloat16)
    p_feat = jnp.squeeze(Protein_feature[x_p], axis=1).astype(jnp.bfloat16)
    B, n_dr_f = dr_feat.shape
    n_p_f = p_feat.shape[1]

    TB, B_pad = _choose_tiling(B)
    T = B_pad // TB
    if B_pad != B:
        dr_feat = jnp.pad(dr_feat, ((0, B_pad - B), (0, 0)))
        p_feat = jnp.pad(p_feat, ((0, B_pad - B), (0, 0)))
    last_t = T - 1

    # ---- specs -------------------------------------------------------------
    def in_map(ph, t):
        # Real tiles only during phase 0; afterwards pin the last-fetched block
        # so no redundant input DMA fires at the phase boundary.
        return (jnp.where(ph == 0, t, last_t), 0)

    def w_map(ph, t):           # weights / packed vectors: DMA'd once, resident
        return (0, 0)

    def out_map(ph, t):         # real tiles written only during the last phase
        return (jnp.where(ph == NUM_PHASES - 1, t, 0), 0)

    weights = [kp["w_dr"], kp["w_p"], kp["w1a"], kp["w1b"], kp["w2"], kp["w3"],
               kp["vec"], kp["bo"]]
    in_specs = [pl.BlockSpec((TB, n_dr_f), in_map),
                pl.BlockSpec((TB, n_p_f), in_map)] + \
               [pl.BlockSpec(a.shape, w_map) for a in weights]
    out_spec = pl.BlockSpec((TB, 1), out_map)

    scratch_shapes = [
        pltpu.VMEM((B_pad, 2 * N_HIDDEN), jnp.bfloat16),  # y1s (pre-BN layer 1)
        pltpu.VMEM((B_pad, 128), jnp.bfloat16),           # y2s
        pltpu.VMEM((B_pad, PAD3), jnp.bfloat16),          # y3s (64 padded to 128)
        pltpu.VMEM((2, 2 * N_HIDDEN), jnp.float32),       # st1: sum / sumsq
        pltpu.VMEM((2, 128), jnp.float32),                # st2
        pltpu.VMEM((2, PAD3), jnp.float32),               # st3
        pltpu.VMEM((2, 2 * N_HIDDEN), jnp.float32),       # cf1: scale / shift
        pltpu.VMEM((2, 128), jnp.float32),                # cf2
        pltpu.VMEM((2, PAD3), jnp.float32),               # cf3
    ]

    # ---- generation-aware VMEM limit + cost hint ----------------------------
    weight_bytes = sum(int(a.size) * a.dtype.itemsize for a in weights)
    y_scratch_bytes = B_pad * (2 * N_HIDDEN + 128 + PAD3) * 2      # bf16 scratch
    in_tile_bytes = TB * (n_dr_f + n_p_f) * 2                      # bf16 tiles
    est = int(1.25 * (y_scratch_bytes + 2 * weight_bytes + 4 * in_tile_bytes
                      + 2 * TB * 4 + 12 * 256 * 4)) + (2 << 20)
    try:
        vmem_cap = int(pltpu.get_tpu_info().vmem_capacity_bytes)
    except Exception:
        vmem_cap = 64 * 2 ** 20
    vmem_limit = int(min(max(est, 32 * 2 ** 20), int(0.85 * vmem_cap)))

    per_row_flops = 2 * (n_dr_f * N_HIDDEN + n_p_f * N_HIDDEN
                         + 2 * N_HIDDEN * 256 + 256 * 128 + 128 * PAD3 + PAD3)
    cost = pl.CostEstimate(
        flops=B_pad * per_row_flops,
        transcendentals=B_pad + 3 * (256 + 128 + PAD3),
        bytes_accessed=int(dr_feat.size * 2 + p_feat.size * 2
                           + weight_bytes + B_pad * 4),
    )

    kernel = functools.partial(dnn_kernel, tb=TB, inv_b=1.0 / B,
                               b_real=B, masked=(B_pad != B))
    out = pl.pallas_call(
        kernel,
        out_shape=jax.ShapeDtypeStruct((B_pad, 1), jnp.float32),
        grid_spec=pltpu.PrefetchScalarGridSpec(
            num_scalar_prefetch=0,
            grid=(NUM_PHASES, T),
            in_specs=in_specs,
            out_specs=out_spec,
            scratch_shapes=scratch_shapes,
        ),
        compiler_params=pltpu.CompilerParams(
            # BN batch statistics couple every batch tile -> both grid axes
            # must stay sequential on a single TensorCore.
            dimension_semantics=("arbitrary", "arbitrary"),
            vmem_limit_bytes=vmem_limit,
        ),
        cost_estimate=cost,
    )(dr_feat, p_feat, *weights)
    return out[:B]


# ---------------------------------------------------------------------------
# Parameter init (PyTorch nn.Linear-style uniform bounds) + kernel layout prep
# ---------------------------------------------------------------------------
def init_params(key, n_dr_f, n_protein_f):
    def linear(key, fan_in, fan_out):
        k1, k2 = jax.random.split(key)
        bound = 1.0 / np.sqrt(fan_in)
        w = jax.random.uniform(k1, (fan_in, fan_out), jnp.float32, -bound, bound)
        b = jax.random.uniform(k2, (1, fan_out), jnp.float32, -bound, bound)
        return w, b

    keys = jax.random.split(key, 6)
    w_dr, b_dr = linear(keys[0], n_dr_f, N_HIDDEN)
    w_p, b_p = linear(keys[1], n_protein_f, N_HIDDEN)
    w1, b1 = linear(keys[2], 2 * N_HIDDEN, 256)
    w2, b2 = linear(keys[3], 256, 128)
    w3, b3 = linear(keys[4], 128, 64)
    wo, bo = linear(keys[5], 64, 1)

    ones = lambda n: jnp.ones((1, n), jnp.float32)
    zeros = lambda n: jnp.zeros((1, n), jnp.float32)
    return dict(
        w_dr=w_dr, b_dr=b_dr, w_p=w_p, b_p=b_p,
        w1=w1, b1=b1, g1=ones(256), be1=zeros(256),
        w2=w2, b2=b2, g2=ones(128), be2=zeros(128),
        w3=w3, b3=b3, g3=ones(64), be3=zeros(64),
        wo=wo, bo=bo,
    )


def prepare_kernel_params(p):
    """bf16 MXU weights (w1 split in two 128-row halves, layer-3 padded to 128
    lanes) plus all small per-feature vectors packed into one (16, 256) table."""
    f32, bf16 = jnp.float32, jnp.bfloat16
    vec = jnp.zeros((16, 256), f32)
    vec = vec.at[0, 0:128].set(p["b_dr"][0])        # row 0: b_dr | b_p
    vec = vec.at[0, 128:256].set(p["b_p"][0])
    vec = vec.at[1, :].set(p["b1"][0])              # row 1: b1
    vec = vec.at[2, :].set(p["g1"][0])              # row 2: gamma1
    vec = vec.at[3, :].set(p["be1"][0])             # row 3: beta1
    vec = vec.at[4, 0:128].set(p["b2"][0])          # row 4: b2
    vec = vec.at[5, 0:128].set(p["g2"][0])          # row 5: gamma2
    vec = vec.at[6, 0:128].set(p["be2"][0])         # row 6: beta2
    vec = vec.at[7, 0:64].set(p["b3"][0])           # row 7: b3 (64 -> 128 pad)
    vec = vec.at[8, 0:64].set(p["g3"][0])           # row 8: gamma3 (pad lanes 0)
    vec = vec.at[9, 0:64].set(p["be3"][0])          # row 9: beta3
    vec = vec.at[10, 0:64].set(p["wo"][:, 0])       # row 10: output weight row
    w3p = jnp.zeros((128, PAD3), f32).at[:, :64].set(p["w3"])
    return dict(
        w_dr=p["w_dr"].astype(bf16), w_p=p["w_p"].astype(bf16),
        w1a=p["w1"][:N_HIDDEN].astype(bf16), w1b=p["w1"][N_HIDDEN:].astype(bf16),
        w2=p["w2"].astype(bf16), w3=w3p.astype(bf16),
        vec=vec, bo=p["bo"],
    )


# ---------------------------------------------------------------------------
# Pure-JAX reference (mirrors the kernel's bf16-at-MXU / bf16-scratch policy;
# mathematically identical to the PyTorch training-mode forward pass).
# ---------------------------------------------------------------------------
def dnn_reference(Drug_feature, Protein_feature, x_dr, x_p, p):
    def mdot(a, w):
        return jnp.dot(a.astype(jnp.bfloat16), w.astype(jnp.bfloat16),
                       preferred_element_type=jnp.float32)

    dr = jnp.squeeze(Drug_feature[x_dr], axis=1)
    pr = jnp.squeeze(Protein_feature[x_p], axis=1)
    h_dr = jnp.maximum(mdot(dr, p["w_dr"]) + p["b_dr"], 0.0)
    h_p = jnp.maximum(mdot(pr, p["w_p"]) + p["b_p"], 0.0)

    def bn_relu(y, g, be):
        m = jnp.mean(y, axis=0, keepdims=True)
        v = jnp.maximum(jnp.mean(y * y, axis=0, keepdims=True) - m * m, 0.0)
        scale = g * lax.rsqrt(v + BN_EPS)
        shift = be - m * scale
        yq = y.astype(jnp.bfloat16).astype(jnp.float32)   # kernel's bf16 scratch
        return jnp.maximum(yq * scale + shift, 0.0)

    y1 = mdot(h_dr, p["w1"][:N_HIDDEN]) + mdot(h_p, p["w1"][N_HIDDEN:]) + p["b1"]
    a1 = bn_relu(y1, p["g1"], p["be1"])
    a2 = bn_relu(mdot(a1, p["w2"]) + p["b2"], p["g2"], p["be2"])
    a3 = bn_relu(mdot(a2, p["w3"]) + p["b3"], p["g3"], p["be3"])
    return jax.nn.sigmoid(a3 @ p["wo"] + p["bo"])   # final 64->1 stays f32


if __name__ == "__main__":
    B = 8            # batch (>=2 required by BatchNorm1d training mode)
    n_drugs, n_proteins = 32, 48
    n_dr_f, n_protein_f = 64, 96

    key = jax.random.PRNGKey(0)
    k_d, k_p, k_idr, k_ip, k_par = jax.random.split(key, 5)

    Drug_feature = jax.random.normal(k_d, (n_drugs, n_dr_f), jnp.float32)
    Protein_feature = jax.random.normal(k_p, (n_proteins, n_protein_f), jnp.float32)
    x_dr = jax.random.randint(k_idr, (B, 1), 0, n_drugs)
    x_p = jax.random.randint(k_ip, (B, 1), 0, n_proteins)

    params = init_params(k_par, n_dr_f, n_protein_f)
    kparams = prepare_kernel_params(params)

    out = dnn_forward(Drug_feature, Protein_feature, x_dr, x_p, kparams)
    out = jax.block_until_ready(out)

    ref = dnn_reference(Drug_feature, Protein_feature, x_dr, x_p, params)
    np.testing.assert_allclose(np.asarray(out), np.asarray(ref),
                               rtol=2e-3, atol=2e-3)
    assert out.shape == (B, 1)
    print("KERNEL_OK")
</pallas_src>

<mosaic_0001>
module attributes {stable_mosaic.version = 11 : i64} {
  func.func @dnn_kernel(%arg0: i32, %arg1: i32, %arg2: memref<128x64xbf16, #tpu.memory_space<vmem>>, %arg3: memref<128x96xbf16, #tpu.memory_space<vmem>>, %arg4: memref<64x128xbf16, #tpu.memory_space<vmem>>, %arg5: memref<96x128xbf16, #tpu.memory_space<vmem>>, %arg6: memref<128x256xbf16, #tpu.memory_space<vmem>>, %arg7: memref<128x256xbf16, #tpu.memory_space<vmem>>, %arg8: memref<256x128xbf16, #tpu.memory_space<vmem>>, %arg9: memref<128x128xbf16, #tpu.memory_space<vmem>>, %arg10: memref<16x256xf32, #tpu.memory_space<vmem>>, %arg11: memref<1x1xf32, #tpu.memory_space<vmem>>, %arg12: memref<128x1xf32, #tpu.memory_space<vmem>>, %arg13: memref<128x256xbf16, #tpu.memory_space<vmem>>, %arg14: memref<128x128xbf16, #tpu.memory_space<vmem>>, %arg15: memref<128x128xbf16, #tpu.memory_space<vmem>>, %arg16: memref<2x256xf32, #tpu.memory_space<vmem>>, %arg17: memref<2x128xf32, #tpu.memory_space<vmem>>, %arg18: memref<2x128xf32, #tpu.memory_space<vmem>>, %arg19: memref<2x256xf32, #tpu.memory_space<vmem>>, %arg20: memref<2x128xf32, #tpu.memory_space<vmem>>, %arg21: memref<2x128xf32, #tpu.memory_space<vmem>>) attributes {dimension_semantics = [#tpu.dimension_semantics<arbitrary>, #tpu.dimension_semantics<arbitrary>], iteration_bounds = array<i64: 4, 1>, scalar_prefetch = 0 : i64, scratch_operands = 9 : i64, tpu.core_type = #tpu.core_type<tc>, window_params = [{transform_indices = @transform_0, window_bounds = array<i64: 128, 64>}, {transform_indices = @transform_1, window_bounds = array<i64: 128, 96>}, {pipeline_mode = #tpu.pipeline_mode<synchronous>, transform_indices = @transform_2, window_bounds = array<i64: 64, 128>}, {pipeline_mode = #tpu.pipeline_mode<synchronous>, transform_indices = @transform_3, window_bounds = array<i64: 96, 128>}, {pipeline_mode = #tpu.pipeline_mode<synchronous>, transform_indices = @transform_4, window_bounds = array<i64: 128, 256>}, {pipeline_mode = #tpu.pipeline_mode<synchronous>, transform_indices = @transform_5, window_bounds = array<i64: 128, 256>}, {pipeline_mode = #tpu.pipeline_mode<synchronous>, transform_indices = @transform_6, window_bounds = array<i64: 256, 128>}, {pipeline_mode = #tpu.pipeline_mode<synchronous>, transform_indices = @transform_7, window_bounds = array<i64: 128, 128>}, {pipeline_mode = #tpu.pipeline_mode<synchronous>, transform_indices = @transform_8, window_bounds = array<i64: 16, 256>}, {pipeline_mode = #tpu.pipeline_mode<synchronous>, transform_indices = @transform_9, window_bounds = array<i64: 1, 1>}, {transform_indices = @transform_10, window_bounds = array<i64: 128, 1>}]} {
    %c128_i32 = arith.constant 128 : i32
    %0 = arith.muli %arg1, %c128_i32 : i32
    %1 = tpu.assume_multiple %0, 128 : i32
    %c0_i32 = arith.constant 0 : i32
    %2 = arith.cmpi eq, %arg0, %c0_i32 : i32
    %c0_i32_0 = arith.constant 0 : i32
    %3 = arith.cmpi eq, %arg1, %c0_i32_0 : i32
    %4 = arith.andi %2, %3 : i1
    %5 = arith.extui %4 : i1 to i32
    %c0_i32_1 = arith.constant 0 : i32
    %6 = arith.cmpi ne, %5, %c0_i32_1 : i32
    scf.if %6 {
      %cst = arith.constant 0.000000e+00 : f32
      %19 = vector.broadcast %cst : f32 to vector<2x256xf32>
      %c0 = arith.constant 0 : index
      %c0_7 = arith.constant 0 : index
      %20 = vector.load %arg16[%c0, %c0_7] : memref<2x256xf32, #tpu.memory_space<vmem>>, vector<2x256xf32>
      tpu.vector_store %arg16[%c0, %c0_7], %19 {strides = array<i32>} : memref<2x256xf32, #tpu.memory_space<vmem>>, vector<2x256xf32>,
      %cst_8 = arith.constant 0.000000e+00 : f32
      %21 = vector.broadcast %cst_8 : f32 to vector<2x128xf32>
      %c0_9 = arith.constant 0 : index
      %c0_10 = arith.constant 0 : index
      %22 = vector.load %arg17[%c0_9, %c0_10] : memref<2x128xf32, #tpu.memory_space<vmem>>, vector<2x128xf32>
      tpu.vector_store %arg17[%c0_9, %c0_10], %21 {strides = array<i32>} : memref<2x128xf32, #tpu.memory_space<vmem>>, vector<2x128xf32>,
      %cst_11 = arith.constant 0.000000e+00 : f32
      %23 = vector.broadcast %cst_11 : f32 to vector<2x128xf32>
      %c0_12 = arith.constant 0 : index
      %c0_13 = arith.constant 0 : index
      %24 = vector.load %arg18[%c0_12, %c0_13] : memref<2x128xf32, #tpu.memory_space<vmem>>, vector<2x128xf32>
      tpu.vector_store %arg18[%c0_12, %c0_13], %23 {strides = array<i32>} : memref<2x128xf32, #tpu.memory_space<vmem>>, vector<2x128xf32>,
      %cst_14 = arith.constant 0.000000e+00 : f32
      %25 = vector.broadcast %cst_14 : f32 to vector<128x1xf32>
      %c0_15 = arith.constant 0 : index
      %c0_16 = arith.constant 0 : index
      %26 = vector.load %arg12[%c0_15, %c0_16] : memref<128x1xf32, #tpu.memory_space<vmem>>, vector<128x1xf32>
      tpu.vector_store %arg12[%c0_15, %c0_16], %25 {strides = array<i32>} : memref<128x1xf32, #tpu.memory_space<vmem>>, vector<128x1xf32>,
    } else {
    }
    %c0_i32_2 = arith.constant 0 : i32
    %7 = arith.cmpi eq, %arg0, %c0_i32_2 : i32
    %8 = arith.extui %7 : i1 to i32
    %c0_i32_3 = arith.constant 0 : i32
    %9 = arith.cmpi ne, %8, %c0_i32_3 : i32
    scf.if %9 {
      %c0 = arith.constant 0 : index
      %c0_7 = arith.constant 0 : index
      %19 = vector.load %arg2[%c0, %c0_7] : memref<128x64xbf16, #tpu.memory_space<vmem>>, vector<128x64xbf16>
      %c0_8 = arith.constant 0 : index
      %c0_9 = arith.constant 0 : index
      %20 = vector.load %arg4[%c0_8, %c0_9] : memref<64x128xbf16, #tpu.memory_space<vmem>>, vector<64x128xbf16>
      %cst = arith.constant dense<0.000000e+00> : vector<128x128xf32>
      %21 = tpu.matmul %19, %20, %cst {dimension_numbers = #tpu.dot_dimension_numbers<[1], [0], [0], [1], [0, 0, 1, 1], [], []>} : vector<128x64xbf16>, vector<64x128xbf16>, vector<128x128xf32> -> vector<128x128xf32>
      %c0_10 = arith.constant 0 : index
      %c0_11 = arith.constant 0 : index
      %22 = vector.load %arg10[%c0_10, %c0_11] : memref<16x256xf32, #tpu.memory_space<vmem>>, vector<1x128xf32>
      %23 = vector.broadcast %22 : vector<1x128xf32> to vector<128x128xf32>
      %24 = arith.addf %21, %23 : vector<128x128xf32>
      %cst_12 = arith.constant 0.000000e+00 : f32
      %25 = vector.broadcast %cst_12 : f32 to vector<128x128xf32>
      %26 = arith.maximumf %24, %25 : vector<128x128xf32>
      %c0_13 = arith.constant 0 : index
      %c0_14 = arith.constant 0 : index
      %27 = vector.load %arg3[%c0_13, %c0_14] : memref<128x96xbf16, #tpu.memory_space<vmem>>, vector<128x96xbf16>
      %c0_15 = arith.constant 0 : index
      %c0_16 = arith.constant 0 : index
      %28 = vector.load %arg5[%c0_15, %c0_16] : memref<96x128xbf16, #tpu.memory_space<vmem>>, vector<96x128xbf16>
      %cst_17 = arith.constant dense<0.000000e+00> : vector<128x128xf32>
      %29 = tpu.matmul %27, %28, %cst_17 {dimension_numbers = #tpu.dot_dimension_numbers<[1], [0], [0], [1], [0, 0, 1, 1], [], []>} : vector<128x96xbf16>, vector<96x128xbf16>, vector<128x128xf32> -> vector<128x128xf32>
      %c0_18 = arith.constant 0 : index
      %c128 = arith.constant 128 : index
      %30 = vector.load %arg10[%c0_18, %c128] : memref<16x256xf32, #tpu.memory_space<vmem>>, vector<1x128xf32>
      %31 = vector.broadcast %30 : vector<1x128xf32> to vector<128x128xf32>
      %32 = arith.addf %29, %31 : vector<128x128xf32>
      %cst_19 = arith.constant 0.000000e+00 : f32
      %33 = vector.broadcast %cst_19 : f32 to vector<128x128xf32>
      %34 = arith.maximumf %32, %33 : vector<128x128xf32>
      %35 = arith.truncf %26 : vector<128x128xf32> to vector<128x128xbf16>
      %c0_20 = arith.constant 0 : index
      %c0_21 = arith.constant 0 : index
      %36 = vector.load %arg6[%c0_20, %c0_21] : memref<128x256xbf16, #tpu.memory_space<vmem>>, vector<128x256xbf16>
      %cst_22 = arith.constant dense<0.000000e+00> : vector<128x256xf32>
      %37 = tpu.matmul %35, %36, %cst_22 {dimension_numbers = #tpu.dot_dimension_numbers<[1], [0], [0], [1], [0, 0, 1, 1], [], []>} : vector<128x128xbf16>, vector<128x256xbf16>, vector<128x256xf32> -> vector<128x256xf32>
      %38 = arith.truncf %34 : vector<128x128xf32> to vector<128x128xbf16>
      %c0_23 = arith.constant 0 : index
      %c0_24 = arith.constant 0 : index
      %39 = vector.load %arg7[%c0_23, %c0_24] : memref<128x256xbf16, #tpu.memory_space<vmem>>, vector<128x256xbf16>
      %cst_25 = arith.constant dense<0.000000e+00> : vector<128x256xf32>
      %40 = tpu.matmul %38, %39, %cst_25 {dimension_numbers = #tpu.dot_dimension_numbers<[1], [0], [0], [1], [0, 0, 1, 1], [], []>} : vector<128x128xbf16>, vector<128x256xbf16>, vector<128x256xf32> -> vector<128x256xf32>
      %41 = arith.addf %37, %40 : vector<128x256xf32>
      %c1 = arith.constant 1 : index
      %c0_26 = arith.constant 0 : index
      %42 = vector.load %arg10[%c1, %c0_26] : memref<16x256xf32, #tpu.memory_space<vmem>>, vector<1x256xf32>
      %43 = vector.broadcast %42 : vector<1x256xf32> to vector<128x256xf32>
      %44 = arith.addf %41, %43 : vector<128x256xf32>
      %45 = arith.truncf %44 : vector<128x256xf32> to vector<128x256xbf16>
      %46 = arith.index_cast %1 : i32 to index
      %c0_27 = arith.constant 0 : index
      %47 = vector.load %arg13[%46, %c0_27] : memref<128x256xbf16, #tpu.memory_space<vmem>>, vector<128x256xbf16>
      tpu.vector_store %arg13[%46, %c0_27], %45 {strides = array<i32>} : memref<128x256xbf16, #tpu.memory_space<vmem>>, vector<128x256xbf16>,
      %48 = tpu.iota {dimensions = array<i32: 0>} : vector<128x256xi32>
      %49 = vector.broadcast %1 : i32 to vector<128x256xi32>
      %50 = arith.addi %49, %48 : vector<128x256xi32>
      %c8_i32 = arith.constant 8 : i32
      %51 = vector.broadcast %c8_i32 : i32 to vector<128x256xi32>
      %52 = arith.cmpi slt, %50, %51 : vector<128x256xi32>
      %cst_28 = arith.constant 0.000000e+00 : f32
      %53 = vector.broadcast %cst_28 : f32 to vector<128x256xf32>
      %54 = arith.select %52, %44, %53 : vector<128x256xi1>, vector<128x256xf32>
      %c0_29 = arith.constant 0 : index
      %c0_30 = arith.constant 0 : index
      %55 = vector.load %arg16[%c0_29, %c0_30] : memref<2x256xf32, #tpu.memory_space<vmem>>, vector<1x256xf32>
      %cst_31 = arith.constant dense<0.000000e+00> : vector<256xf32>
      %56 = vector.multi_reduction <add>, %54, %cst_31 [0] : vector<128x256xf32> to vector<256xf32>
      %57 = vector.shape_cast %56 : vector<256xf32> to vector<1x256xf32>
      %58 = arith.addf %55, %57 : vector<1x256xf32>
      %c0_32 = arith.constant 0 : index
      %c0_33 = arith.constant 0 : index
      %59 = vector.load %arg16[%c0_32, %c0_33] : memref<2x256xf32, #tpu.memory_space<vmem>>, vector<1x256xf32>
      tpu.vector_store %arg16[%c0_32, %c0_33], %58 {strides = array<i32>} : memref<2x256xf32, #tpu.memory_space<vmem>>, vector<1x256xf32>,
      %c1_34 = arith.constant 1 : index
      %c0_35 = arith.constant 0 : index
      %60 = vector.load %arg16[%c1_34, %c0_35] : memref<2x256xf32, #tpu.memory_space<vmem>>, vector<1x256xf32>
      %61 = arith.mulf %54, %54 : vector<128x256xf32>
      %cst_36 = arith.constant dense<0.000000e+00> : vector<256xf32>
      %62 = vector.multi_reduction <add>, %61, %cst_36 [0] : vector<128x256xf32> to vector<256xf32>
      %63 = vector.shape_cast %62 : vector<256xf32> to vector<1x256xf32>
      %64 = arith.addf %60, %63 : vector<1x256xf32>
      %c1_37 = arith.constant 1 : index
      %c0_38 = arith.constant 0 : index
      %65 = vector.load %arg16[%c1_37, %c0_38] : memref<2x256xf32, #tpu.memory_space<vmem>>, vector<1x256xf32>
      tpu.vector_store %arg16[%c1_37, %c0_38], %64 {strides = array<i32>} : memref<2x256xf32, #tpu.memory_space<vmem>>, vector<1x256xf32>,
    } else {
    }
    %c1_i32 = arith.constant 1 : i32
    %10 = arith.cmpi eq, %arg0, %c1_i32 : i32
    %11 = arith.extui %10 : i1 to i32
    %c0_i32_4 = arith.constant 0 : i32
    %12 = arith.cmpi ne, %11, %c0_i32_4 : i32
    scf.if %12 {
      %c0_i32_7 = arith.constant 0 : i32
      %19 = arith.cmpi eq, %arg1, %c0_i32_7 : i32
      %20 = arith.extui %19 : i1 to i32
      %c0_i32_8 = arith.constant 0 : i32
      %21 = arith.cmpi ne, %20, %c0_i32_8 : i32
      scf.if %21 {
        %c2 = arith.constant 2 : index
        %c0_28 = arith.constant 0 : index
        %60 = vector.load %arg10[%c2, %c0_28] : memref<16x256xf32, #tpu.memory_space<vmem>>, vector<1x256xf32>
        %c3 = arith.constant 3 : index
        %c0_29 = arith.constant 0 : index
        %61 = vector.load %arg10[%c3, %c0_29] : memref<16x256xf32, #tpu.memory_space<vmem>>, vector<1x256xf32>
        %c0_30 = arith.constant 0 : index
        %c0_31 = arith.constant 0 : index
        %62 = vector.load %arg16[%c0_30, %c0_31] : memref<2x256xf32, #tpu.memory_space<vmem>>, vector<1x256xf32>
        %cst_32 = arith.constant 1.250000e-01 : f32
        %63 = vector.broadcast %cst_32 : f32 to vector<1x256xf32>
        %64 = arith.mulf %62, %63 : vector<1x256xf32>
        %c1_33 = arith.constant 1 : index
        %c0_34 = arith.constant 0 : index
        %65 = vector.load %arg16[%c1_33, %c0_34] : memref<2x256xf32, #tpu.memory_space<vmem>>, vector<1x256xf32>
        %cst_35 = arith.constant 1.250000e-01 : f32
        %66 = vector.broadcast %cst_35 : f32 to vector<1x256xf32>
        %67 = arith.mulf %65, %66 : vector<1x256xf32>
        %68 = arith.mulf %64, %64 : vector<1x256xf32>
        %69 = arith.subf %67, %68 : vector<1x256xf32>
        %cst_36 = arith.constant 0.000000e+00 : f32
        %70 = vector.broadcast %cst_36 : f32 to vector<1x256xf32>
        %71 = arith.maximumf %69, %70 : vector<1x256xf32>
        %cst_37 = arith.constant 9.99999974E-6 : f32
        %72 = vector.broadcast %cst_37 : f32 to vector<1x256xf32>
        %73 = arith.addf %71, %72 : vector<1x256xf32>
        %74 = math.rsqrt %73 : vector<1x256xf32>
        %75 = arith.mulf %60, %74 : vector<1x256xf32>
        %c0_38 = arith.constant 0 : index
        %c0_39 = arith.constant 0 : index
        %76 = vector.load %arg19[%c0_38, %c0_39] : memref<2x256xf32, #tpu.memory_space<vmem>>, vector<1x256xf32>
        tpu.vector_store %arg19[%c0_38, %c0_39], %75 {strides = array<i32>} : memref<2x256xf32, #tpu.memory_space<vmem>>, vector<1x256xf32>,
        %77 = arith.mulf %64, %75 : vector<1x256xf32>
        %78 = arith.subf %61, %77 : vector<1x256xf32>
        %c1_40 = arith.constant 1 : index
        %c0_41 = arith.constant 0 : index
        %79 = vector.load %arg19[%c1_40, %c0_41] : memref<2x256xf32, #tpu.memory_space<vmem>>, vector<1x256xf32>
        tpu.vector_store %arg19[%c1_40, %c0_41], %78 {strides = array<i32>} : memref<2x256xf32, #tpu.memory_space<vmem>>, vector<1x256xf32>,
      } else {
      }
      %22 = arith.index_cast %1 : i32 to index
      %c0 = arith.constant 0 : index
      %23 = vector.load %arg13[%22, %c0] : memref<128x256xbf16, #tpu.memory_space<vmem>>, vector<128x256xbf16>
      %c0_9 = arith.constant 0 : index
      %c0_10 = arith.constant 0 : index
      %24 = vector.load %arg19[%c0_9, %c0_10] : memref<2x256xf32, #tpu.memory_space<vmem>>, vector<1x256xf32>
      %25 = arith.extf %23 : vector<128x256xbf16> to vector<128x256xf32>
      %26 = vector.broadcast %24 : vector<1x256xf32> to vector<128x256xf32>
      %27 = arith.mulf %25, %26 : vector<128x256xf32>
      %c1 = arith.constant 1 : index
      %c0_11 = arith.constant 0 : index
      %28 = vector.load %arg19[%c1, %c0_11] : memref<2x256xf32, #tpu.memory_space<vmem>>, vector<1x256xf32>
      %29 = vector.broadcast %28 : vector<1x256xf32> to vector<128x256xf32>
      %30 = arith.addf %27, %29 : vector<128x256xf32>
      %cst = arith.constant 0.000000e+00 : f32
      %31 = vector.broadcast %cst : f32 to vector<128x256xf32>
      %32 = arith.maximumf %30, %31 : vector<128x256xf32>
      %33 = arith.truncf %32 : vector<128x256xf32> to vector<128x256xbf16>
      %c0_12 = arith.constant 0 : index
      %c0_13 = arith.constant 0 : index
      %34 = vector.load %arg8[%c0_12, %c0_13] : memref<256x128xbf16, #tpu.memory_space<vmem>>, vector<256x128xbf16>
      %cst_14 = arith.constant dense<0.000000e+00> : vector<128x128xf32>
      %35 = tpu.matmul %33, %34, %cst_14 {dimension_numbers = #tpu.dot_dimension_numbers<[1], [0], [0], [1], [0, 0, 1, 1], [], []>} : vector<128x256xbf16>, vector<256x128xbf16>, vector<128x128xf32> -> vector<128x128xf32>
      %c4 = arith.constant 4 : index
      %c0_15 = arith.constant 0 : index
      %36 = vector.load %arg10[%c4, %c0_15] : memref<16x256xf32, #tpu.memory_space<vmem>>, vector<1x128xf32>
      %37 = vector.broadcast %36 : vector<1x128xf32> to vector<128x128xf32>
      %38 = arith.addf %35, %37 : vector<128x128xf32>
      %39 = arith.truncf %38 : vector<128x128xf32> to vector<128x128xbf16>
      %40 = arith.index_cast %1 : i32 to index
      %c0_16 = arith.constant 0 : index
      %41 = vector.load %arg14[%40, %c0_16] : memref<128x128xbf16, #tpu.memory_space<vmem>>, vector<128x128xbf16>
      tpu.vector_store %arg14[%40, %c0_16], %39 {strides = array<i32>} : memref<128x128xbf16, #tpu.memory_space<vmem>>, vector<128x128xbf16>,
      %42 = tpu.iota {dimensions = array<i32: 0>} : vector<128x128xi32>
      %43 = vector.broadcast %1 : i32 to vector<128x128xi32>
      %44 = arith.addi %43, %42 : vector<128x128xi32>
      %c8_i32 = arith.constant 8 : i32
      %45 = vector.broadcast %c8_i32 : i32 to vector<128x128xi32>
      %46 = arith.cmpi slt, %44, %45 : vector<128x128xi32>
      %cst_17 = arith.constant 0.000000e+00 : f32
      %47 = vector.broadcast %cst_17 : f32 to vector<128x128xf32>
      %48 = arith.select %46, %38, %47 : vector<128x128xi1>, vector<128x128xf32>
      %c0_18 = arith.constant 0 : index
      %c0_19 = arith.constant 0 : index
      %49 = vector.load %arg17[%c0_18, %c0_19] : memref<2x128xf32, #tpu.memory_space<vmem>>, vector<1x128xf32>
      %cst_20 = arith.constant dense<0.000000e+00> : vector<128xf32>
      %50 = vector.multi_reduction <add>, %48, %cst_20 [0] : vector<128x128xf32> to vector<128xf32>
      %51 = vector.shape_cast %50 : vector<128xf32> to vector<1x128xf32>
      %52 = arith.addf %49, %51 : vector<1x128xf32>
      %c0_21 = arith.constant 0 : index
      %c0_22 = arith.constant 0 : index
      %53 = vector.load %arg17[%c0_21, %c0_22] : memref<2x128xf32, #tpu.memory_space<vmem>>, vector<1x128xf32>
      tpu.vector_store %arg17[%c0_21, %c0_22], %52 {strides = array<i32>} : memref<2x128xf32, #tpu.memory_space<vmem>>, vector<1x128xf32>,
      %c1_23 = arith.constant 1 : index
      %c0_24 = arith.constant 0 : index
      %54 = vector.load %arg17[%c1_23, %c0_24] : memref<2x128xf32, #tpu.memory_space<vmem>>, vector<1x128xf32>
      %55 = arith.mulf %48, %48 : vector<128x128xf32>
      %cst_25 = arith.constant dense<0.000000e+00> : vector<128xf32>
      %56 = vector.multi_reduction <add>, %55, %cst_25 [0] : vector<128x128xf32> to vector<128xf32>
      %57 = vector.shape_cast %56 : vector<128xf32> to vector<1x128xf32>
      %58 = arith.addf %54, %57 : vector<1x128xf32>
      %c1_26 = arith.constant 1 : index
      %c0_27 = arith.constant 0 : index
      %59 = vector.load %arg17[%c1_26, %c0_27] : memref<2x128xf32, #tpu.memory_space<vmem>>, vector<1x128xf32>
      tpu.vector_store %arg17[%c1_26, %c0_27], %58 {strides = array<i32>} : memref<2x128xf32, #tpu.memory_space<vmem>>, vector<1x128xf32>,
    } else {
    }
    %c2_i32 = arith.constant 2 : i32
    %13 = arith.cmpi eq, %arg0, %c2_i32 : i32
    %14 = arith.extui %13 : i1 to i32
    %c0_i32_5 = arith.constant 0 : i32
    %15 = arith.cmpi ne, %14, %c0_i32_5 : i32
    scf.if %15 {
      %c0_i32_7 = arith.constant 0 : i32
      %19 = arith.cmpi eq, %arg1, %c0_i32_7 : i32
      %20 = arith.extui %19 : i1 to i32
      %c0_i32_8 = arith.constant 0 : i32
      %21 = arith.cmpi ne, %20, %c0_i32_8 : i32
      scf.if %21 {
        %c5 = arith.constant 5 : index
        %c0_28 = arith.constant 0 : index
        %60 = vector.load %arg10[%c5, %c0_28] : memref<16x256xf32, #tpu.memory_space<vmem>>, vector<1x128xf32>
        %c6 = arith.constant 6 : index
        %c0_29 = arith.constant 0 : index
        %61 = vector.load %arg10[%c6, %c0_29] : memref<16x256xf32, #tpu.memory_space<vmem>>, vector<1x128xf32>
        %c0_30 = arith.constant 0 : index
        %c0_31 = arith.constant 0 : index
        %62 = vector.load %arg17[%c0_30, %c0_31] : memref<2x128xf32, #tpu.memory_space<vmem>>, vector<1x128xf32>
        %cst_32 = arith.constant 1.250000e-01 : f32
        %63 = vector.broadcast %cst_32 : f32 to vector<1x128xf32>
        %64 = arith.mulf %62, %63 : vector<1x128xf32>
        %c1_33 = arith.constant 1 : index
        %c0_34 = arith.constant 0 : index
        %65 = vector.load %arg17[%c1_33, %c0_34] : memref<2x128xf32, #tpu.memory_space<vmem>>, vector<1x128xf32>
        %cst_35 = arith.constant 1.250000e-01 : f32
        %66 = vector.broadcast %cst_35 : f32 to vector<1x128xf32>
        %67 = arith.mulf %65, %66 : vector<1x128xf32>
        %68 = arith.mulf %64, %64 : vector<1x128xf32>
        %69 = arith.subf %67, %68 : vector<1x128xf32>
        %cst_36 = arith.constant 0.000000e+00 : f32
        %70 = vector.broadcast %cst_36 : f32 to vector<1x128xf32>
        %71 = arith.maximumf %69, %70 : vector<1x128xf32>
        %cst_37 = arith.constant 9.99999974E-6 : f32
        %72 = vector.broadcast %cst_37 : f32 to vector<1x128xf32>
        %73 = arith.addf %71, %72 : vector<1x128xf32>
        %74 = math.rsqrt %73 : vector<1x128xf32>
        %75 = arith.mulf %60, %74 : vector<1x128xf32>
        %c0_38 = arith.constant 0 : index
        %c0_39 = arith.constant 0 : index
        %76 = vector.load %arg20[%c0_38, %c0_39] : memref<2x128xf32, #tpu.memory_space<vmem>>, vector<1x128xf32>
        tpu.vector_store %arg20[%c0_38, %c0_39], %75 {strides = array<i32>} : memref<2x128xf32, #tpu.memory_space<vmem>>, vector<1x128xf32>,
        %77 = arith.mulf %64, %75 : vector<1x128xf32>
        %78 = arith.subf %61, %77 : vector<1x128xf32>
        %c1_40 = arith.constant 1 : index
        %c0_41 = arith.constant 0 : index
        %79 = vector.load %arg20[%c1_40, %c0_41] : memref<2x128xf32, #tpu.memory_space<vmem>>, vector<1x128xf32>
        tpu.vector_store %arg20[%c1_40, %c0_41], %78 {strides = array<i32>} : memref<2x128xf32, #tpu.memory_space<vmem>>, vector<1x128xf32>,
      } else {
      }
      %22 = arith.index_cast %1 : i32 to index
      %c0 = arith.constant 0 : index
      %23 = vector.load %arg14[%22, %c0] : memref<128x128xbf16, #tpu.memory_space<vmem>>, vector<128x128xbf16>
      %c0_9 = arith.constant 0 : index
      %c0_10 = arith.constant 0 : index
      %24 = vector.load %arg20[%c0_9, %c0_10] : memref<2x128xf32, #tpu.memory_space<vmem>>, vector<1x128xf32>
      %25 = arith.extf %23 : vector<128x128xbf16> to vector<128x128xf32>
      %26 = vector.broadcast %24 : vector<1x128xf32> to vector<128x128xf32>
      %27 = arith.mulf %25, %26 : vector<128x128xf32>
      %c1 = arith.constant 1 : index
      %c0_11 = arith.constant 0 : index
      %28 = vector.load %arg20[%c1, %c0_11] : memref<2x128xf32, #tpu.memory_space<vmem>>, vector<1x128xf32>
      %29 = vector.broadcast %28 : vector<1x128xf32> to vector<128x128xf32>
      %30 = arith.addf %27, %29 : vector<128x128xf32>
      %cst = arith.constant 0.000000e+00 : f32
      %31 = vector.broadcast %cst : f32 to vector<128x128xf32>
      %32 = arith.maximumf %30, %31 : vector<128x128xf32>
      %33 = arith.truncf %32 : vector<128x128xf32> to vector<128x128xbf16>
      %c0_12 = arith.constant 0 : index
      %c0_13 = arith.constant 0 : index
      %34 = vector.load %arg9[%c0_12, %c0_13] : memref<128x128xbf16, #tpu.memory_space<vmem>>, vector<128x128xbf16>
      %cst_14 = arith.constant dense<0.000000e+00> : vector<128x128xf32>
      %35 = tpu.matmul %33, %34, %cst_14 {dimension_numbers = #tpu.dot_dimension_numbers<[1], [0], [0], [1], [0, 0, 1, 1], [], []>} : vector<128x128xbf16>, vector<128x128xbf16>, vector<128x128xf32> -> vector<128x128xf32>
      %c7 = arith.constant 7 : index
      %c0_15 = arith.constant 0 : index
      %36 = vector.load %arg10[%c7, %c0_15] : memref<16x256xf32, #tpu.memory_space<vmem>>, vector<1x128xf32>
      %37 = vector.broadcast %36 : vector<1x128xf32> to vector<128x128xf32>
      %38 = arith.addf %35, %37 : vector<128x128xf32>
      %39 = arith.truncf %38 : vector<128x128xf32> to vector<128x128xbf16>
      %40 = arith.index_cast %1 : i32 to index
      %c0_16 = arith.constant 0 : index
      %41 = vector.load %arg15[%40, %c0_16] : memref<128x128xbf16, #tpu.memory_space<vmem>>, vector<128x128xbf16>
      tpu.vector_store %arg15[%40, %c0_16], %39 {strides = array<i32>} : memref<128x128xbf16, #tpu.memory_space<vmem>>, vector<128x128xbf16>,
      %42 = tpu.iota {dimensions = array<i32: 0>} : vector<128x128xi32>
      %43 = vector.broadcast %1 : i32 to vector<128x128xi32>
      %44 = arith.addi %43, %42 : vector<128x128xi32>
      %c8_i32 = arith.constant 8 : i32
      %45 = vector.broadcast %c8_i32 : i32 to vector<128x128xi32>
      %46 = arith.cmpi slt, %44, %45 : vector<128x128xi32>
      %cst_17 = arith.constant 0.000000e+00 : f32
      %47 = vector.broadcast %cst_17 : f32 to vector<128x128xf32>
      %48 = arith.select %46, %38, %47 : vector<128x128xi1>, vector<128x128xf32>
      %c0_18 = arith.constant 0 : index
      %c0_19 = arith.constant 0 : index
      %49 = vector.load %arg18[%c0_18, %c0_19] : memref<2x128xf32, #tpu.memory_space<vmem>>, vector<1x128xf32>
      %cst_20 = arith.constant dense<0.000000e+00> : vector<128xf32>
      %50 = vector.multi_reduction <add>, %48, %cst_20 [0] : vector<128x128xf32> to vector<128xf32>
      %51 = vector.shape_cast %50 : vector<128xf32> to vector<1x128xf32>
      %52 = arith.addf %49, %51 : vector<1x128xf32>
      %c0_21 = arith.constant 0 : index
      %c0_22 = arith.constant 0 : index
      %53 = vector.load %arg18[%c0_21, %c0_22] : memref<2x128xf32, #tpu.memory_space<vmem>>, vector<1x128xf32>
      tpu.vector_store %arg18[%c0_21, %c0_22], %52 {strides = array<i32>} : memref<2x128xf32, #tpu.memory_space<vmem>>, vector<1x128xf32>,
      %c1_23 = arith.constant 1 : index
      %c0_24 = arith.constant 0 : index
      %54 = vector.load %arg18[%c1_23, %c0_24] : memref<2x128xf32, #tpu.memory_space<vmem>>, vector<1x128xf32>
      %55 = arith.mulf %48, %48 : vector<128x128xf32>
      %cst_25 = arith.constant dense<0.000000e+00> : vector<128xf32>
      %56 = vector.multi_reduction <add>, %55, %cst_25 [0] : vector<128x128xf32> to vector<128xf32>
      %57 = vector.shape_cast %56 : vector<128xf32> to vector<1x128xf32>
      %58 = arith.addf %54, %57 : vector<1x128xf32>
      %c1_26 = arith.constant 1 : index
      %c0_27 = arith.constant 0 : index
      %59 = vector.load %arg18[%c1_26, %c0_27] : memref<2x128xf32, #tpu.memory_space<vmem>>, vector<1x128xf32>
      tpu.vector_store %arg18[%c1_26, %c0_27], %58 {strides = array<i32>} : memref<2x128xf32, #tpu.memory_space<vmem>>, vector<1x128xf32>,
    } else {
    }
    %c3_i32 = arith.constant 3 : i32
    %16 = arith.cmpi eq, %arg0, %c3_i32 : i32
    %17 = arith.extui %16 : i1 to i32
    %c0_i32_6 = arith.constant 0 : i32
    %18 = arith.cmpi ne, %17, %c0_i32_6 : i32
    scf.if %18 {
      %c0_i32_7 = arith.constant 0 : i32
      %19 = arith.cmpi eq, %arg1, %c0_i32_7 : i32
      %20 = arith.extui %19 : i1 to i32
      %c0_i32_8 = arith.constant 0 : i32
      %21 = arith.cmpi ne, %20, %c0_i32_8 : i32
      scf.if %21 {
        %c8 = arith.constant 8 : index
        %c0_19 = arith.constant 0 : index
        %47 = vector.load %arg10[%c8, %c0_19] : memref<16x256xf32, #tpu.memory_space<vmem>>, vector<1x128xf32>
        %c9 = arith.constant 9 : index
        %c0_20 = arith.constant 0 : index
        %48 = vector.load %arg10[%c9, %c0_20] : memref<16x256xf32, #tpu.memory_space<vmem>>, vector<1x128xf32>
        %c0_21 = arith.constant 0 : index
        %c0_22 = arith.constant 0 : index
        %49 = vector.load %arg18[%c0_21, %c0_22] : memref<2x128xf32, #tpu.memory_space<vmem>>, vector<1x128xf32>
        %cst_23 = arith.constant 1.250000e-01 : f32
        %50 = vector.broadcast %cst_23 : f32 to vector<1x128xf32>
        %51 = arith.mulf %49, %50 : vector<1x128xf32>
        %c1_24 = arith.constant 1 : index
        %c0_25 = arith.constant 0 : index
        %52 = vector.load %arg18[%c1_24, %c0_25] : memref<2x128xf32, #tpu.memory_space<vmem>>, vector<1x128xf32>
        %cst_26 = arith.constant 1.250000e-01 : f32
        %53 = vector.broadcast %cst_26 : f32 to vector<1x128xf32>
        %54 = arith.mulf %52, %53 : vector<1x128xf32>
        %55 = arith.mulf %51, %51 : vector<1x128xf32>
        %56 = arith.subf %54, %55 : vector<1x128xf32>
        %cst_27 = arith.constant 0.000000e+00 : f32
        %57 = vector.broadcast %cst_27 : f32 to vector<1x128xf32>
        %58 = arith.maximumf %56, %57 : vector<1x128xf32>
        %cst_28 = arith.constant 9.99999974E-6 : f32
        %59 = vector.broadcast %cst_28 : f32 to vector<1x128xf32>
        %60 = arith.addf %58, %59 : vector<1x128xf32>
        %61 = math.rsqrt %60 : vector<1x128xf32>
        %62 = arith.mulf %47, %61 : vector<1x128xf32>
        %c0_29 = arith.constant 0 : index
        %c0_30 = arith.constant 0 : index
        %63 = vector.load %arg21[%c0_29, %c0_30] : memref<2x128xf32, #tpu.memory_space<vmem>>, vector<1x128xf32>
        tpu.vector_store %arg21[%c0_29, %c0_30], %62 {strides = array<i32>} : memref<2x128xf32, #tpu.memory_space<vmem>>, vector<1x128xf32>,
        %64 = arith.mulf %51, %62 : vector<1x128xf32>
        %65 = arith.subf %48, %64 : vector<1x128xf32>
        %c1_31 = arith.constant 1 : index
        %c0_32 = arith.constant 0 : index
        %66 = vector.load %arg21[%c1_31, %c0_32] : memref<2x128xf32, #tpu.memory_space<vmem>>, vector<1x128xf32>
        tpu.vector_store %arg21[%c1_31, %c0_32], %65 {strides = array<i32>} : memref<2x128xf32, #tpu.memory_space<vmem>>, vector<1x128xf32>,
      } else {
      }
      %22 = arith.index_cast %1 : i32 to index
      %c0 = arith.constant 0 : index
      %23 = vector.load %arg15[%22, %c0] : memref<128x128xbf16, #tpu.memory_space<vmem>>, vector<128x128xbf16>
      %c0_9 = arith.constant 0 : index
      %c0_10 = arith.constant 0 : index
      %24 = vector.load %arg21[%c0_9, %c0_10] : memref<2x128xf32, #tpu.memory_space<vmem>>, vector<1x128xf32>
      %25 = arith.extf %23 : vector<128x128xbf16> to vector<128x128xf32>
      %26 = vector.broadcast %24 : vector<1x128xf32> to vector<128x128xf32>
      %27 = arith.mulf %25, %26 : vector<128x128xf32>
      %c1 = arith.constant 1 : index
      %c0_11 = arith.constant 0 : index
      %28 = vector.load %arg21[%c1, %c0_11] : memref<2x128xf32, #tpu.memory_space<vmem>>, vector<1x128xf32>
      %29 = vector.broadcast %28 : vector<1x128xf32> to vector<128x128xf32>
      %30 = arith.addf %27, %29 : vector<128x128xf32>
      %cst = arith.constant 0.000000e+00 : f32
      %31 = vector.broadcast %cst : f32 to vector<128x128xf32>
      %32 = arith.maximumf %30, %31 : vector<128x128xf32>
      %c10 = arith.constant 10 : index
      %c0_12 = arith.constant 0 : index
      %33 = vector.load %arg10[%c10, %c0_12] : memref<16x256xf32, #tpu.memory_space<vmem>>, vector<1x128xf32>
      %34 = vector.broadcast %33 : vector<1x128xf32> to vector<128x128xf32>
      %35 = arith.mulf %32, %34 : vector<128x128xf32>
      %cst_13 = arith.constant dense<0.000000e+00> : vector<128xf32>
      %36 = vector.multi_reduction <add>, %35, %cst_13 [1] : vector<128x128xf32> to vector<128xf32>
      %37 = vector.shape_cast %36 : vector<128xf32> to vector<128x1xf32>
      %c0_14 = arith.constant 0 : index
      %c0_15 = arith.constant 0 : index
      %38 = vector.load %arg11[%c0_14, %c0_15] : memref<1x1xf32, #tpu.memory_space<vmem>>, vector<1x1xf32>
      %39 = vector.broadcast %38 : vector<1x1xf32> to vector<128x1xf32>
      %40 = arith.addf %37, %39 : vector<128x1xf32>
      %41 = arith.negf %40 : vector<128x1xf32>
      %42 = math.exp %41 : vector<128x1xf32>
      %cst_16 = arith.constant 1.000000e+00 : f32
      %43 = vector.broadcast %cst_16 : f32 to vector<128x1xf32>
      %44 = arith.addf %43, %42 : vector<128x1xf32>
      %45 = arith.divf %43, %44 : vector<128x1xf32>
      %c0_17 = arith.constant 0 : index
      %c0_18 = arith.constant 0 : index
      %46 = vector.load %arg12[%c0_17, %c0_18] : memref<128x1xf32, #tpu.memory_space<vmem>>, vector<128x1xf32>
      tpu.vector_store %arg12[%c0_17, %c0_18], %45 {strides = array<i32>} : memref<128x1xf32, #tpu.memory_space<vmem>>, vector<128x1xf32>,
    } else {
    }
    return
  }
  func.func @transform_0(%arg0: i32, %arg1: i32) -> (i32, i32) {
    %c0_i32 = arith.constant 0 : i32
    %0 = arith.cmpi eq, %arg0, %c0_i32 : i32
    %c0_i32_0 = arith.constant 0 : i32
    %1 = arith.select %0, %arg1, %c0_i32_0 : i32
    %c0_i32_1 = arith.constant 0 : i32
    %c0_i32_2 = arith.constant 0 : i32
    return %1, %c0_i32_1 : i32, i32
  }
  func.func @transform_1(%arg0: i32, %arg1: i32) -> (i32, i32) {
    %c0_i32 = arith.constant 0 : i32
    %0 = arith.cmpi eq, %arg0, %c0_i32 : i32
    %c0_i32_0 = arith.constant 0 : i32
    %1 = arith.select %0, %arg1, %c0_i32_0 : i32
    %c0_i32_1 = arith.constant 0 : i32
    %c0_i32_2 = arith.constant 0 : i32
    return %1, %c0_i32_1 : i32, i32
  }
  func.func @transform_2(%arg0: i32, %arg1: i32) -> (i32, i32) {
    %c0_i32 = arith.constant 0 : i32
    %c0_i32_0 = arith.constant 0 : i32
    %c0_i32_1 = arith.constant 0 : i32
    return %c0_i32, %c0_i32_0 : i32, i32
  }
  func.func @transform_3(%arg0: i32, %arg1: i32) -> (i32, i32) {
    %c0_i32 = arith.constant 0 : i32
    %c0_i32_0 = arith.constant 0 : i32
    %c0_i32_1 = arith.constant 0 : i32
    return %c0_i32, %c0_i32_0 : i32, i32
  }
  func.func @transform_4(%arg0: i32, %arg1: i32) -> (i32, i32) {
    %c0_i32 = arith.constant 0 : i32
    %c0_i32_0 = arith.constant 0 : i32
    %c0_i32_1 = arith.constant 0 : i32
    return %c0_i32, %c0_i32_0 : i32, i32
  }
  func.func @transform_5(%arg0: i32, %arg1: i32) -> (i32, i32) {
    %c0_i32 = arith.constant 0 : i32
    %c0_i32_0 = arith.constant 0 : i32
    %c0_i32_1 = arith.constant 0 : i32
    return %c0_i32, %c0_i32_0 : i32, i32
  }
  func.func @transform_6(%arg0: i32, %arg1: i32) -> (i32, i32) {
    %c0_i32 = arith.constant 0 : i32
    %c0_i32_0 = arith.constant 0 : i32
    %c0_i32_1 = arith.constant 0 : i32
    return %c0_i32, %c0_i32_0 : i32, i32
  }
  func.func @transform_7(%arg0: i32, %arg1: i32) -> (i32, i32) {
    %c0_i32 = arith.constant 0 : i32
    %c0_i32_0 = arith.constant 0 : i32
    %c0_i32_1 = arith.constant 0 : i32
    return %c0_i32, %c0_i32_0 : i32, i32
  }
  func.func @transform_8(%arg0: i32, %arg1: i32) -> (i32, i32) {
    %c0_i32 = arith.constant 0 : i32
    %c0_i32_0 = arith.constant 0 : i32
    %c0_i32_1 = arith.constant 0 : i32
    return %c0_i32, %c0_i32_0 : i32, i32
  }
  func.func @transform_9(%arg0: i32, %arg1: i32) -> (i32, i32) {
    %c0_i32 = arith.constant 0 : i32
    %c0_i32_0 = arith.constant 0 : i32
    %c0_i32_1 = arith.constant 0 : i32
    return %c0_i32, %c0_i32_0 : i32, i32
  }
  func.func @transform_10(%arg0: i32, %arg1: i32) -> (i32, i32) {
    %c3_i32 = arith.constant 3 : i32
    %0 = arith.cmpi eq, %arg0, %c3_i32 : i32
    %c0_i32 = arith.constant 0 : i32
    %1 = arith.select %0, %arg1, %c0_i32 : i32
    %c0_i32_0 = arith.constant 0 : i32
    %c0_i32_1 = arith.constant 0 : i32
    return %1, %c0_i32_0 : i32, i32
  }
}

</mosaic_0001>

<bundles_post_ra>
// kernel: dnn_forward.1
= control target key start
LH: loop header
LB: loop body
LE: loop exit
PB: predicated region body
PF: predicated region fallthrough
CT: control target
= control target key end

     0   :  { %s4964_s0 = inlined_call_operand.vmem [shape: bf16[128,64], index: 0, kind: input, shape index: {}]   ;;  %s4965_s1 = inlined_call_operand.vmem [shape: bf16[128,96], index: 1, kind: input, shape index: {}]   ;;  %s4966_s2 = inlined_call_operand.hbm [shape: bf16[64,128], index: 2, kind: input, shape index: {}]   ;;  %s4967_s3 = inlined_call_operand.hbm [shape: bf16[96,128], index: 3, kind: input, shape index: {}]   ;;  %s4968_s4 = inlined_call_operand.vmem [shape: bf16[128,256], index: 4, kind: input, shape index: {}]   ;;  %s4969_s5 = inlined_call_operand.vmem [shape: bf16[128,256], index: 5, kind: input, shape index: {}]   ;;  %s4970_s6 = inlined_call_operand.hbm [shape: bf16[256,128], index: 6, kind: input, shape index: {}]   ;;  %s4971_s7 = inlined_call_operand.hbm [shape: bf16[128,128], index: 7, kind: input, shape index: {}]   ;;  %s4972_s8 = inlined_call_operand.hbm [shape: f32[16,256], index: 8, kind: input, shape index: {}]   ;;  %s4973_s9 = inlined_call_operand.<no memory space> [shape: f32[1,1], index: 9, kind: input, shape index: {}]   ;;  %s4974_s10 = inlined_call_operand.vmem [shape: f32[128,1], index: 10, kind: output, shape index: {}]  }
   0x1   :  { %4978 = sst [smem:[#allocation23_spill]] %s4966_s2  ;;  %v15_v0 = vstv %s4973_s9 }
   0x2   :  { %16 = vst [vmem:[#allocation11] sm:$0x1] %v15_v0 }
   0x3   :  { %17 = vsyncpa [#allocation13], 0 }
   0x4   :  { %18 = vsyncpa [#allocation15], 0 }
   0x5   :  { %19 = vsyncpa [#allocation18], 0  ;;  %s4129_s15 = smov 0   ;;  %s4131_s16 = smov 0  }
   0x6   :  { %s4133_s17 = smov 0  }
   0x7 LB: > { %s3233_s9 = sadd.s32 4294967295, %s4057_s17   ;;  %p3235_p0 = scmp.ge.s32.totalorder %s4057_s17, 1  ;;  %s4057_s17 = sphi %s4133_s17, %s25_s17   ;;  %s4053_s16 = sphi %s4131_s16, %s4991_s16   ;;  %s4049_s15 = sphi %s4129_s15, %s4990_s15  }
   0x8   : > { %p300_p1 = scmp.lt.s32.totalorder %s4057_s17, 5  ;;  %p4147_p2 = scmp.eq.s32.totalorder %s3233_s9, 0 }
   0x9   : > { %s4059_s20 = smov [#allocation14]   ;;  %s4060_s22 = smov [#allocation17]  }
   0xa   : > { %s4979_s18 = scalar_select %p4147_p2, 1, 0 }
   0xb   : > { %p4151_p3 = pnand %p3235_p0, %p300_p1  ;;  %s325_s21 = sshll.u32 %s4059_s20, 4  ;;  %s4155_s21 = int_to_ptr.vmem [resolvable:$true] %s325_s21 }
   0xc   : > { %s357_s23 = sshll.u32 %s4060_s22, 4  ;;  %s37_s25 = sadd.s32 1, %s4053_s16  ;;  %s4159_s23 = int_to_ptr.vmem [resolvable:$true] %s357_s23 }
   0xd   : > { %s4980_s19 = scalar_select %p4151_p3, 1, 0 }
   0xe   : > { %p3653_p4 = pneg %p4151_p3  ;;  %s3883_s28 = scalar_lea.hbm %s4967_s3, 768 }
   0xf   : > { %p3884_p6 = scmp.ne.s32.totalorder %s4967_s3, %s3883_s28  ;;  %p3890_p10 = scmp.lt.u32.totalorder %s3883_s28, %s4967_s3 }
  0x10   : > { %p4163_p5 = pnand %p4147_p2, %p3653_p4 }
  0x12   : > { %p4176_p7 = pneg %p4163_p5 }
  0x14   : > { %p3886_p8 = pnand %p4176_p7, %p3884_p6 }
  0x16   : > { %p3887_p9 = pneg %p3886_p8 }
  0x18   : > { %p3892_p11 = pnand %p3890_p10, %p3887_p9 }
  0x1a   : > { %3895 = shalt.err (!%p3892_p11)
}
  0x1b   : > { %s3896_s14 = scalar_lea.vmem %s4155_s21, 768  ;;  %p3904_p1 = scmp.lt.s32.totalorder %s4155_s21, %s4155_s21 }
  0x1c   : > { %p3897_p12 = scmp.ne.s32.totalorder %s4155_s21, %s3896_s14  ;;  %p3905_p4 = scmp.lt.s32.totalorder %s3896_s14, %s3896_s14 }
  0x1e   : > { %p3899_p13 = pnand %p3897_p12, %p4176_p7  ;;  %p3906_p6 = por %p3905_p4, %p3904_p1 }
  0x20   : > { %p3900_p0 = pneg %p3899_p13 }
  0x22   : > { %p3907_p8 = pnand %p3906_p6, %p3900_p0 }
  0x24   : > { %3910 = shalt.err (!%p3907_p8)
}
  0x25   : > { %s4061_s9 = smov 64   ;;  %s4062_s20 = smov 4  }
  0x26   : > { %3659 = dma.hbm_to_vmem [thread:$0]  (!%p4163_p5), %s4967_s3, 768, %s4155_s21, [#allocation15], %s4061_s9, %s4061_s9, %s4062_s20  }
  0x27   : > { %s3911_s29 = scalar_lea.hbm %s4971_s7, 1024 }
  0x28   : > { %p3912_p9 = scmp.ne.s32.totalorder %s4971_s7, %s3911_s29  ;;  %p3918_p12 = scmp.lt.u32.totalorder %s3911_s29, %s4971_s7 }
  0x2a   : > { %p3914_p10 = pnand %p3912_p9, %p4176_p7 }
  0x2c   : > { %p3915_p11 = pneg %p3914_p10 }
  0x2e   : > { %p3920_p13 = pnand %p3918_p12, %p3915_p11 }
  0x30   : > { %3923 = shalt.err (!%p3920_p13)
}
  0x31   : > { %s3924_s21 = scalar_lea.vmem %s4159_s23, 1024  ;;  %p3932_p6 = scmp.lt.s32.totalorder %s4159_s23, %s4159_s23 }
  0x32   : > { %p3925_p0 = scmp.ne.s32.totalorder %s4159_s23, %s3924_s21  ;;  %p3933_p8 = scmp.lt.s32.totalorder %s3924_s21, %s3924_s21 }
  0x34   : > { %p3927_p1 = pnand %p3925_p0, %p4176_p7  ;;  %p3934_p9 = por %p3933_p8, %p3932_p6 }
  0x36   : > { %p3928_p4 = pneg %p3927_p1 }
  0x38   : > { %p3935_p10 = pnand %p3934_p9, %p3928_p4 }
  0x3a   : > { %3938 = shalt.err (!%p3935_p10)
}
  0x3b   : > { %3665 = dma.hbm_to_vmem [thread:$0]  (!%p4163_p5), %s4971_s7, 1024, %s4159_s23, [#allocation18], %s4061_s9, %s4061_s9, %s4062_s20  }
  0x3c   : > { %p39_p11 = scmp.ge.s32.totalorder %s37_s25, 4  ;;  %s4063_s27 = smov [#allocation12]  }
  0x3d   : > { %s312_s28 = sshll.u32 %s4063_s27, 4  ;;  %s4064_s29 = smov [#allocation16]   ;;  %s313_s28 = int_to_ptr.vmem [resolvable:$true] %s312_s28 }
  0x3e   : > { %s4993_s25 = smov (%p39_p11, %s37_s25), 0  ;;  %s344_s30 = sshll.u32 %s4064_s29, 4  ;;  %s345_s30 = int_to_ptr.vmem [resolvable:$true] %s344_s30 }
  0x3f   : > { %s4983_s2 = sld [smem:[#allocation23_spill]] }
  0x45   : > { %s3939_s14 = scalar_lea.hbm %s4983_s2, 512 }
  0x46   : > { %p3940_p12 = scmp.ne.s32.totalorder %s4983_s2, %s3939_s14  ;;  %p3946_p1 = scmp.lt.u32.totalorder %s3939_s14, %s4983_s2 }
  0x48   : > { %p3942_p13 = pnand %p3940_p12, %p4176_p7 }
  0x4a   : > { %p3943_p0 = pneg %p3942_p13 }
  0x4c   : > { %p3948_p4 = pnand %p3946_p1, %p3943_p0 }
  0x4e   : > { %3951 = shalt.err (!%p3948_p4)
}
  0x4f   : > { %s3952_s27 = scalar_lea.vmem %s313_s28, 512  ;;  %p3960_p10 = scmp.lt.s32.totalorder %s313_s28, %s313_s28 }
  0x50   : > { %p3953_p6 = scmp.ne.s32.totalorder %s313_s28, %s3952_s27  ;;  %p3961_p11 = scmp.lt.s32.totalorder %s3952_s27, %s3952_s27 }
  0x52   : > { %p3955_p8 = pnand %p3953_p6, %p4176_p7  ;;  %p3962_p2 = por %p3961_p11, %p3960_p10 }
  0x54   : > { %p3956_p9 = pneg %p3955_p8 }
  0x56   : > { %p3963_p3 = pnand %p3962_p2, %p3956_p9 }
  0x58   : > { %3966 = shalt.err (!%p3963_p3)
}
  0x59   : > { %3656 = dma.hbm_to_vmem [thread:$0]  (!%p4163_p5), %s4983_s2, 512, %s313_s28, [#allocation13], %s4061_s9, %s4061_s9, %s4062_s20  }
  0x5a   : > { %s3967_s21 = scalar_lea.hbm %s4970_s6, 2048 }
  0x5b   : > { %p3968_p2 = scmp.ne.s32.totalorder %s4970_s6, %s3967_s21  ;;  %p3974_p13 = scmp.lt.u32.totalorder %s3967_s21, %s4970_s6 }
  0x5d   : > { %p3970_p3 = pnand %p3968_p2, %p4176_p7 }
  0x5f   : > { %p3971_p12 = pneg %p3970_p3 }
  0x61   : > { %p3976_p0 = pnand %p3974_p13, %p3971_p12 }
  0x63   : > { %3979 = shalt.err (!%p3976_p0)
}
  0x64   : > { %s3980_s29 = scalar_lea.vmem %s345_s30, 2048  ;;  %p3988_p8 = scmp.lt.s32.totalorder %s345_s30, %s345_s30 }
  0x65   : > { %p3981_p1 = scmp.ne.s32.totalorder %s345_s30, %s3980_s29  ;;  %p3989_p9 = scmp.lt.s32.totalorder %s3980_s29, %s3980_s29 }
  0x67   : > { %p3983_p4 = pnand %p3981_p1, %p4176_p7  ;;  %p3990_p10 = por %p3989_p9, %p3988_p8 }
  0x69   : > { %p3984_p6 = pneg %p3983_p4 }
  0x6b   : > { %p3991_p11 = pnand %p3990_p10, %p3984_p6 }
  0x6d   : > { %3994 = shalt.err (!%p3991_p11)
}
  0x6e   : > { %3662 = dma.hbm_to_vmem [thread:$0]  (!%p4163_p5), %s4970_s6, 2048, %s345_s30, [#allocation15], %s4061_s9, %s4061_s9, %s4062_s20  }
  0x6f   : > { %s4065_s13 = smov [#allocation19]   ;;  %s3995_s23 = scalar_lea.hbm %s4972_s8, 512 }
  0x70   : > { %s370_s14 = sshll.u32 %s4065_s13, 4  ;;  %p3996_p2 = scmp.ne.s32.totalorder %s4972_s8, %s3995_s23  ;;  %s371_s14 = int_to_ptr.vmem [resolvable:$true] %s370_s14 }
  0x71   : > { %p4002_p13 = scmp.lt.u32.totalorder %s3995_s23, %s4972_s8 }
  0x72   : > { %p3998_p3 = pnand %p3996_p2, %p4176_p7 }
  0x74   : > { %p3999_p12 = pneg %p3998_p3 }
  0x76   : > { %p4004_p0 = pnand %p4002_p13, %p3999_p12 }
  0x78   : > { %4007 = shalt.err (!%p4004_p0)
}
  0x79   : > { %s4008_s9 = scalar_lea.vmem %s371_s14, 512  ;;  %p4016_p8 = scmp.lt.s32.totalorder %s371_s14, %s371_s14 }
  0x7a   : > { %p4009_p1 = scmp.ne.s32.totalorder %s371_s14, %s4008_s9  ;;  %p4017_p9 = scmp.lt.s32.totalorder %s4008_s9, %s4008_s9 }
  0x7c   : > { %p4011_p4 = pnand %p4009_p1, %p4176_p7  ;;  %p4018_p10 = por %p4017_p9, %p4016_p8 }
  0x7e   : > { %p4012_p6 = pneg %p4011_p4 }
  0x80   : > { %p4019_p11 = pnand %p4018_p10, %p4012_p6 }
  0x82   : > { %4022 = shalt.err (!%p4019_p11)
}
  0x83   : > { %s4066_s20 = smov 256   ;;  %s4067_s30 = smov 16  }
  0x84   : > { %3668 = dma.hbm_to_vmem [thread:$0]  (!%p4163_p5), %s4972_s8, 512, %s371_s14, [#allocation18], %s4066_s20, %s4066_s20, %s4067_s30  }
  0x85   : > { %p4984_p2 = scmp.ne.s32.totalorder %s4980_s19, 0 }
  0x86   : > { %p4985_p3 = scmp.ne.s32.totalorder (!%p4984_p2), %s4979_s18, 0 }
  0x87   : > { %415 = sbr.rel (%p4984_p2) target bundleno = 1506 (0x5e2), region = 60 }
  0x8e   : > { %4036 = dma.done.wait (%p4985_p3), [#allocation13], 512  }
  0x8f   : > { %4038 = vsyncadd (%p4985_p3), [#allocation13], 4294966784 }
  0x90   : > { %4040 = dma.done.wait (%p4985_p3), [#allocation15], 2816  }
  0x91   : > { %4042 = vsyncadd (%p4985_p3), [#allocation15], 4294964480 }
  0x92   : > { %4044 = dma.done.wait (%p4985_p3), [#allocation18], 1536  }
  0x93   : > { %4046 = vsyncadd (%p4985_p3), [#allocation18], 4294965760  ;;  %p512_p5 = scmp.eq.s32.totalorder %s4049_s15, 0 }
  0x94   : > { %vm521_vm0 = vcmask (%p512_p5), 7168   ;;  %v4068_v1 = vmov (%p512_p5), 0.0  }
  0x95   : > { %517 = sbr.rel (!%p512_p5) target bundleno = 159 (0x9f), region = 84  ;;  %518 = vst [vmem:[#allocation5] sm:$0xf] (%p512_p5), %v4068_v1  ;;  %519 = vst [vmem:[#allocation6] sm:$0x3] (%p512_p5), %v4068_v1 }
  0x96   : > { %520 = vst [vmem:[#allocation7] sm:$0x3] (%p512_p5), %v4068_v1  ;;  %522 = vst.msk [vmem:[%s4974_s10] sm:$0xff] (%p512_p5), %vm521_vm0, %v4068_v1 }
  0x97   : > { %523 = vst.msk [vmem:[%s4974_s10 + $0x8] sm:$0xff] (%p512_p5), %vm521_vm0, %v4068_v1  ;;  %524 = vst.msk [vmem:[%s4974_s10 + $0x10] sm:$0xff] (%p512_p5), %vm521_vm0, %v4068_v1 }
  0x98   : > { %525 = vst.msk [vmem:[%s4974_s10 + $0x18] sm:$0xff] (%p512_p5), %vm521_vm0, %v4068_v1  ;;  %526 = vst.msk [vmem:[%s4974_s10 + $0x20] sm:$0xff] (%p512_p5), %vm521_vm0, %v4068_v1 }
  0x99   : > { %527 = vst.msk [vmem:[%s4974_s10 + $0x28] sm:$0xff] (%p512_p5), %vm521_vm0, %v4068_v1  ;;  %528 = vst.msk [vmem:[%s4974_s10 + $0x30] sm:$0xff] (%p512_p5), %vm521_vm0, %v4068_v1 }
  0x9a   : > { %529 = vst.msk [vmem:[%s4974_s10 + $0x38] sm:$0xff] (%p512_p5), %vm521_vm0, %v4068_v1  ;;  %530 = vst.msk [vmem:[%s4974_s10 + $0x40] sm:$0xff] (%p512_p5), %vm521_vm0, %v4068_v1 }
  0x9b   : > { %531 = vst.msk [vmem:[%s4974_s10 + $0x48] sm:$0xff] (%p512_p5), %vm521_vm0, %v4068_v1  ;;  %532 = vst.msk [vmem:[%s4974_s10 + $0x50] sm:$0xff] (%p512_p5), %vm521_vm0, %v4068_v1 }
  0x9c   : > { %533 = vst.msk [vmem:[%s4974_s10 + $0x58] sm:$0xff] %vm521_vm0, %v4068_v1  ;;  %534 = vst.msk [vmem:[%s4974_s10 + $0x60] sm:$0xff] %vm521_vm0, %v4068_v1 }
  0x9d   : > { %535 = vst.msk [vmem:[%s4974_s10 + $0x68] sm:$0xff] %vm521_vm0, %v4068_v1  ;;  %536 = vst.msk [vmem:[%s4974_s10 + $0x70] sm:$0xff] %vm521_vm0, %v4068_v1 }
  0x9e   : > { %537 = vst.msk [vmem:[%s4974_s10 + $0x78] sm:$0xff] %vm521_vm0, %v4068_v1 }
  0x9f PF: > { %p3251_p7 = scmp.ne.s32.totalorder %s4049_s15, 0 }
  0xa0   : > { %v3715_v2 = vld [vmem:[#allocation12] sm:$0xff] (!%p3251_p7)   ;;  %v3717_v4 = vld [vmem:[#allocation12 + $0x8] sm:$0xff] (!%p3251_p7)   ;;  %v3719_v6 = vld [vmem:[#allocation12 + $0x10] sm:$0xff] (!%p3251_p7)   ;;  %vm630_vm1 = vcmask (!%p3251_p7), 523264   ;;  %vm873_vm2 = vcmask (!%p3251_p7), 785408   ;;  %v4069_v58 = vmov (!%p3251_p7), 0  }
  0xa1   : > { %540 = sbr.rel (%p3251_p7) target bundleno = 685 (0x2ad), region = 88  ;;  %v3716_v3 = vld [vmem:[#allocation14] sm:$0xff] (!%p3251_p7)   ;;  %3485 = vmatprep.subr.bf16.mxu0 (!%p3251_p7), %v3715_v2  ;;  %v3718_v5 = vld [vmem:[#allocation14 + $0x8] sm:$0xff] (!%p3251_p7)   ;;  %v3720_v7 = vld [vmem:[#allocation14 + $0x10] sm:$0xff] (!%p3251_p7)  }
  0xa2   : > { %3509 = vmatprep.subr.bf16.mxu1 (!%p3251_p7), %v3716_v3  ;;  %3486 = vmatpush3.bf16.msra.mxu0 (!%p3251_p7), %v3715_v2  ;;  %v3721_v8 = vld [vmem:[#allocation12 + $0x18] sm:$0xff] (!%p3251_p7)   ;;  %v3723_v9 = vld [vmem:[%s4964_s0] sm:$0xff] (!%p3251_p7)   ;;  %v3725_v12 = vld [vmem:[#allocation14 + $0x20] sm:$0xff] (!%p3251_p7)  }
  0xa3   : > { %3510 = vmatpush3.bf16.msra.mxu1 (!%p3251_p7), %v3716_v3  ;;  %3487 = vmatprep.subr.bf16.mxu0 (!%p3251_p7), %v3717_v4  ;;  %v3722_v10 = vld [vmem:[#allocation14 + $0x18] sm:$0xff] (!%p3251_p7)   ;;  %v3727_v11 = vld [vmem:[%s4965_s1] sm:$0xff] (!%p3251_p7)   ;;  %v3730_v17 = vld [vmem:[%s4964_s0 + $0x18] sm:$0xff] (!%p3251_p7)  }
  0xa4   : > { %3511 = vmatprep.subr.bf16.mxu1 (!%p3251_p7), %v3718_v5  ;;  %3493 = vmatprep.mubr.msk.bf16.mxu0 (!%p3251_p7), %vm630_vm1, %v3723_v9  ;;  %v3724_v13 = vld [vmem:[%s4964_s0 + $0x8] sm:$0xff] (!%p3251_p7)   ;;  %v3729_v14 = vld [vmem:[%s4964_s0 + $0x10] sm:$0xff] (!%p3251_p7)   ;;  %v3726_v15 = vld [vmem:[#allocation14 + $0x28] sm:$0xff] (!%p3251_p7)  }
  0xa5   : > { %3521 = vmatprep.mubr.msk.bf16.mxu1 (!%p3251_p7), %vm873_vm2, %v3727_v11  ;;  %v3728_v16 = vld [vmem:[%s4965_s1 + $0x8] sm:$0xff] (!%p3251_p7)   ;;  %v3733_v18 = vld [vmem:[%s4964_s0 + $0x20] sm:$0xff] (!%p3251_p7)   ;;  %v3731_v19 = vld [vmem:[%s4965_s1 + $0x10] sm:$0xff] (!%p3251_p7)  }
  0xa6   : > { %3488 = vmatpush3.bf16.msra.mxu0 (!%p3251_p7), %v3717_v4  ;;  %v3741_v20 = vld [vmem:[%s4968_s4] ss:$8 sps:$4 sm:$0xff] (!%p3251_p7)   ;;  %v3743_v21 = vld [vmem:[%s4968_s4 + $0x4] ss:$8 sps:$4 sm:$0xff] (!%p3251_p7)   ;;  %v3746_v23 = vld [vmem:[%s4968_s4 + $0x14] ss:$8 sps:$4 sm:$0xff] (!%p3251_p7)  }
  0xa7   : > { %3512 = vmatpush3.bf16.msra.mxu1 (!%p3251_p7), %v3718_v5  ;;  %3489 = vmatprep.subr.bf16.mxu0 (!%p3251_p7), %v3719_v6  ;;  %v3734_v22 = vld [vmem:[%s4964_s0 + $0x28] sm:$0xff] (!%p3251_p7)   ;;  %v3732_v24 = vld [vmem:[%s4965_s1 + $0x18] sm:$0xff] (!%p3251_p7)   ;;  %v3735_v27 = vld [vmem:[%s4965_s1 + $0x20] sm:$0xff] (!%p3251_p7)  }
  0xa8   : > { %3513 = vmatprep.subr.bf16.mxu1 %v3720_v7  ;;  %v3747_v25 = vld [vmem:[%s4969_s5] ss:$8 sps:$4 sm:$0xff]   ;;  %v3749_v26 = vld [vmem:[%s4969_s5 + $0x4] ss:$8 sps:$4 sm:$0xff]   ;;  %v3737_v28 = vld [vmem:[%s4964_s0 + $0x30] sm:$0xff]  }
  0xa9   : > { %v3744_v29 = vld [vmem:[%s4968_s4 + $0x10] ss:$8 sps:$4 sm:$0xff]   ;;  %v3755_v30 = vld [vmem:[%s4969_s5 + $0x14] ss:$8 sps:$4 sm:$0xff]   ;;  %v3752_v31 = vld [vmem:[%s4968_s4 + $0x24] ss:$8 sps:$4 sm:$0xff]  }
  0xaa   : > { %3490 = vmatpush3.bf16.msra.mxu0 %v3719_v6  ;;  %v3753_v32 = vld [vmem:[%s4969_s5 + $0x10] ss:$8 sps:$4 sm:$0xff]   ;;  %v3761_v33 = vld [vmem:[%s4969_s5 + $0x24] ss:$8 sps:$4 sm:$0xff]   ;;  %v3750_v35 = vld [vmem:[%s4968_s4 + $0x20] ss:$8 sps:$4 sm:$0xff]  }
  0xab   : > { %3514 = vmatpush3.bf16.msra.mxu1 %v3720_v7  ;;  %3491 = vmatprep.subr.bf16.mxu0 %v3721_v8  ;;  %v3738_v34 = vld [vmem:[%s4964_s0 + $0x38] sm:$0xff]   ;;  %v3736_v36 = vld [vmem:[%s4965_s1 + $0x28] sm:$0xff]   ;;  %v3739_v39 = vld [vmem:[%s4965_s1 + $0x30] sm:$0xff]  }
  0xac   : > { %3515 = vmatprep.subr.bf16.mxu1 %v3722_v10  ;;  %v3758_v37 = vld [vmem:[%s4968_s4 + $0x34] ss:$8 sps:$4 sm:$0xff]   ;;  %v3759_v38 = vld [vmem:[%s4969_s5 + $0x20] ss:$8 sps:$4 sm:$0xff]   ;;  %v3756_v40 = vld [vmem:[%s4968_s4 + $0x30] ss:$8 sps:$4 sm:$0xff]  }
  0xad   : > { %v3767_v41 = vld [vmem:[%s4969_s5 + $0x34] ss:$8 sps:$4 sm:$0xff]   ;;  %v3764_v42 = vld [vmem:[%s4968_s4 + $0x44] ss:$8 sps:$4 sm:$0xff]   ;;  %v3765_v43 = vld [vmem:[%s4969_s5 + $0x30] ss:$8 sps:$4 sm:$0xff]  }
  0xae   : > { %3492 = vmatpush3.bf16.msra.mxu0 %v3721_v8  ;;  %v3762_v44 = vld [vmem:[%s4968_s4 + $0x40] ss:$8 sps:$4 sm:$0xff]   ;;  %v3770_v45 = vld [vmem:[%s4968_s4 + $0x54] ss:$8 sps:$4 sm:$0xff]   ;;  %v3768_v47 = vld [vmem:[%s4968_s4 + $0x50] ss:$8 sps:$4 sm:$0xff]  }
  0xaf   : > { %3516 = vmatpush3.bf16.msra.mxu1 %v3722_v10  ;;  %1332 = vmatprep.subr.bf16.mxu0 %v3743_v21  ;;  %v3740_v46 = vld [vmem:[%s4965_s1 + $0x38] sm:$0xff]   ;;  %v3773_v48 = vld [vmem:[%s4969_s5 + $0x44] ss:$8 sps:$4 sm:$0xff]   ;;  %v3771_v50 = vld [vmem:[%s4969_s5 + $0x40] ss:$8 sps:$4 sm:$0xff]  }
  0xb0   : > { %3517 = vmatprep.subr.bf16.mxu1 %v3725_v12  ;;  %v3776_v49 = vld [vmem:[%s4968_s4 + $0x64] ss:$8 sps:$4 sm:$0xff]   ;;  %v3774_v51 = vld [vmem:[%s4968_s4 + $0x60] ss:$8 sps:$4 sm:$0xff]   ;;  %v3779_v52 = vld [vmem:[%s4969_s5 + $0x54] ss:$8 sps:$4 sm:$0xff]  }
  0xb1   : > { %3494 = vmatmul.mubr.msk.bf16.vlgmr.msra.gmra.mrb[0].mxu0 %vm630_vm1, %v3724_v13  ;;  %v3782_v53 = vld [vmem:[%s4968_s4 + $0x74] ss:$8 sps:$4 sm:$0xff]   ;;  %v3777_v54 = vld [vmem:[%s4969_s5 + $0x50] ss:$8 sps:$4 sm:$0xff]   ;;  %v3785_v56 = vld [vmem:[%s4969_s5 + $0x64] ss:$8 sps:$4 sm:$0xff]  }
  0xb2   : > { %3497 = vmatprep.mubr.msk.bf16.mxu0 %vm630_vm1, %v3729_v14  ;;  %1333 = vmatpush1.bf16.msra.mxu0 %v3741_v20  ;;  %v3780_v55 = vld [vmem:[%s4968_s4 + $0x70] ss:$8 sps:$4 sm:$0xff]   ;;  %v3783_v57 = vld [vmem:[%s4969_s5 + $0x60] ss:$8 sps:$4 sm:$0xff]   ;;  %v3788_v59 = vld [vmem:[%s4969_s5 + $0x74] ss:$8 sps:$4 sm:$0xff]  }
  0xb3   : > { %3518 = vmatpush3.bf16.msra.mxu1 %v3725_v12  ;;  %1334 = vmatprep.subr.bf16.mxu0 %v3746_v23  ;;  %v3786_v60 = vld [vmem:[%s4969_s5 + $0x70] ss:$8 sps:$4 sm:$0xff]   ;;  %v4534_v61 = vld [vmem:[#allocation19] ss:$0 sm:$0xff]  ;;  %v4540_v11 = vld [vmem:[#allocation19 + $0x8] ss:$0 sm:$0xff] }
  0xb4   : > { %3519 = vmatprep.subr.bf16.mxu1 %v3726_v15 }
  0xb6   : > { %1335 = vmatpush1.bf16.msra.mxu0 %v3744_v29 }
  0xb7   : > { %3520 = vmatpush3.bf16.msra.mxu1 %v3726_v15  ;;  %1336 = vmatprep.subr.bf16.mxu0 %v3752_v31 }
  0xb8   : > { %1139 = vmatprep.subr.bf16.mxu1 %v3749_v26 }
  0xb9   : > { %3498 = vmatmul.mubr.msk.bf16.gmra.mrb[4].mxu0 %vm630_vm1, %v3730_v17 }
  0xba   : > { %3522 = vmatmul.mubr.msk.bf16.vlgmr.msra.gmra.mrb[0].mxu1 %vm873_vm2, %v3728_v16  ;;  %3501 = vmatprep.mubr.msk.bf16.mxu0 %vm630_vm1, %v3733_v18 }
  0xbb   : > { %3525 = vmatprep.mubr.msk.bf16.mxu1 %vm873_vm2, %v3731_v19  ;;  %1140 = vmatpush1.bf16.msra.mxu1 %v3747_v25 }
  0xbc   : > { %1141 = vmatprep.subr.bf16.mxu1 %v3755_v30  ;;  %1337 = vmatpush1.bf16.msra.mxu0 %v3750_v35 }
  0xbd   : > { %1338 = vmatprep.subr.bf16.mxu0 %v3758_v37 }
  0xbf   : > { %1142 = vmatpush1.bf16.msra.mxu1 %v3753_v32 }
  0xc0   : > { %1143 = vmatprep.subr.bf16.mxu1 %v3761_v33  ;;  %1339 = vmatpush1.bf16.msra.mxu0 %v3756_v40 }
  0xc1   : > { %3502 = vmatmul.mubr.msk.bf16.gmra.mrb[8].mxu0 %vm630_vm1, %v3734_v22  ;;  %1340 = vmatprep.subr.bf16.mxu0 %v3764_v42 }
  0xc2   : > { %3526 = vmatmul.mubr.msk.bf16.gmra.mrb[4].mxu1 %vm873_vm2, %v3732_v24  ;;  %3505 = vmatprep.mubr.msk.bf16.mxu0 %vm630_vm1, %v3737_v28 }
  0xc3   : > { %3529 = vmatprep.mubr.msk.bf16.mxu1 %vm873_vm2, %v3735_v27  ;;  %1144 = vmatpush1.bf16.msra.mxu1 %v3759_v38 }
  0xc4   : > { %1145 = vmatprep.subr.bf16.mxu1 %v3767_v41  ;;  %1341 = vmatpush1.bf16.msra.mxu0 %v3762_v44 }
  0xc5   : > { %1342 = vmatprep.subr.bf16.mxu0 %v3770_v45 }
  0xc7   : > { %1146 = vmatpush1.bf16.msra.mxu1 %v3765_v43 }
  0xc8   : > { %1343 = vmatpush1.bf16.msra.mxu0 %v3768_v47  ;;  %1147 = vmatprep.subr.bf16.mxu1 %v3773_v48 }
  0xc9   : > { %3506 = vmatmul.mubr.msk.bf16.gmra.mrb[12].mxu0 %vm630_vm1, %v3738_v34  ;;  %1344 = vmatprep.subr.bf16.mxu0 %v3776_v49 }
  0xca   : > { %3530 = vmatmul.mubr.msk.bf16.gmra.mrb[8].mxu1 %vm873_vm2, %v3736_v36  ;;  %1364 = vmatprep.mubr.bf16.mxu0 %v4069_v58 }
  0xcb   : > { %3533 = vmatprep.mubr.msk.bf16.mxu1 %vm873_vm2, %v3739_v39  ;;  %1148 = vmatpush1.bf16.msra.mxu1 %v3771_v50 }
  0xcc   : > { %1345 = vmatpush1.bf16.msra.mxu0 %v3774_v51  ;;  %1149 = vmatprep.subr.bf16.mxu1 %v3779_v52 }
  0xcd   : > { %1346 = vmatprep.subr.bf16.mxu0 %v3782_v53 }
  0xcf   : > { %1150 = vmatpush1.bf16.msra.mxu1 %v3777_v54 }
  0xd0   : > { %1347 = vmatpush1.bf16.msra.mxu0 %v3780_v55  ;;  %1151 = vmatprep.subr.bf16.mxu1 %v3785_v56 }
  0xd2   : > { %3534 = vmatmul.mubr.msk.bf16.gmra.mrb[12].mxu1 %vm873_vm2, %v3740_v46 }
  0xd3   : > { %1171 = vmatprep.mubr.bf16.mxu1 %v4069_v58  ;;  %1152 = vmatpush1.bf16.msra.mxu1 %v3783_v57 }
  0xd4   : > { %1153 = vmatprep.subr.bf16.mxu1 %v3788_v59 }
  0xd7   : > { %1154 = vmatpush1.bf16.msra.mxu1 %v3786_v60 }
 0x184   : > { %v3495_v62 = vpop.f32.mrb[0].mxu0 }
 0x185   : > { %v698_v63 = vadd.f32 %v3495_v62, %v4534_v61  ;;  %v689_v0 = vpop.f32.mrb[1].mxu0 }
 0x186   : > { %v690_v1 = vadd.f32 %v689_v0, %v4534_v61  ;;  %v3496_v2 = vpop.f32.mrb[2].mxu0 }
 0x187   : > { %v754_v3 = vmax.f32 %v698_v63, 0.0  ;;  %v701_v4 = vadd.f32 %v3496_v2, %v4534_v61  ;;  %v692_v5 = vpop.f32.mrb[3].mxu0 }
 0x188   : > { %v752_v6 = vmax.f32 %v690_v1, 0.0  ;;  %v693_v7 = vadd.f32 %v692_v5, %v4534_v61 }
 0x189   : > { %v755_v8 = vmax.f32 %v701_v4, 0.0 }
 0x18a   : > { %v753_v9 = vmax.f32 %v693_v7, 0.0 }
 0x18b   : > { %v1012_v10 = vpack.c.bf16 %v755_v8, %v754_v3 }
 0x18c   : > { %v1011_v12 = vpack.c.bf16 %v753_v9, %v752_v6  ;;  %v3499_v13 = vpop.f32.mrb[4].mxu0 }
 0x18d   : > { %v3523_v14 = vpop.f32.mrb[0].mxu1  ;;  %v714_v15 = vadd.f32 %v3499_v13, %v4534_v61  ;;  %v705_v16 = vpop.f32.mrb[5].mxu0 }
 0x18e   : > { %v941_v17 = vadd.f32 %v3523_v14, %v4540_v11  ;;  %v932_v18 = vpop.f32.mrb[1].mxu1  ;;  %1365 = vmatmul.mubr.bf16.vlgmr.msra.gmra.mrb[16].mxu0 %v1011_v12  ;;  %v706_v19 = vadd.f32 %v705_v16, %v4534_v61  ;;  %v3500_v20 = vpop.f32.mrb[6].mxu0 }
 0x18f   : > { %v933_v21 = vadd.f32 %v932_v18, %v4540_v11  ;;  %v3524_v22 = vpop.f32.mrb[2].mxu1  ;;  %v758_v23 = vmax.f32 %v714_v15, 0.0  ;;  %1374 = vmatprep.mubr.bf16.mxu0 %v4069_v58  ;;  %v717_v24 = vadd.f32 %v3500_v20, %v4534_v61  ;;  %v708_v25 = vpop.f32.mrb[7].mxu0 }
 0x190   : > { %v944_v26 = vadd.f32 %v3524_v22, %v4540_v11  ;;  %v935_v27 = vpop.f32.mrb[3].mxu1  ;;  %v756_v28 = vmax.f32 %v706_v19, 0.0  ;;  %v709_v29 = vadd.f32 %v708_v25, %v4534_v61  ;;  %v997_v32 = vmax.f32 %v941_v17, 0.0 }
 0x191   : > { %v936_v30 = vadd.f32 %v935_v27, %v4540_v11  ;;  %v759_v31 = vmax.f32 %v717_v24, 0.0  ;;  %v995_v35 = vmax.f32 %v933_v21, 0.0 }
 0x192   : > { %v998_v33 = vmax.f32 %v944_v26, 0.0  ;;  %v757_v34 = vmax.f32 %v709_v29, 0.0 }
 0x193   : > { %v996_v36 = vmax.f32 %v936_v30, 0.0  ;;  %v4551_v37 = vpack.c.bf16 %v759_v31, %v758_v23 }
 0x194   : > { %v1036_v38 = vpack.c.bf16 %v998_v33, %v997_v32  ;;  %v1013_v39 = vpack.c.bf16 %v757_v34, %v756_v28  ;;  %v3503_v40 = vpop.f32.mrb[8].mxu0 }
 0x195   : > { %v1035_v41 = vpack.c.bf16 %v996_v36, %v995_v35  ;;  %v3527_v42 = vpop.f32.mrb[4].mxu1  ;;  %v730_v43 = vadd.f32 %v3503_v40, %v4534_v61  ;;  %v721_v44 = vpop.f32.mrb[9].mxu0 }
 0x196   : > { %1375 = vmatmul.mubr.bf16.gmra.mrb[20].mxu0 %v1012_v10  ;;  %v957_v45 = vadd.f32 %v3527_v42, %v4540_v11  ;;  %v948_v46 = vpop.f32.mrb[5].mxu1  ;;  %v722_v47 = vadd.f32 %v721_v44, %v4534_v61  ;;  %v3504_v48 = vpop.f32.mrb[10].mxu0 }
 0x197   : > { %1172 = vmatmul.mubr.bf16.vlgmr.msra.gmra.mrb[16].mxu1 %v1035_v41  ;;  %v949_v49 = vadd.f32 %v948_v46, %v4540_v11  ;;  %v3528_v50 = vpop.f32.mrb[6].mxu1  ;;  %1384 = vmatprep.mubr.bf16.mxu0 %v4069_v58  ;;  %v762_v51 = vmax.f32 %v730_v43, 0.0  ;;  %v733_v52 = vadd.f32 %v3504_v48, %v4534_v61  ;;  %v724_v53 = vpop.f32.mrb[11].mxu0 }
 0x198   : > { %v1001_v54 = vmax.f32 %v957_v45, 0.0  ;;  %v960_v55 = vadd.f32 %v3528_v50, %v4540_v11  ;;  %v951_v56 = vpop.f32.mrb[7].mxu1  ;;  %1181 = vmatprep.mubr.bf16.mxu1 %v4069_v58  ;;  %v760_v57 = vmax.f32 %v722_v47, 0.0  ;;  %v725_v59 = vadd.f32 %v724_v53, %v4534_v61 }
 0x199   : > { %v999_v60 = vmax.f32 %v949_v49, 0.0  ;;  %v952_v62 = vadd.f32 %v951_v56, %v4540_v11  ;;  %v763_v63 = vmax.f32 %v733_v52, 0.0 }
 0x19a   : > { %v1002_v0 = vmax.f32 %v960_v55, 0.0  ;;  %v761_v1 = vmax.f32 %v725_v59, 0.0  ;;  %v1446_v55 = vld [vmem:[#allocation19 + $0x1] ss:$8 sm:$0x3] }
 0x19b   : > { %v1000_v2 = vmax.f32 %v952_v62, 0.0  ;;  %v1016_v3 = vpack.c.bf16 %v763_v63, %v762_v51 }
 0x19c   : > { %v1038_v4 = vpack.c.bf16 %v1002_v0, %v1001_v54  ;;  %v1015_v5 = vpack.c.bf16 %v761_v1, %v760_v57  ;;  %v3507_v6 = vpop.f32.mrb[12].mxu0 }
 0x19d   : > { %v1037_v7 = vpack.c.bf16 %v1000_v2, %v999_v60  ;;  %v3531_v8 = vpop.f32.mrb[8].mxu1  ;;  %v746_v9 = vadd.f32 %v3507_v6, %v4534_v61  ;;  %v737_v10 = vpop.f32.mrb[13].mxu0 }
 0x19e   : > { %1385 = vmatmul.mubr.bf16.gmra.mrb[24].mxu0 %v1013_v39  ;;  %v973_v12 = vadd.f32 %v3531_v8, %v4540_v11  ;;  %v964_v13 = vpop.f32.mrb[9].mxu1  ;;  %v738_v14 = vadd.f32 %v737_v10, %v4534_v61  ;;  %v3508_v15 = vpop.f32.mrb[14].mxu0 }
 0x19f   : > { %1182 = vmatmul.mubr.bf16.gmra.mrb[20].mxu1 %v1036_v38  ;;  %1394 = vmatprep.mubr.bf16.mxu0 %v4069_v58  ;;  %v965_v16 = vadd.f32 %v964_v13, %v4540_v11  ;;  %v3532_v17 = vpop.f32.mrb[10].mxu1  ;;  %v766_v18 = vmax.f32 %v746_v9, 0.0  ;;  %v749_v19 = vadd.f32 %v3508_v15, %v4534_v61  ;;  %v740_v20 = vpop.f32.mrb[15].mxu0 }
 0x1a0   : > { %1191 = vmatprep.mubr.bf16.mxu1 %v4069_v58  ;;  %v1005_v21 = vmax.f32 %v973_v12, 0.0  ;;  %v976_v22 = vadd.f32 %v3532_v17, %v4540_v11  ;;  %v967_v23 = vpop.f32.mrb[11].mxu1  ;;  %v764_v24 = vmax.f32 %v738_v14, 0.0  ;;  %v741_v25 = vadd.f32 %v740_v20, %v4534_v61 }
 0x1a1   : > { %v1003_v26 = vmax.f32 %v965_v16, 0.0  ;;  %v968_v27 = vadd.f32 %v967_v23, %v4540_v11  ;;  %v767_v28 = vmax.f32 %v749_v19, 0.0 }
 0x1a2   : > { %v1006_v29 = vmax.f32 %v976_v22, 0.0  ;;  %v765_v30 = vmax.f32 %v741_v25, 0.0  ;;  %v4070_v22 = vmov 1966171168  }
 0x1a3   : > { %v1004_v31 = vmax.f32 %v968_v27, 0.0  ;;  %v1018_v32 = vpack.c.bf16 %v767_v28, %v766_v18  ;;  %v1656_v23 = vunpack.c.l.s4 %v4070_v22 }
 0x1a4   : > { %v1040_v33 = vpack.c.bf16 %v1006_v29, %v1005_v21  ;;  %v1017_v34 = vpack.c.bf16 %v765_v30, %v764_v24 }
 0x1a5   : > { %v1039_v35 = vpack.c.bf16 %v1004_v31, %v1003_v26  ;;  %v3535_v36 = vpop.f32.mrb[12].mxu1 }
 0x1a6   : > { %1395 = vmatmul.mubr.bf16.gmra.mrb[28].mxu0 %v4551_v37  ;;  %v989_v38 = vadd.f32 %v3535_v36, %v4540_v11  ;;  %v980_v39 = vpop.f32.mrb[13].mxu1 }
 0x1a7   : > { %1192 = vmatmul.mubr.bf16.gmra.mrb[24].mxu1 %v1037_v7  ;;  %1404 = vmatprep.mubr.bf16.mxu0 %v4069_v58  ;;  %v981_v61 = vadd.f32 %v980_v39, %v4540_v11  ;;  %v3536_v40 = vpop.f32.mrb[14].mxu1 }
 0x1a8   : > { %1201 = vmatprep.mubr.bf16.mxu1 %v4069_v58  ;;  %v1009_v41 = vmax.f32 %v989_v38, 0.0  ;;  %v992_v42 = vadd.f32 %v3536_v40, %v4540_v11  ;;  %v983_v43 = vpop.f32.mrb[15].mxu1 }
 0x1a9   : > { %v1007_v44 = vmax.f32 %v981_v61, 0.0  ;;  %v984_v45 = vadd.f32 %v983_v43, %v4540_v11  ;;  %v1448_v11 = vlaneseq  ;;  %v1657_v43 = vunpack.c.0.s8 %v1656_v23 }
 0x1aa   : > { %v1010_v46 = vmax.f32 %v992_v42, 0.0 }
 0x1ab   : > { %v1008_v37 = vmax.f32 %v984_v45, 0.0  ;;  %v4588_v50 = vshrl.u32 %v1448_v11, 7  ;;  %vm4610_vm3 = vcmp.lt.s32.totalorder %v1448_v11, 256 }
 0x1ac   : > { %v1042_v47 = vpack.c.bf16 %v1010_v46, %v1009_v41 }
 0x1ad   : > { %v1041_v48 = vpack.c.bf16 %v1008_v37, %v1007_v44  ;;  %v1450_v54 = vsub.s32 0, %v4588_v50  ;;  %v1454_v56 = vsub.s32 1, %v4588_v50 }
 0x1ae   : > { %1405 = vmatmul.mubr.bf16.gmra.mrb[32].mxu0 %v1015_v5 }
 0x1af   : > { %1202 = vmatmul.mubr.bf16.gmra.mrb[28].mxu1 %v1038_v4  ;;  %1414 = vmatprep.mubr.bf16.mxu0 %v4069_v58  ;;  %v4592_v57 = vrot.slane %v1446_v55, %v1450_v54  ;;  %v4594_v62 = vrot.slane %v1446_v55, %v1454_v56 }
 0x1b0   : > { %1211 = vmatprep.mubr.bf16.mxu1 %v4069_v58 }
 0x1b6   : > { %1415 = vmatmul.mubr.bf16.gmra.mrb[36].mxu0 %v1016_v3 }
 0x1b7   : > { %1212 = vmatmul.mubr.bf16.gmra.mrb[32].mxu1 %v1039_v35  ;;  %1424 = vmatprep.mubr.bf16.mxu0 %v4069_v58 }
 0x1b8   : > { %1221 = vmatprep.mubr.bf16.mxu1 %v4069_v58 }
 0x1be   : > { %1425 = vmatmul.mubr.bf16.gmra.mrb[40].mxu0 %v1017_v34 }
 0x1bf   : > { %1222 = vmatmul.mubr.bf16.gmra.mrb[36].mxu1 %v1040_v33  ;;  %1434 = vmatprep.mubr.bf16.mxu0 %v4069_v58 }
 0x1c0   : > { %1231 = vmatprep.mubr.bf16.mxu1 %v4069_v58 }
 0x1c6   : > { %1435 = vmatmul.mubr.bf16.gmra.mrb[44].mxu0 %v1018_v32 }
 0x1c7   : > { %1232 = vmatmul.mubr.bf16.gmra.mrb[40].mxu1 %v1041_v48 }
 0x1c8   : > { %1241 = vmatprep.mubr.bf16.mxu1 %v4069_v58 }
 0x1cf   : > { %1242 = vmatmul.mubr.bf16.gmra.mrb[44].mxu1 %v1042_v47 }
 0x261   : > { %v1366_v49 = vpop.f32.mrb[16].mxu0 }
 0x262   : > { %v1368_v51 = vpop.f32.mrb[17].mxu0 }
 0x263   : > { %v1370_v52 = vpop.f32.mrb[18].mxu0 }
 0x264   : > { %v1372_v53 = vpop.f32.mrb[19].mxu0 }
 0x269   : > { %v1376_v59 = vpop.f32.mrb[20].mxu0 }
 0x26a   : > { %v1173_v60 = vpop.f32.mrb[16].mxu1  ;;  %v1378_v58 = vpop.f32.mrb[21].mxu0 }
 0x26b   : > { %v1367_v63 = vadd.f32 %v1366_v49, %v1173_v60  ;;  %v1175_v0 = vpop.f32.mrb[17].mxu1  ;;  %v1380_v1 = vpop.f32.mrb[22].mxu0 }
 0x26c   : > { %v1369_v2 = vadd.f32 %v1368_v51, %v1175_v0  ;;  %v1177_v3 = vpop.f32.mrb[18].mxu1  ;;  %v1382_v4 = vpop.f32.mrb[23].mxu0 }
 0x26d   : > { %v1458_v5 = vadd.f32 %v4592_v57, %v1367_v63  ;;  %v1371_v6 = vadd.f32 %v1370_v52, %v1177_v3  ;;  %v1179_v7 = vpop.f32.mrb[19].mxu1 }
 0x26e   : > { %v1459_v8 = vadd.f32 %v4594_v62, %v1369_v2  ;;  %v1373_v9 = vadd.f32 %v1372_v53, %v1179_v7 }
 0x26f   : > { %v1625_v10 = vrot.slane %v1458_v5, 4  ;;  %v1678_v12 = vmul.f32 %v1458_v5, %v1458_v5  ;;  %v1460_v13 = vadd.f32 %v4592_v57, %v1371_v6 }
 0x270   : > { %v1646_v14 = vrot.slane %v1459_v8, 4  ;;  %v1679_v15 = vmul.f32 %v1459_v8, %v1459_v8  ;;  %v1461_v16 = vadd.f32 %v4594_v62, %v1373_v9 }
 0x271   : > { %v1626_v17 = vadd.f32 %v1625_v10, %v1458_v5  ;;  %v1725_v18 = vrot.slane %v1678_v12, 4  ;;  %v1490_v19 = vpack.c.bf16 %v1460_v13, %v1458_v5  ;;  %v1386_v20 = vpop.f32.mrb[24].mxu0 }
 0x272   : > { %v1647_v21 = vadd.f32 %v1646_v14, %v1459_v8  ;;  %v1746_v24 = vrot.slane %v1679_v15, 4  ;;  %v1491_v25 = vpack.c.bf16 %v1461_v16, %v1459_v8  ;;  %v1183_v26 = vpop.f32.mrb[20].mxu1  ;;  %v1388_v27 = vpop.f32.mrb[25].mxu0 }
 0x273   : > { %v1627_v28 = vrot.slane %v1626_v17, 2  ;;  %v1726_v29 = vadd.f32 %v1725_v18, %v1678_v12  ;;  %1511 = vst [vmem:[#allocation2] sm:$0xff] %v1490_v19  ;;  %v1377_v30 = vadd.f32 %v1376_v59, %v1183_v26  ;;  %v1185_v31 = vpop.f32.mrb[21].mxu1  ;;  %v1390_v32 = vpop.f32.mrb[26].mxu0 }
 0x274   : > { %v1648_v33 = vrot.slane %v1647_v21, 2  ;;  %v1747_v34 = vadd.f32 %v1746_v24, %v1679_v15  ;;  %1512 = vst [vmem:[#allocation2 + $0x8] sm:$0xff] %v1491_v25  ;;  %v1379_v35 = vadd.f32 %v1378_v58, %v1185_v31  ;;  %v1187_v36 = vpop.f32.mrb[22].mxu1  ;;  %v1392_v38 = vpop.f32.mrb[27].mxu0  ;;  %v1660_v58 = vsub.s32 %v1657_v43, %v4588_v50 }
 0x275   : > { %v1628_v39 = vadd.f32 %v1627_v28, %v1626_v17  ;;  %v1727_v61 = vrot.slane %v1726_v29, 2  ;;  %v1381_v40 = vadd.f32 %v1380_v1, %v1187_v36  ;;  %v1189_v41 = vpop.f32.mrb[23].mxu1  ;;  %v1462_v47 = vadd.f32 %v4592_v57, %v1377_v30  ;;  %v1609_v17 = vld [vmem:[#allocation5] ss:$2 sm:$0x3] }
 0x276   : > { %v1649_v42 = vadd.f32 %v1648_v33, %v1647_v21  ;;  %v1748_v44 = vrot.slane %v1747_v34, 2  ;;  %v1383_v45 = vadd.f32 %v1382_v4, %v1189_v41  ;;  %v1463_v52 = vadd.f32 %v4594_v62, %v1379_v35  ;;  %v1677_v25 = vld [vmem:[#allocation5 + $0x1] ss:$2 sm:$0x3] }
 0x277   : > { %v1629_v46 = vrot.slane %v1628_v39, 1  ;;  %v1728_v37 = vadd.f32 %v1727_v61, %v1726_v29  ;;  %v1464_v48 = vadd.f32 %v4592_v57, %v1381_v40 }
 0x278   : > { %v1650_v49 = vrot.slane %v1649_v42, 1  ;;  %v1749_v51 = vadd.f32 %v1748_v44, %v1747_v34  ;;  %v1465_v53 = vadd.f32 %v4594_v62, %v1383_v45 }
 0x279   : > { %v1630_v54 = vadd.f32 %v1629_v46, %v1628_v39  ;;  %v1729_v55 = vrot.slane %v1728_v37, 1  ;;  %v1492_v56 = vpack.c.bf16 %v1464_v48, %v1462_v47  ;;  %v1396_v59 = vpop.f32.mrb[28].mxu0 }
 0x27a   : > { %v1651_v60 = vadd.f32 %v1650_v49, %v1649_v42  ;;  %v1750_v63 = vrot.slane %v1749_v51, 1  ;;  %v1493_v0 = vpack.c.bf16 %v1465_v53, %v1463_v52  ;;  %v1193_v1 = vpop.f32.mrb[24].mxu1  ;;  %v1398_v2 = vpop.f32.mrb[29].mxu0 }
 0x27b   : > { %v1730_v3 = vadd.f32 %v1729_v55, %v1728_v37  ;;  %1513 = vst [vmem:[#allocation2 + $0x10] sm:$0xff] %v1492_v56  ;;  %v1387_v4 = vadd.f32 %v1386_v20, %v1193_v1  ;;  %v1195_v5 = vpop.f32.mrb[25].mxu1  ;;  %v1400_v6 = vpop.f32.mrb[30].mxu0 }
 0x27c   : > { %v1654_v7 = vcombine.low %v1630_v54, %v1651_v60  ;;  %v1751_v8 = vadd.f32 %v1750_v63, %v1749_v51  ;;  %1514 = vst [vmem:[#allocation2 + $0x18] sm:$0xff] %v1493_v0  ;;  %v1389_v9 = vadd.f32 %v1388_v27, %v1195_v5  ;;  %v1197_v10 = vpop.f32.mrb[26].mxu1  ;;  %v1402_v12 = vpop.f32.mrb[31].mxu0 }
 0x27d   : > { %v1391_v13 = vadd.f32 %v1390_v32, %v1197_v10  ;;  %v1199_v14 = vpop.f32.mrb[27].mxu1  ;;  %v1466_v18 = vadd.f32 %v4592_v57, %v1387_v4 }
 0x27e   : > { %v1661_v15 = vrot.slane %v1654_v7, %v1660_v58  ;;  %v1754_v16 = vcombine.low %v1730_v3, %v1751_v8  ;;  %v1393_v50 = vadd.f32 %v1392_v38, %v1199_v14  ;;  %v1467_v22 = vadd.f32 %v4594_v62, %v1389_v9 }
 0x27f   : > { %v1468_v19 = vadd.f32 %v4592_v57, %v1391_v13 }
 0x280   : > { %v1668_v21 = vrot.slane %v1661_v15, %v1660_v58  ;;  %v1761_v20 = vrot.slane %v1754_v16, %v1660_v58  ;;  %v1469_v23 = vadd.f32 %v4594_v62, %v1393_v50 }
 0x281   : > { %v1494_v26 = vpack.c.bf16 %v1468_v19, %v1466_v18  ;;  %v1406_v27 = vpop.f32.mrb[32].mxu0 }
 0x282   : > { %v1670_v28 = vadd.f32 %v1668_v21, %v1609_v17  ;;  %v1768_v29 = vrot.slane %v1761_v20, %v1660_v58  ;;  %v1495_v30 = vpack.c.bf16 %v1469_v23, %v1467_v22  ;;  %v1203_v31 = vpop.f32.mrb[28].mxu1  ;;  %v1408_v32 = vpop.f32.mrb[33].mxu0 }
 0x283   : > { %1515 = vst [vmem:[#allocation2 + $0x20] sm:$0xff] %v1494_v26  ;;  %v1397_v33 = vadd.f32 %v1396_v59, %v1203_v31  ;;  %v1205_v34 = vpop.f32.mrb[29].mxu1  ;;  %v1410_v35 = vpop.f32.mrb[34].mxu0 }
 0x284   : > { %1675 = vst.msk [vmem:[#allocation5] ss:$2 sm:$0x3] %vm4610_vm3, %v1670_v28  ;;  %v1770_v36 = vadd.f32 %v1768_v29, %v1677_v25  ;;  %1516 = vst [vmem:[#allocation2 + $0x28] sm:$0xff] %v1495_v30  ;;  %v1399_v11 = vadd.f32 %v1398_v2, %v1205_v34  ;;  %v1207_v38 = vpop.f32.mrb[30].mxu1  ;;  %v1412_v39 = vpop.f32.mrb[35].mxu0 }
 0x285   : > { %v1401_v61 = vadd.f32 %v1400_v6, %v1207_v38  ;;  %v1209_v40 = vpop.f32.mrb[31].mxu1  ;;  %v1470_v42 = vadd.f32 %v4592_v57, %v1397_v33 }
 0x286   : > { %1771 = vst.msk [vmem:[#allocation5 + $0x1] ss:$2 sm:$0x3] %vm4610_vm3, %v1770_v36  ;;  %v1403_v41 = vadd.f32 %v1402_v12, %v1209_v40  ;;  %v1471_v44 = vadd.f32 %v4594_v62, %v1399_v11 }
 0x287   : > { %v1472_v43 = vadd.f32 %v4592_v57, %v1401_v61 }
 0x288   : > { %v1473_v45 = vadd.f32 %v4594_v62, %v1403_v41 }
 0x289   : > { %v1496_v46 = vpack.c.bf16 %v1472_v43, %v1470_v42  ;;  %v1416_v37 = vpop.f32.mrb[36].mxu0 }
 0x28a   : > { %v1497_v47 = vpack.c.bf16 %v1473_v45, %v1471_v44  ;;  %v1213_v48 = vpop.f32.mrb[32].mxu1  ;;  %v1418_v49 = vpop.f32.mrb[37].mxu0 }
 0x28b   : > { %1517 = vst [vmem:[#allocation2 + $0x30] sm:$0xff] %v1496_v46  ;;  %v1407_v51 = vadd.f32 %v1406_v27, %v1213_v48  ;;  %v1215_v52 = vpop.f32.mrb[33].mxu1  ;;  %v1420_v53 = vpop.f32.mrb[38].mxu0 }
 0x28c   : > { %1518 = vst [vmem:[#allocation2 + $0x38] sm:$0xff] %v1497_v47  ;;  %v1409_v54 = vadd.f32 %v1408_v32, %v1215_v52  ;;  %v1217_v55 = vpop.f32.mrb[34].mxu1  ;;  %v1422_v56 = vpop.f32.mrb[39].mxu0 }
 0x28d   : > { %v1411_v59 = vadd.f32 %v1410_v35, %v1217_v55  ;;  %v1219_v60 = vpop.f32.mrb[35].mxu1  ;;  %v1474_v63 = vadd.f32 %v4592_v57, %v1407_v51 }
 0x28e   : > { %v1413_v58 = vadd.f32 %v1412_v39, %v1219_v60  ;;  %v1475_v1 = vadd.f32 %v4594_v62, %v1409_v54 }
 0x28f   : > { %v1476_v0 = vadd.f32 %v4592_v57, %v1411_v59 }
 0x290   : > { %v1477_v2 = vadd.f32 %v4594_v62, %v1413_v58 }
 0x291   : > { %v1498_v3 = vpack.c.bf16 %v1476_v0, %v1474_v63  ;;  %v1426_v4 = vpop.f32.mrb[40].mxu0 }
 0x292   : > { %v1499_v5 = vpack.c.bf16 %v1477_v2, %v1475_v1  ;;  %v1223_v6 = vpop.f32.mrb[36].mxu1  ;;  %v1428_v7 = vpop.f32.mrb[41].mxu0 }
 0x293   : > { %1519 = vst [vmem:[#allocation2 + $0x40] sm:$0xff] %v1498_v3  ;;  %v1417_v8 = vadd.f32 %v1416_v37, %v1223_v6  ;;  %v1225_v9 = vpop.f32.mrb[37].mxu1  ;;  %v1430_v10 = vpop.f32.mrb[42].mxu0 }
 0x294   : > { %1520 = vst [vmem:[#allocation2 + $0x48] sm:$0xff] %v1499_v5  ;;  %v1419_v12 = vadd.f32 %v1418_v49, %v1225_v9  ;;  %v1227_v13 = vpop.f32.mrb[38].mxu1  ;;  %v1432_v14 = vpop.f32.mrb[43].mxu0 }
 0x295   : > { %v1421_v15 = vadd.f32 %v1420_v53, %v1227_v13  ;;  %v1229_v16 = vpop.f32.mrb[39].mxu1  ;;  %v1478_v17 = vadd.f32 %v4592_v57, %v1417_v8 }
 0x296   : > { %v1423_v50 = vadd.f32 %v1422_v56, %v1229_v16  ;;  %v1479_v19 = vadd.f32 %v4594_v62, %v1419_v12 }
 0x297   : > { %v1480_v18 = vadd.f32 %v4592_v57, %v1421_v15 }
 0x298   : > { %v1481_v21 = vadd.f32 %v4594_v62, %v1423_v50 }
 0x299   : > { %v1500_v20 = vpack.c.bf16 %v1480_v18, %v1478_v17  ;;  %v1436_v22 = vpop.f32.mrb[44].mxu0 }
 0x29a   : > { %v1501_v23 = vpack.c.bf16 %v1481_v21, %v1479_v19  ;;  %v1233_v24 = vpop.f32.mrb[40].mxu1  ;;  %v1438_v25 = vpop.f32.mrb[45].mxu0 }
 0x29b   : > { %1521 = vst [vmem:[#allocation2 + $0x50] sm:$0xff] %v1500_v20  ;;  %v1427_v26 = vadd.f32 %v1426_v4, %v1233_v24  ;;  %v1235_v27 = vpop.f32.mrb[41].mxu1  ;;  %v1440_v28 = vpop.f32.mrb[46].mxu0 }
 0x29c   : > { %1522 = vst [vmem:[#allocation2 + $0x58] sm:$0xff] %v1501_v23  ;;  %v1429_v29 = vadd.f32 %v1428_v7, %v1235_v27  ;;  %v1237_v30 = vpop.f32.mrb[42].mxu1  ;;  %v1442_v31 = vpop.f32.mrb[47].mxu0 }
 0x29d   : > { %v1431_v32 = vadd.f32 %v1430_v10, %v1237_v30  ;;  %v1239_v33 = vpop.f32.mrb[43].mxu1  ;;  %v1482_v35 = vadd.f32 %v4592_v57, %v1427_v26 }
 0x29e   : > { %v1433_v34 = vadd.f32 %v1432_v14, %v1239_v33  ;;  %v1483_v11 = vadd.f32 %v4594_v62, %v1429_v29 }
 0x29f   : > { %v1484_v36 = vadd.f32 %v4592_v57, %v1431_v32 }
 0x2a0   : > { %v1485_v38 = vadd.f32 %v4594_v62, %v1433_v34 }
 0x2a1   : > { %v1502_v39 = vpack.c.bf16 %v1484_v36, %v1482_v35 }
 0x2a2   : > { %v1503_v61 = vpack.c.bf16 %v1485_v38, %v1483_v11  ;;  %v1243_v40 = vpop.f32.mrb[44].mxu1 }
 0x2a3   : > { %1523 = vst [vmem:[#allocation2 + $0x60] sm:$0xff] %v1502_v39  ;;  %v1437_v41 = vadd.f32 %v1436_v22, %v1243_v40  ;;  %v1245_v42 = vpop.f32.mrb[45].mxu1 }
 0x2a4   : > { %1524 = vst [vmem:[#allocation2 + $0x68] sm:$0xff] %v1503_v61  ;;  %v1439_v43 = vadd.f32 %v1438_v25, %v1245_v42  ;;  %v1247_v44 = vpop.f32.mrb[46].mxu1 }
 0x2a5   : > { %v1441_v45 = vadd.f32 %v1440_v28, %v1247_v44  ;;  %v1249_v46 = vpop.f32.mrb[47].mxu1  ;;  %v1486_v47 = vadd.f32 %v4592_v57, %v1437_v41 }
 0x2a6   : > { %v1443_v37 = vadd.f32 %v1442_v31, %v1249_v46  ;;  %v1487_v49 = vadd.f32 %v4594_v62, %v1439_v43 }
 0x2a7   : > { %v1488_v48 = vadd.f32 %v4592_v57, %v1441_v45 }
 0x2a8   : > { %v1489_v51 = vadd.f32 %v4594_v62, %v1443_v37 }
 0x2a9   : > { %v1504_v52 = vpack.c.bf16 %v1488_v48, %v1486_v47 }
 0x2aa   : > { %v1505_v53 = vpack.c.bf16 %v1489_v51, %v1487_v49 }
 0x2ab   : > { %1525 = vst [vmem:[#allocation2 + $0x70] sm:$0xff] %v1504_v52 }
 0x2ac   : > { %1526 = vst [vmem:[#allocation2 + $0x78] sm:$0xff] %v1505_v53 }
 0x2ad PF: > { %p3326_p12 = scmp.ne.s32.totalorder %s4049_s15, 1 }
 0x2ae   : > { %v3789_v54 = vld [vmem:[#allocation16 + $0x40] sm:$0xff] (!%p3326_p12)   ;;  %v3791_v56 = vld [vmem:[#allocation16 + $0x48] sm:$0xff] (!%p3326_p12)   ;;  %v3793_v59 = vld [vmem:[#allocation16 + $0x50] sm:$0xff] (!%p3326_p12)   ;;  %v1794_v16 = vlaneseq (!%p3326_p12) }
 0x2af   : > { %1775 = sbr.rel (%p3326_p12) target bundleno = 981 (0x3d5), region = 92  ;;  %v3790_v55 = vld [vmem:[#allocation16] sm:$0xff] (!%p3326_p12)   ;;  %3405 = vmatprep.subr.bf16.mxu0 (!%p3326_p12), %v3789_v54  ;;  %3601 = vmatprep.subr.bf16.mxu1 (!%p3326_p12), %v3789_v54  ;;  %v3792_v57 = vld [vmem:[#allocation16 + $0x8] sm:$0xff] (!%p3326_p12)   ;;  %v3794_v62 = vld [vmem:[#allocation16 + $0x10] sm:$0xff] (!%p3326_p12)  }
 0x2b0   : > { %3406 = vmatpush3.bf16.msra.mxu0 (!%p3326_p12), %v3790_v55  ;;  %3609 = vmatpush3.bf16.msra.mxu1 (!%p3326_p12), %v3790_v55  ;;  %v3795_v60 = vld [vmem:[#allocation16 + $0x58] sm:$0xff] (!%p3326_p12)   ;;  %v3797_v63 = vld [vmem:[#allocation16 + $0x60] sm:$0xff] (!%p3326_p12)   ;;  %v3799_v1 = vld [vmem:[#allocation16 + $0x68] sm:$0xff] (!%p3326_p12)   ;;  %v4639_v17 = vshrl.u32 (!%p3326_p12), %v1794_v16, 7  ;;  %vm4641_vm4 = vcmp.lt.s32.totalorder (!%p3326_p12), %v1794_v16, 256 }
 0x2b1   : > { %3407 = vmatprep.subr.bf16.mxu0 (!%p3326_p12), %v3791_v56  ;;  %3602 = vmatprep.subr.bf16.mxu1 (!%p3326_p12), %v3791_v56  ;;  %v3796_v58 = vld [vmem:[#allocation16 + $0x18] sm:$0xff] (!%p3326_p12)   ;;  %v3798_v0 = vld [vmem:[#allocation16 + $0x20] sm:$0xff] (!%p3326_p12)   ;;  %v3800_v6 = vld [vmem:[#allocation16 + $0x28] sm:$0xff] (!%p3326_p12)  }
 0x2b2   : > { %v1783_v2 = vld [vmem:[#allocation5] ss:$2 sm:$0x3] (!%p3326_p12)  ;;  %v1786_v3 = vld [vmem:[#allocation5 + $0x1] ss:$2 sm:$0x3] (!%p3326_p12) }
 0x2b3   : > { %v1784_v4 = vmul.f32 (!%p3326_p12), 0.125, %v1783_v2  ;;  %v1787_v5 = vmul.f32 (!%p3326_p12), 0.125, %v1786_v3  ;;  %v3801_v7 = vld [vmem:[#allocation16 + $0x70] sm:$0xff] (!%p3326_p12)   ;;  %v3803_v12 = vld [vmem:[#allocation16 + $0x78] sm:$0xff] (!%p3326_p12)   ;;  %v1809_v20 = vld [vmem:[#allocation2 + $0x8] sm:$0xff] (!%p3326_p12)  ;;  %v1860_v26 = vsub.s32 (!%p3326_p12), 0, %v4639_v17 }
 0x2b4   : > { %3408 = vmatpush3.bf16.msra.mxu0 (!%p3326_p12), %v3792_v57  ;;  %3610 = vmatpush3.bf16.msra.mxu1 (!%p3326_p12), %v3792_v57  ;;  %v3802_v10 = vld [vmem:[#allocation16 + $0x30] sm:$0xff] (!%p3326_p12)   ;;  %v3804_v15 = vld [vmem:[#allocation16 + $0x38] sm:$0xff] (!%p3326_p12)   ;;  %v1780_v50 = vld [vmem:[#allocation19 + $0x2] ss:$8 sm:$0x3] (!%p3326_p12)  ;;  %v1826_v29 = vunpack.c.l.bf16 (!%p3326_p12), %v1809_v20  ;;  %v1828_v30 = vunpack.c.h.bf16 (!%p3326_p12), %v1809_v20  ;;  %v1864_v31 = vsub.s32 (!%p3326_p12), 1, %v4639_v17 }
 0x2b5   : > { %3409 = vmatprep.subr.bf16.mxu0 (!%p3326_p12), %v3793_v59  ;;  %3603 = vmatprep.subr.bf16.mxu1 (!%p3326_p12), %v3793_v59  ;;  %v1788_v8 = vmul.f32 (!%p3326_p12), %v1784_v4, %v1784_v4  ;;  %v1817_v22 = vld [vmem:[#allocation2 + $0x48] sm:$0xff] (!%p3326_p12)  ;;  %v1808_v24 = vld [vmem:[#allocation2] sm:$0xff] (!%p3326_p12)  ;;  %v4648_v28 = vld [vmem:[#allocation2 + $0x18] sm:$0xff] (!%p3326_p12) }
 0x2b6   : > { %v1782_v23 = vld [vmem:[#allocation19 + $0x3] ss:$8 sm:$0x3]  ;;  %v1842_v32 = vunpack.c.l.bf16 %v1817_v22  ;;  %v1819_v33 = vld [vmem:[#allocation2 + $0x58] sm:$0xff]  ;;  %v1810_v34 = vld [vmem:[#allocation2 + $0x10] sm:$0xff]  ;;  %v1844_v36 = vunpack.c.h.bf16 %v1817_v22  ;;  %v1825_v11 = vunpack.c.l.bf16 %v1808_v24  ;;  %v1827_v38 = vunpack.c.h.bf16 %v1808_v24 }
 0x2b7   : > { %v1789_v9 = vsub.f32 %v1787_v5, %v1788_v8  ;;  %v1816_v27 = vld [vmem:[#allocation2 + $0x40] sm:$0xff]  ;;  %v4651_v39 = vld [vmem:[#allocation2 + $0x50] sm:$0xff]  ;;  %v4653_v61 = vld [vmem:[#allocation2 + $0x28] sm:$0xff]  ;;  %v1830_v42 = vunpack.c.l.bf16 %v4648_v28  ;;  %v1832_v43 = vunpack.c.h.bf16 %v4648_v28  ;;  %v1846_v46 = vunpack.c.l.bf16 %v1819_v33 }
 0x2b8   : > { %3410 = vmatpush3.bf16.msra.mxu0 %v3794_v62  ;;  %3611 = vmatpush3.bf16.msra.mxu1 %v3794_v62  ;;  %v1841_v40 = vunpack.c.l.bf16 %v1816_v27  ;;  %v1843_v41 = vunpack.c.h.bf16 %v1816_v27  ;;  %v4657_v44 = vld [vmem:[#allocation2 + $0x68] sm:$0xff]  ;;  %v4659_v45 = vld [vmem:[#allocation2 + $0x20] sm:$0xff]  ;;  %v1848_v37 = vunpack.c.h.bf16 %v1819_v33  ;;  %v1829_v47 = vunpack.c.l.bf16 %v1810_v34  ;;  %v4665_v51 = vld [vmem:[#allocation2 + $0x38] sm:$0xff] }
 0x2b9   : > { %3411 = vmatprep.subr.bf16.mxu0 %v3795_v60  ;;  %3604 = vmatprep.subr.bf16.mxu1 %v3795_v60  ;;  %v1790_v13 = vmax.f32 %v1789_v9, 0.0  ;;  %v1831_v48 = vunpack.c.h.bf16 %v1810_v34  ;;  %v4663_v49 = vld [vmem:[#allocation2 + $0x60] sm:$0xff]  ;;  %v1845_v52 = vunpack.c.l.bf16 %v4651_v39  ;;  %v1847_v53 = vunpack.c.h.bf16 %v4651_v39  ;;  %v4671_v56 = vld [vmem:[#allocation2 + $0x78] sm:$0xff] }
 0x2ba   : > { %v1834_v54 = vunpack.c.l.bf16 %v4653_v61  ;;  %v1836_v55 = vunpack.c.h.bf16 %v4653_v61  ;;  %v1850_v57 = vunpack.c.l.bf16 %v4657_v44  ;;  %v1852_v59 = vunpack.c.h.bf16 %v4657_v44 }
 0x2bb   : > { %v1791_v14 = vadd.f32 1e-05, %v1790_v13  ;;  %v1833_v62 = vunpack.c.l.bf16 %v4659_v45  ;;  %v1835_v60 = vunpack.c.h.bf16 %v4659_v45  ;;  %v1851_v2 = vunpack.c.h.bf16 %v4663_v49 }
 0x2bc   : > { %3412 = vmatpush3.bf16.msra.mxu0 %v3796_v58  ;;  %3612 = vmatpush3.bf16.msra.mxu1 %v3796_v58  ;;  %v4677_v58 = vld [vmem:[#allocation2 + $0x30] sm:$0xff]  ;;  %v1838_v3 = vunpack.c.l.bf16 %v4665_v51  ;;  %v1856_v8 = vunpack.c.h.bf16 %v4671_v56 }
 0x2bd   : > { %3413 = vmatprep.subr.bf16.mxu0 %v3797_v63  ;;  %3605 = vmatprep.subr.bf16.mxu1 %v3797_v63  ;;  %3805 = vrsqrt.f32 %v1791_v14  ;;  %v4679_v63 = vld [vmem:[#allocation2 + $0x70] sm:$0xff]  ;;  %v1837_v9 = vunpack.c.l.bf16 %v4677_v58 }
 0x2be   : > { %v1855_v13 = vunpack.c.h.bf16 %v4679_v63 }
 0x2c0   : > { %3414 = vmatpush3.bf16.msra.mxu0 %v3798_v0  ;;  %3613 = vmatpush3.bf16.msra.mxu1 %v3798_v0 }
 0x2c1   : > { %3415 = vmatprep.subr.bf16.mxu0 %v3799_v1  ;;  %3606 = vmatprep.subr.bf16.mxu1 %v3799_v1  ;;  %v1849_v1 = vunpack.c.l.bf16 %v4663_v49 }
 0x2c4   : > { %3416 = vmatpush3.bf16.msra.mxu0 %v3800_v6  ;;  %3614 = vmatpush3.bf16.msra.mxu1 %v3800_v6 }
 0x2c5   : > { %3417 = vmatprep.subr.bf16.mxu0 %v3801_v7  ;;  %3607 = vmatprep.subr.bf16.mxu1 %v3801_v7  ;;  %v1854_v7 = vunpack.c.l.bf16 %v4671_v56 }
 0x2c7   : > { %v3806_v18 = vpop.eup %3805 }
 0x2c8   : > { %3418 = vmatpush3.bf16.msra.mxu0 %v3802_v10  ;;  %3615 = vmatpush3.bf16.msra.mxu1 %v3802_v10  ;;  %v1793_v21 = vmul.f32 %v3806_v18, %v1780_v50  ;;  %v1839_v10 = vunpack.c.h.bf16 %v4677_v58 }
 0x2c9   : > { %3419 = vmatprep.subr.bf16.mxu0 %v3803_v12  ;;  %3608 = vmatprep.subr.bf16.mxu1 %v3803_v12  ;;  %v1853_v12 = vunpack.c.l.bf16 %v4679_v63 }
 0x2ca   : > { %1798 = vst.msk [vmem:[#allocation8] ss:$2 sm:$0x3] %vm4641_vm4, %v1793_v21  ;;  %v1799_v25 = vmul.f32 %v1793_v21, %v1784_v4  ;;  %v1840_v4 = vunpack.c.h.bf16 %v4665_v51 }
 0x2cc   : > { %3420 = vmatpush3.bf16.msra.mxu0 %v3804_v15  ;;  %3616 = vmatpush3.bf16.msra.mxu1 %v3804_v15  ;;  %v1800_v35 = vsub.f32 %v1782_v23, %v1799_v25 }
 0x2ce   : > { %1802 = vst.msk [vmem:[#allocation8 + $0x1] ss:$2 sm:$0x3] %vm4641_vm4, %v1800_v35 }
 0x2d1   : > { %v1824_v0 = vld [vmem:[#allocation8] ss:$2 sm:$0x3] }
 0x2d2   : > { %v4685_v5 = vrot.slane %v1824_v0, %v1860_v26  ;;  %v4687_v6 = vrot.slane %v1824_v0, %v1864_v31 }
 0x2d4   : > { %v1869_v14 = vmul.f32 %v4687_v6, %v1826_v29  ;;  %v1871_v15 = vmul.f32 %v4687_v6, %v1828_v30  ;;  %v1885_v16 = vmul.f32 %v4687_v6, %v1842_v32  ;;  %v1887_v50 = vmul.f32 %v4687_v6, %v1844_v36 }
 0x2d5   : > { %v1901_v17 = vld [vmem:[#allocation8 + $0x1] ss:$2 sm:$0x3]  ;;  %v1868_v18 = vmul.f32 %v4685_v5, %v1825_v11  ;;  %v1870_v19 = vmul.f32 %v4685_v5, %v1827_v38  ;;  %v1884_v21 = vmul.f32 %v4685_v5, %v1841_v40  ;;  %v1886_v20 = vmul.f32 %v4685_v5, %v1843_v41 }
 0x2d6   : > { %v4703_v22 = vrot.slane %v1901_v17, %v1860_v26  ;;  %v4705_v23 = vrot.slane %v1901_v17, %v1864_v31  ;;  %v1873_v24 = vmul.f32 %v4687_v6, %v1830_v42  ;;  %v1875_v25 = vmul.f32 %v4687_v6, %v1832_v43 }
 0x2d7   : > { %v1889_v27 = vmul.f32 %v4687_v6, %v1846_v46  ;;  %v1891_v28 = vmul.f32 %v4687_v6, %v1848_v37  ;;  %v1872_v29 = vmul.f32 %v4685_v5, %v1829_v47  ;;  %v1874_v30 = vmul.f32 %v4685_v5, %v1831_v48 }
 0x2d8   : > { %v1914_v32 = vadd.f32 %v4705_v23, %v1869_v14  ;;  %v1916_v33 = vadd.f32 %v4705_v23, %v1871_v15  ;;  %v1930_v26 = vadd.f32 %v4705_v23, %v1885_v16  ;;  %v1932_v31 = vadd.f32 %v4705_v23, %v1887_v50 }
 0x2d9   : > { %v1913_v34 = vadd.f32 %v4703_v22, %v1868_v18  ;;  %v1915_v35 = vadd.f32 %v4703_v22, %v1870_v19  ;;  %v1929_v36 = vadd.f32 %v4703_v22, %v1884_v21  ;;  %v1931_v11 = vadd.f32 %v4703_v22, %v1886_v20 }
 0x2da   : > { %v1946_v38 = vmax.f32 %v1914_v32, 0.0  ;;  %v1948_v40 = vmax.f32 %v1916_v33, 0.0  ;;  %v1962_v41 = vmax.f32 %v1930_v26, 0.0  ;;  %v1964_v42 = vmax.f32 %v1932_v31, 0.0 }
 0x2db   : > { %v1945_v43 = vmax.f32 %v1913_v34, 0.0  ;;  %v1947_v46 = vmax.f32 %v1915_v35, 0.0  ;;  %v1961_v37 = vmax.f32 %v1929_v36, 0.0  ;;  %v1963_v47 = vmax.f32 %v1931_v11, 0.0 }
 0x2dc   : > { %v1978_v48 = vpack.c.bf16 %v1948_v40, %v1946_v38  ;;  %v1986_v0 = vpack.c.bf16 %v1964_v42, %v1962_v41  ;;  %v1918_v14 = vadd.f32 %v4705_v23, %v1873_v24  ;;  %v1920_v15 = vadd.f32 %v4705_v23, %v1875_v25 }
 0x2dd   : > { %v1977_v16 = vpack.c.bf16 %v1947_v46, %v1945_v43  ;;  %v1985_v50 = vpack.c.bf16 %v1963_v47, %v1961_v37  ;;  %v1934_v17 = vadd.f32 %v4705_v23, %v1889_v27  ;;  %v1936_v18 = vadd.f32 %v4705_v23, %v1891_v28 }
 0x2de   : > { %2154 = vmatprep.mubr.bf16.mxu0 %v1978_v48  ;;  %2186 = vmatprep.mubr.bf16.mxu1 %v1986_v0  ;;  %v1950_v19 = vmax.f32 %v1918_v14, 0.0  ;;  %v1952_v21 = vmax.f32 %v1920_v15, 0.0  ;;  %v1917_v20 = vadd.f32 %v4703_v22, %v1872_v29  ;;  %v1919_v32 = vadd.f32 %v4703_v22, %v1874_v30 }
 0x2df   : > { %2155 = vmatmul.mubr.bf16.vlgmr.msra.gmra.mrb[0].mxu0 %v1977_v16  ;;  %2187 = vmatmul.mubr.bf16.vlgmr.msra.gmra.mrb[0].mxu1 %v1985_v50  ;;  %v1966_v33 = vmax.f32 %v1934_v17, 0.0  ;;  %v1968_v24 = vmax.f32 %v1936_v18, 0.0  ;;  %v1888_v25 = vmul.f32 %v4685_v5, %v1845_v52  ;;  %v1890_v27 = vmul.f32 %v4685_v5, %v1847_v53 }
 0x2e0   : > { %v1980_v28 = vpack.c.bf16 %v1952_v21, %v1950_v19  ;;  %v1949_v26 = vmax.f32 %v1917_v20, 0.0  ;;  %v1951_v31 = vmax.f32 %v1919_v32, 0.0  ;;  %v1877_v29 = vmul.f32 %v4687_v6, %v1834_v54 }
 0x2e1   : > { %v1988_v30 = vpack.c.bf16 %v1968_v24, %v1966_v33  ;;  %v1933_v34 = vadd.f32 %v4703_v22, %v1888_v25  ;;  %v1935_v35 = vadd.f32 %v4703_v22, %v1890_v27  ;;  %v1879_v52 = vmul.f32 %v4687_v6, %v1836_v55 }
 0x2e2   : > { %2162 = vmatprep.mubr.bf16.mxu0 %v1980_v28  ;;  %v1979_v39 = vpack.c.bf16 %v1951_v31, %v1949_v26  ;;  %v1922_v53 = vadd.f32 %v4705_v23, %v1877_v29  ;;  %v1893_v36 = vmul.f32 %v4687_v6, %v1850_v57  ;;  %v1895_v54 = vmul.f32 %v4687_v6, %v1852_v59 }
 0x2e3   : > { %2194 = vmatprep.mubr.bf16.mxu1 %v1988_v30  ;;  %v1965_v11 = vmax.f32 %v1933_v34, 0.0  ;;  %v1967_v38 = vmax.f32 %v1935_v35, 0.0  ;;  %v1924_v40 = vadd.f32 %v4705_v23, %v1879_v52  ;;  %v1876_v61 = vmul.f32 %v4685_v5, %v1833_v62 }
 0x2e4   : > { %v1954_v55 = vmax.f32 %v1922_v53, 0.0  ;;  %v1938_v41 = vadd.f32 %v4705_v23, %v1893_v36  ;;  %v1940_v42 = vadd.f32 %v4705_v23, %v1895_v54  ;;  %v1878_v44 = vmul.f32 %v4685_v5, %v1835_v60 }
 0x2e5   : > { %v1987_v57 = vpack.c.bf16 %v1967_v38, %v1965_v11  ;;  %v1956_v59 = vmax.f32 %v1924_v40, 0.0  ;;  %v1921_v43 = vadd.f32 %v4703_v22, %v1876_v61  ;;  %v1892_v46 = vmul.f32 %v4685_v5, %v1849_v1 }
 0x2e6   : > { %v1970_v37 = vmax.f32 %v1938_v41, 0.0  ;;  %v1972_v47 = vmax.f32 %v1940_v42, 0.0  ;;  %v1923_v62 = vadd.f32 %v4703_v22, %v1878_v44  ;;  %v1894_v48 = vmul.f32 %v4685_v5, %v1851_v2 }
 0x2e7   : > { %2163 = vmatmul.mubr.bf16.gmra.mrb[4].mxu0 %v1979_v39  ;;  %2195 = vmatmul.mubr.bf16.gmra.mrb[4].mxu1 %v1987_v57  ;;  %v1982_v45 = vpack.c.bf16 %v1956_v59, %v1954_v55  ;;  %v1953_v60 = vmax.f32 %v1921_v43, 0.0  ;;  %v1937_v0 = vadd.f32 %v4703_v22, %v1892_v46  ;;  %v1881_v14 = vmul.f32 %v4687_v6, %v1838_v3 }
 0x2e8   : > { %v1990_v15 = vpack.c.bf16 %v1972_v47, %v1970_v37  ;;  %v1955_v1 = vmax.f32 %v1923_v62, 0.0  ;;  %v1939_v16 = vadd.f32 %v4703_v22, %v1894_v48  ;;  %v1883_v49 = vmul.f32 %v4687_v6, %v1840_v4 }
 0x2e9   : > { %2170 = vmatprep.mubr.bf16.mxu0 %v1982_v45  ;;  %v1969_v2 = vmax.f32 %v1937_v0, 0.0  ;;  %v1926_v50 = vadd.f32 %v4705_v23, %v1881_v14  ;;  %v1897_v17 = vmul.f32 %v4687_v6, %v1854_v7  ;;  %v1899_v3 = vmul.f32 %v4687_v6, %v1856_v8 }
 0x2ea   : > { %2202 = vmatprep.mubr.bf16.mxu1 %v1990_v15  ;;  %v1981_v18 = vpack.c.bf16 %v1955_v1, %v1953_v60  ;;  %v1971_v19 = vmax.f32 %v1939_v16, 0.0  ;;  %v1928_v21 = vadd.f32 %v4705_v23, %v1883_v49  ;;  %v1880_v51 = vmul.f32 %v4685_v5, %v1837_v9 }
 0x2eb   : > { %v1958_v4 = vmax.f32 %v1926_v50, 0.0  ;;  %v1942_v20 = vadd.f32 %v4705_v23, %v1897_v17  ;;  %v1944_v32 = vadd.f32 %v4705_v23, %v1899_v3  ;;  %v1882_v56 = vmul.f32 %v4685_v5, %v1839_v10 }
 0x2ec   : > { %v1989_v7 = vpack.c.bf16 %v1971_v19, %v1969_v2  ;;  %v1960_v6 = vmax.f32 %v1928_v21, 0.0  ;;  %v1925_v8 = vadd.f32 %v4703_v22, %v1880_v51  ;;  %v1896_v33 = vmul.f32 %v4685_v5, %v1853_v12  ;;  %v2303_v51 = vld [vmem:[#allocation6] sm:$0x1] }
 0x2ed   : > { %v1974_v24 = vmax.f32 %v1942_v20, 0.0  ;;  %v1976_v25 = vmax.f32 %v1944_v32, 0.0  ;;  %v1927_v9 = vadd.f32 %v4703_v22, %v1882_v56  ;;  %v1898_v23 = vmul.f32 %v4685_v5, %v1855_v13  ;;  %v4799_v13 = vld [vmem:[#allocation19 + $0x4] ss:$0 sm:$0xff] }
 0x2ee   : > { %v1984_v27 = vpack.c.bf16 %v1960_v6, %v1958_v4  ;;  %v1941_v58 = vadd.f32 %v4703_v22, %v1896_v33  ;;  %v1957_v28 = vmax.f32 %v1925_v8, 0.0 }
 0x2ef   : > { %2171 = vmatmul.mubr.bf16.gmra.mrb[8].mxu0 %v1981_v18  ;;  %2203 = vmatmul.mubr.bf16.gmra.mrb[8].mxu1 %v1989_v7  ;;  %v1992_v10 = vpack.c.bf16 %v1976_v25, %v1974_v24  ;;  %v1959_v26 = vmax.f32 %v1927_v9, 0.0  ;;  %v1943_v31 = vadd.f32 %v4703_v22, %v1898_v23  ;;  %v2327_v24 = vld [vmem:[#allocation6 + $0x1] sm:$0x1] }
 0x2f0   : > { %2178 = vmatprep.mubr.bf16.mxu0 %v1984_v27  ;;  %v1973_v12 = vmax.f32 %v1941_v58, 0.0 }
 0x2f1   : > { %2210 = vmatprep.mubr.bf16.mxu1 %v1992_v10  ;;  %v1975_v29 = vmax.f32 %v1943_v31, 0.0  ;;  %v1983_v30 = vpack.c.bf16 %v1959_v26, %v1957_v28 }
 0x2f3   : > { %v1991_v34 = vpack.c.bf16 %v1975_v29, %v1973_v12 }
 0x2f7   : > { %2179 = vmatmul.mubr.bf16.gmra.mrb[12].mxu0 %v1983_v30  ;;  %2211 = vmatmul.mubr.bf16.gmra.mrb[12].mxu1 %v1991_v34 }
 0x3b2   : > { %v3421_v63 = vpop.f32.mrb[0].mxu0  ;;  %v3445_v5 = vpop.f32.mrb[0].mxu1 }
 0x3b3   : > { %v3422_v35 = vpop.f32.mrb[1].mxu0  ;;  %v3446_v52 = vpop.f32.mrb[1].mxu1 }
 0x3b4   : > { %v3423_v39 = vadd.f32 %v3422_v35, %v3421_v63  ;;  %v3447_v53 = vadd.f32 %v3446_v52, %v3445_v5  ;;  %v3424_v36 = vpop.f32.mrb[2].mxu0  ;;  %v3448_v54 = vpop.f32.mrb[2].mxu1 }
 0x3b5   : > { %v3425_v11 = vpop.f32.mrb[3].mxu0  ;;  %v3449_v22 = vpop.f32.mrb[3].mxu1 }
 0x3b6   : > { %v2157_v38 = vadd.f32 %v3423_v39, %v4799_v13  ;;  %v3426_v40 = vadd.f32 %v3425_v11, %v3424_v36  ;;  %v3450_v61 = vadd.f32 %v3449_v22, %v3448_v54  ;;  %v2189_v55 = vadd.f32 %v3447_v53, %v4799_v13 }
 0x3b8   : > { %v2319_v41 = vrot.slane %v2157_v38, 4  ;;  %v2328_v42 = vmul.f32 %v2157_v38, %v2157_v38  ;;  %v2160_v44 = vadd.f32 %v3426_v40, %v4799_v13  ;;  %v2192_v57 = vadd.f32 %v3450_v61, %v4799_v13 }
 0x3ba   : > { %v2320_v59 = vadd.f32 %v2319_v41, %v2157_v38  ;;  %v2359_v43 = vrot.slane %v2328_v42, 4  ;;  %v2219_v46 = vpack.c.bf16 %v2160_v44, %v2157_v38  ;;  %v2223_v37 = vpack.c.bf16 %v2192_v57, %v2189_v55  ;;  %v3427_v47 = vpop.f32.mrb[4].mxu0  ;;  %v3451_v62 = vpop.f32.mrb[4].mxu1 }
 0x3bb   : > { %v3428_v48 = vpop.f32.mrb[5].mxu0  ;;  %v3452_v45 = vpop.f32.mrb[5].mxu1 }
 0x3bc   : > { %v2321_v60 = vrot.slane %v2320_v59, 2  ;;  %v2360_v0 = vadd.f32 %v2359_v43, %v2328_v42  ;;  %2229 = vst [vmem:[#allocation3] sm:$0xff] %v2219_v46  ;;  %2233 = vst [vmem:[#allocation3 + $0x20] sm:$0xff] %v2223_v37  ;;  %v3429_v14 = vadd.f32 %v3428_v48, %v3427_v47  ;;  %v3453_v15 = vadd.f32 %v3452_v45, %v3451_v62  ;;  %v3430_v1 = vpop.f32.mrb[6].mxu0  ;;  %v3454_v16 = vpop.f32.mrb[6].mxu1 }
 0x3bd   : > { %v3431_v49 = vpop.f32.mrb[7].mxu0  ;;  %v3455_v2 = vpop.f32.mrb[7].mxu1 }
 0x3be   : > { %v2322_v50 = vadd.f32 %v2321_v60, %v2320_v59  ;;  %v2361_v17 = vrot.slane %v2360_v0, 2  ;;  %v3432_v3 = vadd.f32 %v3431_v49, %v3430_v1  ;;  %v3456_v18 = vadd.f32 %v3455_v2, %v3454_v16 }
 0x3bf   : > { %v2165_v4 = vadd.f32 %v3429_v14, %v4799_v13  ;;  %v2197_v20 = vadd.f32 %v3453_v15, %v4799_v13 }
 0x3c0   : > { %v2323_v19 = vrot.slane %v2322_v50, 1  ;;  %v2362_v21 = vadd.f32 %v2361_v17, %v2360_v0  ;;  %v2168_v32 = vadd.f32 %v3432_v3, %v4799_v13  ;;  %v2200_v56 = vadd.f32 %v3456_v18, %v4799_v13 }
 0x3c2   : > { %v2324_v7 = vadd.f32 %v2323_v19, %v2322_v50  ;;  %v2363_v6 = vrot.slane %v2362_v21, 1  ;;  %v3433_v8 = vpop.f32.mrb[8].mxu0  ;;  %v3457_v33 = vpop.f32.mrb[8].mxu1  ;;  %v2220_v25 = vpack.c.bf16 %v2168_v32, %v2165_v4  ;;  %v2224_v9 = vpack.c.bf16 %v2200_v56, %v2197_v20 }
 0x3c3   : > { %v3434_v23 = vpop.f32.mrb[9].mxu0  ;;  %v3458_v27 = vpop.f32.mrb[9].mxu1 }
 0x3c4   : > { %v2325_v58 = vadd.f32 %v2324_v7, %v2303_v51  ;;  %v2364_v10 = vadd.f32 %v2363_v6, %v2362_v21  ;;  %v3435_v28 = vadd.f32 %v3434_v23, %v3433_v8  ;;  %v3459_v26 = vadd.f32 %v3458_v27, %v3457_v33  ;;  %v3436_v31 = vpop.f32.mrb[10].mxu0  ;;  %v3460_v12 = vpop.f32.mrb[10].mxu1  ;;  %2230 = vst [vmem:[#allocation3 + $0x8] sm:$0xff] %v2220_v25 }
 0x3c5   : > { %2234 = vst [vmem:[#allocation3 + $0x28] sm:$0xff] %v2224_v9  ;;  %v3437_v29 = vpop.f32.mrb[11].mxu0  ;;  %v3461_v30 = vpop.f32.mrb[11].mxu1 }
 0x3c6   : > { %2326 = vst [vmem:[#allocation6] sm:$0x1] %v2325_v58  ;;  %v2365_v34 = vadd.f32 %v2364_v10, %v2327_v24  ;;  %v3438_v63 = vadd.f32 %v3437_v29, %v3436_v31  ;;  %v3462_v5 = vadd.f32 %v3461_v30, %v3460_v12  ;;  %v2173_v35 = vadd.f32 %v3435_v28, %v4799_v13 }
 0x3c7   : > { %v2205_v39 = vadd.f32 %v3459_v26, %v4799_v13 }
 0x3c8   : > { %2366 = vst [vmem:[#allocation6 + $0x1] sm:$0x1] %v2365_v34  ;;  %v2176_v52 = vadd.f32 %v3438_v63, %v4799_v13  ;;  %v2208_v53 = vadd.f32 %v3462_v5, %v4799_v13 }
 0x3ca   : > { %v2221_v36 = vpack.c.bf16 %v2176_v52, %v2173_v35  ;;  %v3439_v54 = vpop.f32.mrb[12].mxu0  ;;  %v3463_v11 = vpop.f32.mrb[12].mxu1  ;;  %v2225_v22 = vpack.c.bf16 %v2208_v53, %v2205_v39 }
 0x3cb   : > { %v3440_v38 = vpop.f32.mrb[13].mxu0  ;;  %v3464_v40 = vpop.f32.mrb[13].mxu1 }
 0x3cc   : > { %2231 = vst [vmem:[#allocation3 + $0x10] sm:$0xff] %v2221_v36  ;;  %v3441_v61 = vadd.f32 %v3440_v38, %v3439_v54  ;;  %v3465_v55 = vadd.f32 %v3464_v40, %v3463_v11  ;;  %v3442_v41 = vpop.f32.mrb[14].mxu0  ;;  %v3466_v42 = vpop.f32.mrb[14].mxu1  ;;  %2235 = vst [vmem:[#allocation3 + $0x30] sm:$0xff] %v2225_v22 }
 0x3cd   : > { %v3443_v44 = vpop.f32.mrb[15].mxu0  ;;  %v3467_v57 = vpop.f32.mrb[15].mxu1 }
 0x3ce   : > { %v3444_v59 = vadd.f32 %v3443_v44, %v3442_v41  ;;  %v3468_v43 = vadd.f32 %v3467_v57, %v3466_v42  ;;  %v2181_v46 = vadd.f32 %v3441_v61, %v4799_v13  ;;  %v2213_v37 = vadd.f32 %v3465_v55, %v4799_v13 }
 0x3d0   : > { %v2184_v47 = vadd.f32 %v3444_v59, %v4799_v13  ;;  %v2216_v62 = vadd.f32 %v3468_v43, %v4799_v13 }
 0x3d2   : > { %v2222_v48 = vpack.c.bf16 %v2184_v47, %v2181_v46  ;;  %v2226_v45 = vpack.c.bf16 %v2216_v62, %v2213_v37 }
 0x3d4   : > { %2232 = vst [vmem:[#allocation3 + $0x18] sm:$0xff] %v2222_v48  ;;  %2236 = vst [vmem:[#allocation3 + $0x38] sm:$0xff] %v2226_v45 }
 0x3d5 PF: > { %p3343_p13 = scmp.ne.s32.totalorder %s4049_s15, 2 }
 0x3d6   : > { %v3807_v60 = vld [vmem:[#allocation17] sm:$0xff] (!%p3343_p13)   ;;  %v3808_v0 = vld [vmem:[#allocation17 + $0x8] sm:$0xff] (!%p3343_p13)   ;;  %v3809_v14 = vld [vmem:[#allocation17 + $0x10] sm:$0xff] (!%p3343_p13)  }
 0x3d7   : > { %2370 = sbr.rel (%p3343_p13) target bundleno = 1258 (0x4ea), region = 100  ;;  %3537 = vmatprep.subr.bf16.mxu0 (!%p3343_p13), %v3807_v60  ;;  %3617 = vmatprep.subr.bf16.mxu1 (!%p3343_p13), %v3807_v60  ;;  %v3810_v13 = vld [vmem:[#allocation17 + $0x18] sm:$0xff] (!%p3343_p13)   ;;  %v2376_v15 = vld [vmem:[#allocation6] sm:$0x1] (!%p3343_p13)  ;;  %v2378_v16 = vld [vmem:[#allocation6 + $0x1] sm:$0x1] (!%p3343_p13) }
 0x3d8   : > { %3538 = vmatpush3.bf16.msra.mxu0 (!%p3343_p13), %v3807_v60  ;;  %3625 = vmatpush3.bf16.msra.mxu1 (!%p3343_p13), %v3807_v60  ;;  %v2377_v1 = vmul.f32 (!%p3343_p13), 0.125, %v2376_v15  ;;  %v2379_v49 = vmul.f32 (!%p3343_p13), 0.125, %v2378_v16  ;;  %v3811_v50 = vld [vmem:[#allocation17 + $0x20] sm:$0xff] (!%p3343_p13)   ;;  %v3812_v18 = vld [vmem:[#allocation17 + $0x28] sm:$0xff] (!%p3343_p13)   ;;  %v3813_v21 = vld [vmem:[#allocation17 + $0x30] sm:$0xff] (!%p3343_p13)  }
 0x3d9   : > { %3539 = vmatprep.subr.bf16.mxu0 (!%p3343_p13), %v3808_v0  ;;  %3618 = vmatprep.subr.bf16.mxu1 (!%p3343_p13), %v3808_v0  ;;  %v3814_v51 = vld [vmem:[#allocation17 + $0x38] sm:$0xff] (!%p3343_p13)   ;;  %v2374_v4 = vld [vmem:[#allocation19 + $0x5] ss:$0 sm:$0xff] (!%p3343_p13)  ;;  %v2375_v56 = vld [vmem:[#allocation19 + $0x6] ss:$0 sm:$0xff] (!%p3343_p13) }
 0x3da   : > { %v2380_v2 = vmul.f32 (!%p3343_p13), %v2377_v1, %v2377_v1  ;;  %v2394_v6 = vld [vmem:[#allocation3] sm:$0xff] (!%p3343_p13)  ;;  %v2395_v8 = vld [vmem:[#allocation3 + $0x8] sm:$0xff] (!%p3343_p13)  ;;  %v2396_v9 = vld [vmem:[#allocation3 + $0x10] sm:$0xff] (!%p3343_p13) }
 0x3db   : > { %v2398_v24 = vld [vmem:[#allocation3 + $0x20] sm:$0xff] (!%p3343_p13)  ;;  %v2399_v25 = vld [vmem:[#allocation3 + $0x28] sm:$0xff] (!%p3343_p13)  ;;  %v2400_v23 = vld [vmem:[#allocation3 + $0x30] sm:$0xff] (!%p3343_p13)  ;;  %v2403_v27 = vunpack.c.l.bf16 (!%p3343_p13), %v2394_v6  ;;  %v2404_v58 = vunpack.c.h.bf16 (!%p3343_p13), %v2394_v6  ;;  %v2405_v10 = vunpack.c.l.bf16 (!%p3343_p13), %v2395_v8  ;;  %v2406_v28 = vunpack.c.h.bf16 (!%p3343_p13), %v2395_v8 }
 0x3dc   : > { %3540 = vmatpush3.bf16.msra.mxu0 (!%p3343_p13), %v3808_v0  ;;  %3626 = vmatpush3.bf16.msra.mxu1 (!%p3343_p13), %v3808_v0  ;;  %v2381_v17 = vsub.f32 (!%p3343_p13), %v2379_v49, %v2380_v2  ;;  %v2397_v26 = vld [vmem:[#allocation3 + $0x18] sm:$0xff] (!%p3343_p13)  ;;  %v2411_v12 = vunpack.c.l.bf16 (!%p3343_p13), %v2398_v24  ;;  %v2412_v29 = vunpack.c.h.bf16 (!%p3343_p13), %v2398_v24  ;;  %v2413_v30 = vunpack.c.l.bf16 (!%p3343_p13), %v2399_v25 }
 0x3dd   : > { %3541 = vmatprep.subr.bf16.mxu0 (!%p3343_p13), %v3809_v14  ;;  %3619 = vmatprep.subr.bf16.mxu1 (!%p3343_p13), %v3809_v14  ;;  %v2401_v31 = vld [vmem:[#allocation3 + $0x38] sm:$0xff] (!%p3343_p13)  ;;  %v2414_v34 = vunpack.c.h.bf16 (!%p3343_p13), %v2399_v25  ;;  %v2407_v63 = vunpack.c.l.bf16 (!%p3343_p13), %v2396_v9  ;;  %v2408_v5 = vunpack.c.h.bf16 (!%p3343_p13), %v2396_v9  ;;  %v2415_v35 = vunpack.c.l.bf16 (!%p3343_p13), %v2400_v23 }
 0x3de   : > { %v2382_v3 = vmax.f32 %v2381_v17, 0.0  ;;  %v2416_v52 = vunpack.c.h.bf16 %v2400_v23  ;;  %v2409_v53 = vunpack.c.l.bf16 %v2397_v26  ;;  %v2410_v36 = vunpack.c.h.bf16 %v2397_v26 }
 0x3df   : > { %v2417_v54 = vunpack.c.l.bf16 %v2401_v31  ;;  %v2418_v11 = vunpack.c.h.bf16 %v2401_v31 }
 0x3e0   : > { %3542 = vmatpush3.bf16.msra.mxu0 %v3809_v14  ;;  %3627 = vmatpush3.bf16.msra.mxu1 %v3809_v14  ;;  %v2383_v19 = vadd.f32 1e-05, %v2382_v3 }
 0x3e1   : > { %3543 = vmatprep.subr.bf16.mxu0 %v3810_v13  ;;  %3620 = vmatprep.subr.bf16.mxu1 %v3810_v13 }
 0x3e2   : > { %3815 = vrsqrt.f32 %v2383_v19 }
 0x3e4   : > { %3544 = vmatpush3.bf16.msra.mxu0 %v3810_v13  ;;  %3628 = vmatpush3.bf16.msra.mxu1 %v3810_v13 }
 0x3e5   : > { %3545 = vmatprep.subr.bf16.mxu0 %v3811_v50  ;;  %3621 = vmatprep.subr.bf16.mxu1 %v3811_v50 }
 0x3e8   : > { %3546 = vmatpush3.bf16.msra.mxu0 %v3811_v50  ;;  %3629 = vmatpush3.bf16.msra.mxu1 %v3811_v50 }
 0x3e9   : > { %3547 = vmatprep.subr.bf16.mxu0 %v3812_v18  ;;  %3622 = vmatprep.subr.bf16.mxu1 %v3812_v18 }
 0x3ec   : > { %3548 = vmatpush3.bf16.msra.mxu0 %v3812_v18  ;;  %3630 = vmatpush3.bf16.msra.mxu1 %v3812_v18  ;;  %v3816_v20 = vpop.eup %3815 }
 0x3ed   : > { %3549 = vmatprep.subr.bf16.mxu0 %v3813_v21  ;;  %3623 = vmatprep.subr.bf16.mxu1 %v3813_v21  ;;  %v2385_v32 = vmul.f32 %v3816_v20, %v2374_v4 }
 0x3ef   : > { %2386 = vst [vmem:[#allocation9] sm:$0x1] %v2385_v32  ;;  %v2387_v7 = vmul.f32 %v2385_v32, %v2377_v1 }
 0x3f0   : > { %3550 = vmatpush3.bf16.msra.mxu0 %v3813_v21  ;;  %3631 = vmatpush3.bf16.msra.mxu1 %v3813_v21 }
 0x3f1   : > { %3551 = vmatprep.subr.bf16.mxu0 %v3814_v51  ;;  %3624 = vmatprep.subr.bf16.mxu1 %v3814_v51  ;;  %v2388_v33 = vsub.f32 %v2375_v56, %v2387_v7 }
 0x3f3   : > { %2389 = vst [vmem:[#allocation9 + $0x1] sm:$0x1] %v2388_v33 }
 0x3f4   : > { %3552 = vmatpush3.bf16.msra.mxu0 %v3814_v51  ;;  %3632 = vmatpush3.bf16.msra.mxu1 %v3814_v51 }
 0x3f6   : > { %v3344_v39 = vld [vmem:[#allocation9] ss:$0 sm:$0xff] }
 0x3f7   : > { %v2423_v22 = vmul.f32 %v3344_v39, %v2403_v27  ;;  %v2424_v38 = vmul.f32 %v3344_v39, %v2404_v58  ;;  %v2425_v40 = vmul.f32 %v3344_v39, %v2405_v10  ;;  %v2426_v61 = vmul.f32 %v3344_v39, %v2406_v28 }
 0x3f8   : > { %v2431_v55 = vmul.f32 %v3344_v39, %v2411_v12  ;;  %v2432_v41 = vmul.f32 %v3344_v39, %v2412_v29  ;;  %v2433_v42 = vmul.f32 %v3344_v39, %v2413_v30  ;;  %v2434_v44 = vmul.f32 %v3344_v39, %v2414_v34 }
 0x3f9   : > { %v2427_v57 = vmul.f32 %v3344_v39, %v2407_v63  ;;  %v2428_v59 = vmul.f32 %v3344_v39, %v2408_v5  ;;  %v2435_v43 = vmul.f32 %v3344_v39, %v2415_v35  ;;  %v2436_v46 = vmul.f32 %v3344_v39, %v2416_v52  ;;  %v2500_v35 = vld [vmem:[#allocation19 + $0x7] ss:$0 sm:$0xff] }
 0x3fa   : > { %v3345_v37 = vld [vmem:[#allocation9 + $0x1] ss:$0 sm:$0xff]  ;;  %v2429_v47 = vmul.f32 %v3344_v39, %v2409_v53  ;;  %v2430_v62 = vmul.f32 %v3344_v39, %v2410_v36  ;;  %v2437_v48 = vmul.f32 %v3344_v39, %v2417_v54  ;;  %v2438_v45 = vmul.f32 %v3344_v39, %v2418_v11 }
 0x3fb   : > { %v2444_v60 = vadd.f32 %v3345_v37, %v2423_v22  ;;  %v2445_v0 = vadd.f32 %v3345_v37, %v2424_v38  ;;  %v2446_v14 = vadd.f32 %v3345_v37, %v2425_v40  ;;  %v2447_v13 = vadd.f32 %v3345_v37, %v2426_v61 }
 0x3fc   : > { %v2452_v15 = vadd.f32 %v3345_v37, %v2431_v55  ;;  %v2453_v1 = vadd.f32 %v3345_v37, %v2432_v41  ;;  %v2454_v16 = vadd.f32 %v3345_v37, %v2433_v42  ;;  %v2455_v49 = vadd.f32 %v3345_v37, %v2434_v44 }
 0x3fd   : > { %v2460_v2 = vmax.f32 %v2444_v60, 0.0  ;;  %v2461_v50 = vmax.f32 %v2445_v0, 0.0  ;;  %v2462_v17 = vmax.f32 %v2446_v14, 0.0  ;;  %v2463_v3 = vmax.f32 %v2447_v13, 0.0 }
 0x3fe   : > { %v2468_v18 = vmax.f32 %v2452_v15, 0.0  ;;  %v2469_v19 = vmax.f32 %v2453_v1, 0.0  ;;  %v2470_v21 = vmax.f32 %v2454_v16, 0.0  ;;  %v2471_v51 = vmax.f32 %v2455_v49, 0.0 }
 0x3ff   : > { %v2476_v4 = vpack.c.bf16 %v2461_v50, %v2460_v2  ;;  %v2477_v20 = vpack.c.bf16 %v2463_v3, %v2462_v17  ;;  %v2448_v32 = vadd.f32 %v3345_v37, %v2427_v57  ;;  %v2449_v56 = vadd.f32 %v3345_v37, %v2428_v59 }
 0x400   : > { %v2480_v7 = vpack.c.bf16 %v2469_v19, %v2468_v18  ;;  %v2481_v6 = vpack.c.bf16 %v2471_v51, %v2470_v21  ;;  %v2456_v8 = vadd.f32 %v3345_v37, %v2435_v43  ;;  %v2457_v33 = vadd.f32 %v3345_v37, %v2436_v46 }
 0x401   : > { %3553 = vmatprep.mubr.bf16.mxu0 %v2476_v4  ;;  %v2464_v24 = vmax.f32 %v2448_v32, 0.0  ;;  %v2465_v25 = vmax.f32 %v2449_v56, 0.0  ;;  %v2450_v9 = vadd.f32 %v3345_v37, %v2429_v47  ;;  %v2451_v23 = vadd.f32 %v3345_v37, %v2430_v62 }
 0x402   : > { %3554 = vmatmul.mubr.bf16.vlgmr.msra.gmra.mrb[0].mxu0 %v2477_v20  ;;  %3561 = vmatprep.mubr.bf16.mxu1 %v2480_v7  ;;  %v2472_v27 = vmax.f32 %v2456_v8, 0.0  ;;  %v2473_v58 = vmax.f32 %v2457_v33, 0.0  ;;  %v2458_v10 = vadd.f32 %v3345_v37, %v2437_v48  ;;  %v2459_v28 = vadd.f32 %v3345_v37, %v2438_v45  ;;  %v2730_v8 = vld [vmem:[#allocation7] sm:$0x1] }
 0x403   : > { %3562 = vmatmul.mubr.bf16.vlgmr.msra.gmra.mrb[0].mxu1 %v2481_v6  ;;  %v2478_v26 = vpack.c.bf16 %v2465_v25, %v2464_v24  ;;  %v2466_v31 = vmax.f32 %v2450_v9, 0.0  ;;  %v2467_v12 = vmax.f32 %v2451_v23, 0.0 }
 0x404   : > { %v2482_v29 = vpack.c.bf16 %v2473_v58, %v2472_v27  ;;  %v2474_v30 = vmax.f32 %v2458_v10, 0.0  ;;  %v2475_v34 = vmax.f32 %v2459_v28, 0.0  ;;  %v2754_v58 = vld [vmem:[#allocation7 + $0x1] sm:$0x1] }
 0x405   : > { %3557 = vmatprep.mubr.bf16.mxu0 %v2478_v26  ;;  %v2479_v63 = vpack.c.bf16 %v2467_v12, %v2466_v31 }
 0x406   : > { %3565 = vmatprep.mubr.bf16.mxu1 %v2482_v29  ;;  %v2483_v5 = vpack.c.bf16 %v2475_v34, %v2474_v30 }
 0x40a   : > { %3558 = vmatmul.mubr.bf16.gmra.mrb[4].mxu0 %v2479_v63 }
 0x40b   : > { %3566 = vmatmul.mubr.bf16.gmra.mrb[4].mxu1 %v2483_v5 }
 0x4d5   : > { %v3555_v52 = vpop.f32.mrb[0].mxu0 }
 0x4d6   : > { %v2583_v39 = vpop.f32.mrb[1].mxu0  ;;  %v3563_v53 = vpop.f32.mrb[0].mxu1  ;;  %v2592_v38 = vadd.f32 %v3555_v52, %v2500_v35 }
 0x4d7   : > { %v2584_v36 = vadd.f32 %v2583_v39, %v2500_v35  ;;  %v2624_v54 = vadd.f32 %v3563_v53, %v2500_v35  ;;  %v3556_v11 = vpop.f32.mrb[2].mxu0  ;;  %v2615_v22 = vpop.f32.mrb[1].mxu1 }
 0x4d8   : > { %v2595_v40 = vadd.f32 %v3556_v11, %v2500_v35  ;;  %v2616_v61 = vadd.f32 %v2615_v22, %v2500_v35  ;;  %v2586_v55 = vpop.f32.mrb[3].mxu0  ;;  %v3564_v41 = vpop.f32.mrb[2].mxu1 }
 0x4d9   : > { %v2746_v42 = vrot.slane %v2584_v36, 4  ;;  %v2755_v44 = vmul.f32 %v2584_v36, %v2584_v36  ;;  %v2587_v57 = vadd.f32 %v2586_v55, %v2500_v35  ;;  %v2627_v59 = vadd.f32 %v3564_v41, %v2500_v35  ;;  %v2618_v43 = vpop.f32.mrb[3].mxu1 }
 0x4da   : > { %v2647_v46 = vpack.c.bf16 %v2595_v40, %v2592_v38  ;;  %v2619_v37 = vadd.f32 %v2618_v43, %v2500_v35 }
 0x4db   : > { %v2747_v47 = vadd.f32 %v2746_v42, %v2584_v36  ;;  %v2786_v62 = vrot.slane %v2755_v44, 4  ;;  %v2646_v48 = vpack.c.bf16 %v2587_v57, %v2584_v36  ;;  %v2651_v45 = vpack.c.bf16 %v2627_v59, %v2624_v54 }
 0x4dc   : > { %2657 = vst [vmem:[#allocation4 + $0x8] sm:$0xff] %v2647_v46  ;;  %v2650_v60 = vpack.c.bf16 %v2619_v37, %v2616_v61 }
 0x4dd   : > { %v2748_v0 = vrot.slane %v2747_v47, 2  ;;  %v2787_v14 = vadd.f32 %v2786_v62, %v2755_v44  ;;  %2656 = vst [vmem:[#allocation4] sm:$0xff] %v2646_v48  ;;  %2661 = vst [vmem:[#allocation4 + $0x28] sm:$0xff] %v2651_v45  ;;  %v3559_v13 = vpop.f32.mrb[4].mxu0 }
 0x4de   : > { %2660 = vst [vmem:[#allocation4 + $0x20] sm:$0xff] %v2650_v60  ;;  %v2608_v15 = vadd.f32 %v3559_v13, %v2500_v35  ;;  %v3567_v1 = vpop.f32.mrb[4].mxu1  ;;  %v2599_v16 = vpop.f32.mrb[5].mxu0 }
 0x4df   : > { %v2749_v49 = vadd.f32 %v2748_v0, %v2747_v47  ;;  %v2788_v2 = vrot.slane %v2787_v14, 2  ;;  %v2640_v50 = vadd.f32 %v3567_v1, %v2500_v35  ;;  %v2600_v17 = vadd.f32 %v2599_v16, %v2500_v35  ;;  %v2631_v3 = vpop.f32.mrb[5].mxu1  ;;  %v3560_v18 = vpop.f32.mrb[6].mxu0 }
 0x4e0   : > { %v2632_v19 = vadd.f32 %v2631_v3, %v2500_v35  ;;  %v2611_v21 = vadd.f32 %v3560_v18, %v2500_v35  ;;  %v3568_v51 = vpop.f32.mrb[6].mxu1  ;;  %v2602_v4 = vpop.f32.mrb[7].mxu0 }
 0x4e1   : > { %v2750_v20 = vrot.slane %v2749_v49, 1  ;;  %v2789_v32 = vadd.f32 %v2788_v2, %v2787_v14  ;;  %v2643_v56 = vadd.f32 %v3568_v51, %v2500_v35  ;;  %v2603_v7 = vadd.f32 %v2602_v4, %v2500_v35  ;;  %v2634_v6 = vpop.f32.mrb[7].mxu1 }
 0x4e2   : > { %v2649_v33 = vpack.c.bf16 %v2611_v21, %v2608_v15  ;;  %v2635_v24 = vadd.f32 %v2634_v6, %v2500_v35 }
 0x4e3   : > { %v2751_v25 = vadd.f32 %v2750_v20, %v2749_v49  ;;  %v2790_v9 = vrot.slane %v2789_v32, 1  ;;  %v2653_v23 = vpack.c.bf16 %v2643_v56, %v2640_v50  ;;  %v2648_v27 = vpack.c.bf16 %v2603_v7, %v2600_v17 }
 0x4e4   : > { %2659 = vst [vmem:[#allocation4 + $0x18] sm:$0xff] %v2649_v33  ;;  %v2652_v10 = vpack.c.bf16 %v2635_v24, %v2632_v19 }
 0x4e5   : > { %v2752_v28 = vadd.f32 %v2751_v25, %v2730_v8  ;;  %v2791_v26 = vadd.f32 %v2790_v9, %v2789_v32  ;;  %2663 = vst [vmem:[#allocation4 + $0x38] sm:$0xff] %v2653_v23  ;;  %2658 = vst [vmem:[#allocation4 + $0x10] sm:$0xff] %v2648_v27 }
 0x4e6   : > { %2662 = vst [vmem:[#allocation4 + $0x30] sm:$0xff] %v2652_v10 }
 0x4e7   : > { %2753 = vst [vmem:[#allocation7] sm:$0x1] %v2752_v28  ;;  %v2792_v31 = vadd.f32 %v2791_v26, %v2754_v58 }
 0x4e9   : > { %2793 = vst [vmem:[#allocation7 + $0x1] sm:$0x1] %v2792_v31 }
 0x4ea PF: > { %p3354_p0 = scmp.ne.s32.totalorder %s4049_s15, 3 }
 0x4eb   : > { %v2801_v39 = vld [vmem:[#allocation19 + $0x10] ss:$0 sm:$0xff] (!%p3354_p0)  ;;  %v2802_v54 = vld [vmem:[#allocation19 + $0x11] ss:$0 sm:$0xff] (!%p3354_p0)  ;;  %v2822_v22 = vld [vmem:[#allocation4 + $0x8] sm:$0xff] (!%p3354_p0)  ;;  %vm3071_vm5 = vcmask (!%p3354_p0), 7168  }
 0x4ec   : > { %2797 = sbr.rel (%p3354_p0) target bundleno = 1506 (0x5e2), region = 108  ;;  %v2821_v38 = vld [vmem:[#allocation4] sm:$0xff] (!%p3354_p0)  ;;  %v2823_v61 = vld [vmem:[#allocation4 + $0x10] sm:$0xff] (!%p3354_p0)  ;;  %v2832_v55 = vunpack.c.l.bf16 (!%p3354_p0), %v2822_v22  ;;  %v2833_v42 = vunpack.c.h.bf16 (!%p3354_p0), %v2822_v22  ;;  %v2824_v43 = vld [vmem:[#allocation4 + $0x18] sm:$0xff] (!%p3354_p0) }
 0x4ed   : > { %v2830_v41 = vunpack.c.l.bf16 (!%p3354_p0), %v2821_v38  ;;  %v2831_v44 = vunpack.c.h.bf16 (!%p3354_p0), %v2821_v38  ;;  %v2835_v57 = vunpack.c.h.bf16 (!%p3354_p0), %v2823_v61  ;;  %v2834_v59 = vunpack.c.l.bf16 (!%p3354_p0), %v2823_v61  ;;  %v2825_v45 = vld [vmem:[#allocation4 + $0x20] sm:$0xff] (!%p3354_p0)  ;;  %v4833_v3 = vld [vmem:[#allocation19 + $0x12] ss:$0 sm:$0xff] (!%p3354_p0)  ;;  %v2826_v4 = vld [vmem:[#allocation4 + $0x28] sm:$0xff] (!%p3354_p0) }
 0x4ee   : > { %v2803_v12 = vld [vmem:[#allocation7] sm:$0x1] (!%p3354_p0)  ;;  %v2837_v14 = vunpack.c.h.bf16 (!%p3354_p0), %v2824_v43  ;;  %v2836_v13 = vunpack.c.l.bf16 (!%p3354_p0), %v2824_v43  ;;  %v2839_v1 = vunpack.c.h.bf16 (!%p3354_p0), %v2825_v45  ;;  %v2838_v16 = vunpack.c.l.bf16 (!%p3354_p0), %v2825_v45  ;;  %v2827_v58 = vld [vmem:[#allocation4 + $0x30] sm:$0xff] (!%p3354_p0) }
 0x4ef   : > { %v2804_v29 = vmul.f32 (!%p3354_p0), 0.125, %v2803_v12  ;;  %v2841_v33 = vunpack.c.h.bf16 (!%p3354_p0), %v2826_v4  ;;  %v2840_v24 = vunpack.c.l.bf16 (!%p3354_p0), %v2826_v4 }
 0x4f0   : > { %v2805_v30 = vld [vmem:[#allocation7 + $0x1] sm:$0x1] (!%p3354_p0) }
 0x4f1   : > { %v2806_v34 = vmul.f32 (!%p3354_p0), 0.125, %v2805_v30  ;;  %v2807_v63 = vmul.f32 (!%p3354_p0), %v2804_v29, %v2804_v29  ;;  %v2842_v30 = vunpack.c.l.bf16 (!%p3354_p0), %v2827_v58 }
 0x4f3   : > { %v2808_v5 = vsub.f32 %v2806_v34, %v2807_v63 }
 0x4f5   : > { %v2809_v35 = vmax.f32 %v2808_v5, 0.0 }
 0x4f7   : > { %v2810_v52 = vadd.f32 1e-05, %v2809_v35 }
 0x4f9   : > { %3817 = vrsqrt.f32 %v2810_v52  ;;  %v2828_v52 = vld [vmem:[#allocation4 + $0x38] sm:$0xff] }
 0x503   : > { %v3818_v53 = vpop.eup %3817 }
 0x504   : > { %v2812_v36 = vmul.f32 %v3818_v53, %v2801_v39 }
 0x506   : > { %2813 = vst [vmem:[#allocation10] sm:$0x1] %v2812_v36  ;;  %v2814_v11 = vmul.f32 %v2812_v36, %v2804_v29  ;;  %v2843_v29 = vunpack.c.h.bf16 %v2827_v58 }
 0x508   : > { %v2815_v40 = vsub.f32 %v2802_v54, %v2814_v11  ;;  %v2845_v54 = vunpack.c.h.bf16 %v2828_v52  ;;  %v2844_v11 = vunpack.c.l.bf16 %v2828_v52 }
 0x50a   : > { %2816 = vst [vmem:[#allocation10 + $0x1] sm:$0x1] %v2815_v40 }
 0x50d   : > { %v4819_v46 = vld [vmem:[#allocation10] ss:$0 sm:$0xff] }
 0x50e   : > { %v2852_v37 = vmul.f32 %v4819_v46, %v2832_v55  ;;  %v2850_v47 = vmul.f32 %v4819_v46, %v2830_v41  ;;  %v2853_v62 = vmul.f32 %v4819_v46, %v2833_v42  ;;  %v2851_v48 = vmul.f32 %v4819_v46, %v2831_v44 }
 0x50f   : > { %v2855_v60 = vmul.f32 %v4819_v46, %v2835_v57  ;;  %v2854_v0 = vmul.f32 %v4819_v46, %v2834_v59  ;;  %v2857_v21 = vmul.f32 %v4819_v46, %v2837_v14  ;;  %v2856_v51 = vmul.f32 %v4819_v46, %v2836_v13 }
 0x510   : > { %v2859_v27 = vmul.f32 %v4819_v46, %v2839_v1  ;;  %v2858_v31 = vmul.f32 %v4819_v46, %v2838_v16  ;;  %v2861_v12 = vmul.f32 %v4819_v46, %v2841_v33  ;;  %v2860_v35 = vmul.f32 %v4819_v46, %v2840_v24 }
 0x511   : > { %v4827_v15 = vld [vmem:[#allocation10 + $0x1] ss:$0 sm:$0xff]  ;;  %v2863_v40 = vmul.f32 %v4819_v46, %v2843_v29  ;;  %v2862_v61 = vmul.f32 %v4819_v46, %v2842_v30  ;;  %v2865_v43 = vmul.f32 %v4819_v46, %v2845_v54 }
 0x512   : > { %v2873_v49 = vadd.f32 %v4827_v15, %v2852_v37  ;;  %v2871_v2 = vadd.f32 %v4827_v15, %v2850_v47  ;;  %v2874_v50 = vadd.f32 %v4827_v15, %v2853_v62  ;;  %v2872_v17 = vadd.f32 %v4827_v15, %v2851_v48 }
 0x513   : > { %v2876_v18 = vadd.f32 %v4827_v15, %v2855_v60  ;;  %v2875_v19 = vadd.f32 %v4827_v15, %v2854_v0  ;;  %v2878_v9 = vadd.f32 %v4827_v15, %v2857_v21  ;;  %v2877_v23 = vadd.f32 %v4827_v15, %v2856_v51 }
 0x514   : > { %v2889_v20 = vmax.f32 %v2873_v49, 0.0  ;;  %v2887_v32 = vmax.f32 %v2871_v2, 0.0  ;;  %v2890_v56 = vmax.f32 %v2874_v50, 0.0  ;;  %v2888_v7 = vmax.f32 %v2872_v17, 0.0 }
 0x515   : > { %v2892_v25 = vmax.f32 %v2876_v18, 0.0  ;;  %v2891_v26 = vmax.f32 %v2875_v19, 0.0  ;;  %v2894_v63 = vmax.f32 %v2878_v9, 0.0  ;;  %v2893_v5 = vmax.f32 %v2877_v23, 0.0  ;;  %v4873_v18 = vld [vmem:[#allocation11] ss:$0 sm:$0xff] }
 0x516   : > { %v2906_v6 = vmul.f32 %v4833_v3, %v2889_v20  ;;  %v2904_v8 = vmul.f32 %v4833_v3, %v2887_v32  ;;  %v2907_v10 = vmul.f32 %v4833_v3, %v2890_v56  ;;  %v2905_v28 = vmul.f32 %v4833_v3, %v2888_v7 }
 0x517   : > { %v2909_v34 = vmul.f32 %v4833_v3, %v2892_v25  ;;  %v2908_v39 = vmul.f32 %v4833_v3, %v2891_v26  ;;  %v2880_v53 = vadd.f32 %v4827_v15, %v2859_v27  ;;  %v2879_v36 = vadd.f32 %v4827_v15, %v2858_v31 }
 0x518   : > { %2924 = vadd.xlane.f32.xlu1 %v2906_v6  ;;  %2920 = vadd.xlane.f32.xlu0 %v2904_v8  ;;  %v2911_v22 = vmul.f32 %v4833_v3, %v2894_v63  ;;  %v2910_v38 = vmul.f32 %v4833_v3, %v2893_v5  ;;  %v2882_v42 = vadd.f32 %v4827_v15, %v2861_v12 }
 0x519   : > { %v2896_v55 = vmax.f32 %v2880_v53, 0.0  ;;  %v2895_v41 = vmax.f32 %v2879_v36, 0.0  ;;  %v2881_v44 = vadd.f32 %v4827_v15, %v2860_v35  ;;  %v2884_v57 = vadd.f32 %v4827_v15, %v2863_v40 }
 0x51a   : > { %v2883_v59 = vadd.f32 %v4827_v15, %v2862_v61  ;;  %v2864_v37 = vmul.f32 %v4819_v46, %v2844_v11  ;;  %v2898_v48 = vmax.f32 %v2882_v42, 0.0  ;;  %v2886_v60 = vadd.f32 %v4827_v15, %v2865_v43 }
 0x51b   : > { %v2913_v47 = vmul.f32 %v4833_v3, %v2896_v55  ;;  %v2912_v62 = vmul.f32 %v4833_v3, %v2895_v41  ;;  %v2897_v45 = vmax.f32 %v2881_v44, 0.0  ;;  %v2900_v1 = vmax.f32 %v2884_v57, 0.0 }
 0x51c   : > { %2926 = vadd.xlane.f32.xlu1 %v2907_v10  ;;  %2922 = vadd.xlane.f32.xlu0 %v2905_v28  ;;  %v2885_v0 = vadd.f32 %v4827_v15, %v2864_v37  ;;  %v2915_v14 = vmul.f32 %v4833_v3, %v2898_v48  ;;  %v2899_v46 = vmax.f32 %v2883_v59, 0.0  ;;  %v2902_v2 = vmax.f32 %v2886_v60, 0.0 }
 0x51d   : > { %v2914_v13 = vmul.f32 %v4833_v3, %v2897_v45  ;;  %v2917_v16 = vmul.f32 %v4833_v3, %v2900_v1 }
 0x51e   : > { %v2916_v49 = vmul.f32 %v4833_v3, %v2899_v46  ;;  %v2901_v50 = vmax.f32 %v2885_v0, 0.0  ;;  %v2919_v15 = vmul.f32 %v4833_v3, %v2902_v2 }
 0x520   : > { %2930 = vadd.xlane.f32.xlu1 %v2909_v34  ;;  %2928 = vadd.xlane.f32.xlu0 %v2908_v39  ;;  %v2918_v17 = vmul.f32 %v4833_v3, %v2901_v50 }
 0x524   : > { %2934 = vadd.xlane.f32.xlu1 %v2911_v22  ;;  %2932 = vadd.xlane.f32.xlu0 %v2910_v38 }
 0x528   : > { %2938 = vadd.xlane.f32.xlu1 %v2913_v47  ;;  %2936 = vadd.xlane.f32.xlu0 %v2912_v62 }
 0x52c   : > { %2942 = vadd.xlane.f32.xlu1 %v2915_v14  ;;  %2940 = vadd.xlane.f32.xlu0 %v2914_v13 }
 0x530   : > { %2946 = vadd.xlane.f32.xlu1 %v2917_v16  ;;  %2944 = vadd.xlane.f32.xlu0 %v2916_v49 }
 0x534   : > { %2950 = vadd.xlane.f32.xlu1 %v2919_v15  ;;  %2948 = vadd.xlane.f32.xlu0 %v2918_v17 }
 0x5a5   : > { %v2925_v19 = vpop.xlane.xlu1 %2924  ;;  %v2921_v21 = vpop.xlane.xlu0 %2920 }
 0x5a6   : > { %v2961_v51 = vadd.f32 %v4873_v18, %v2925_v19  ;;  %v2959_v4 = vadd.f32 %v4873_v18, %v2921_v21 }
 0x5a8   : > { %v3360_v20 = vmul.f32 -1.442695, %v2961_v51  ;;  %v3358_v32 = vmul.f32 -1.442695, %v2959_v4 }
 0x5a9   : > { %v2927_v56 = vpop.xlane.xlu1 %2926  ;;  %v2923_v7 = vpop.xlane.xlu0 %2922 }
 0x5aa   : > { %3819 = vpow2.f32 %v3360_v20  ;;  %v2962_v6 = vadd.f32 %v4873_v18, %v2927_v56  ;;  %v2960_v8 = vadd.f32 %v4873_v18, %v2923_v7 }
 0x5ab   : > { %3821 = vpow2.f32 %v3358_v32 }
 0x5ac   : > { %v3361_v3 = vmul.f32 -1.442695, %v2962_v6  ;;  %v3359_v33 = vmul.f32 -1.442695, %v2960_v8 }
 0x5ad   : > { %v2931_v24 = vpop.xlane.xlu1 %2930  ;;  %v2929_v25 = vpop.xlane.xlu0 %2928 }
 0x5ae   : > { %3823 = vpow2.f32 %v3361_v3  ;;  %v2964_v9 = vadd.f32 %v4873_v18, %v2931_v24  ;;  %v2963_v23 = vadd.f32 %v4873_v18, %v2929_v25 }
 0x5af   : > { %3825 = vpow2.f32 %v3359_v33 }
 0x5b0   : > { %v3363_v27 = vmul.f32 -1.442695, %v2964_v9  ;;  %v3362_v58 = vmul.f32 -1.442695, %v2963_v23 }
 0x5b1   : > { %v2935_v10 = vpop.xlane.xlu1 %2934  ;;  %v2933_v28 = vpop.xlane.xlu0 %2932 }
 0x5b2   : > { %3827 = vpow2.f32 %v3363_v27  ;;  %v2966_v26 = vadd.f32 %v4873_v18, %v2935_v10  ;;  %v2965_v31 = vadd.f32 %v4873_v18, %v2933_v28 }
 0x5b3   : > { %3829 = vpow2.f32 %v3362_v58 }
 0x5b4   : > { %v3820_v12 = vpop.eup %3819  ;;  %v3365_v29 = vmul.f32 -1.442695, %v2966_v26  ;;  %v3364_v63 = vmul.f32 -1.442695, %v2965_v31 }
 0x5b5   : > { %v3822_v30 = vpop.eup %3821  ;;  %v3025_v34 = vadd.f32 1.0, %v3820_v12  ;;  %v2939_v5 = vpop.xlane.xlu1 %2938 }
 0x5b6   : > { %v2937_v35 = vpop.xlane.xlu0 %2936  ;;  %v3023_v52 = vadd.f32 1.0, %v3822_v30  ;;  %3831 = vpow2.f32 %v3365_v29  ;;  %v2968_v39 = vadd.f32 %v4873_v18, %v2939_v5 }
 0x5b7   : > { %v2967_v53 = vadd.f32 %v4873_v18, %v2937_v35  ;;  %3833 = vrcp.f32 %v3025_v34 }
 0x5b8   : > { %v3824_v36 = vpop.eup %3823  ;;  %3835 = vrcp.f32 %v3023_v52  ;;  %v3367_v54 = vmul.f32 -1.442695, %v2968_v39 }
 0x5b9   : > { %v3826_v11 = vpop.eup %3825  ;;  %v3026_v22 = vadd.f32 1.0, %v3824_v36  ;;  %3837 = vpow2.f32 %v3364_v63  ;;  %v3366_v38 = vmul.f32 -1.442695, %v2967_v53  ;;  %v2943_v40 = vpop.xlane.xlu1 %2942 }
 0x5ba   : > { %v2941_v61 = vpop.xlane.xlu0 %2940  ;;  %v3024_v55 = vadd.f32 1.0, %v3826_v11  ;;  %3839 = vpow2.f32 %v3367_v54  ;;  %v2970_v41 = vadd.f32 %v4873_v18, %v2943_v40 }
 0x5bb   : > { %v2969_v42 = vadd.f32 %v4873_v18, %v2941_v61  ;;  %3841 = vrcp.f32 %v3026_v22 }
 0x5bc   : > { %v3828_v44 = vpop.eup %3827  ;;  %3843 = vrcp.f32 %v3024_v55  ;;  %v3369_v57 = vmul.f32 -1.442695, %v2970_v41 }
 0x5bd   : > { %v3830_v59 = vpop.eup %3829  ;;  %v3028_v43 = vadd.f32 1.0, %v3828_v44  ;;  %3845 = vpow2.f32 %v3366_v38  ;;  %v3368_v37 = vmul.f32 -1.442695, %v2969_v42  ;;  %v2947_v47 = vpop.xlane.xlu1 %2946 }
 0x5be   : > { %v2945_v62 = vpop.xlane.xlu0 %2944  ;;  %v3027_v48 = vadd.f32 1.0, %v3830_v59  ;;  %3847 = vpow2.f32 %v3369_v57  ;;  %v2972_v45 = vadd.f32 %v4873_v18, %v2947_v47 }
 0x5bf   : > { %v2971_v60 = vadd.f32 %v4873_v18, %v2945_v62  ;;  %3849 = vrcp.f32 %v3028_v43 }
 0x5c0   : > { %v3832_v0 = vpop.eup %3831  ;;  %3851 = vrcp.f32 %v3027_v48  ;;  %v3371_v14 = vmul.f32 -1.442695, %v2972_v45 }
 0x5c1   : > { %v3370_v13 = vmul.f32 -1.442695, %v2971_v60  ;;  %v3834_v1 = vpop.eup %3833  ;;  %v3030_v46 = vadd.f32 1.0, %v3832_v0  ;;  %3853 = vpow2.f32 %v3368_v37  ;;  %v2951_v16 = vpop.xlane.xlu1 %2950 }
 0x5c2   : > { %v2949_v49 = vpop.xlane.xlu0 %2948  ;;  %v3836_v2 = vpop.eup %3835  ;;  %3074 = vst.msk [vmem:[%s4974_s10 + $0x10] sm:$0xff] %vm3071_vm5, %v3834_v1  ;;  %3855 = vpow2.f32 %v3371_v14  ;;  %v2974_v50 = vadd.f32 %v4873_v18, %v2951_v16 }
 0x5c3   : > { %v2973_v15 = vadd.f32 %v4873_v18, %v2949_v49  ;;  %v3838_v17 = vpop.eup %3837  ;;  %3072 = vst.msk [vmem:[%s4974_s10] sm:$0xff] %vm3071_vm5, %v3836_v2  ;;  %3857 = vrcp.f32 %v3030_v46 }
 0x5c4   : > { %v3840_v19 = vpop.eup %3839  ;;  %v3029_v21 = vadd.f32 1.0, %v3838_v17  ;;  %3859 = vpow2.f32 %v3370_v13  ;;  %v3373_v51 = vmul.f32 -1.442695, %v2974_v50 }
 0x5c5   : > { %v3842_v4 = vpop.eup %3841  ;;  %v3032_v20 = vadd.f32 1.0, %v3840_v19  ;;  %v3372_v32 = vmul.f32 -1.442695, %v2973_v15 }
 0x5c6   : > { %v3844_v56 = vpop.eup %3843  ;;  %3075 = vst.msk [vmem:[%s4974_s10 + $0x18] sm:$0xff] %vm3071_vm5, %v3842_v4  ;;  %3861 = vrcp.f32 %v3029_v21 }
 0x5c7   : > { %v3846_v18 = vpop.eup %3845  ;;  %3073 = vst.msk [vmem:[%s4974_s10 + $0x8] sm:$0xff] %vm3071_vm5, %v3844_v56  ;;  %3863 = vrcp.f32 %v3032_v20 }
 0x5c8   : > { %v3848_v7 = vpop.eup %3847  ;;  %v3031_v6 = vadd.f32 1.0, %v3846_v18  ;;  %3865 = vpow2.f32 %v3373_v51 }
 0x5c9   : > { %v3850_v8 = vpop.eup %3849  ;;  %v3034_v3 = vadd.f32 1.0, %v3848_v7  ;;  %3867 = vpow2.f32 %v3372_v32 }
 0x5ca   : > { %v3852_v33 = vpop.eup %3851  ;;  %3077 = vst.msk [vmem:[%s4974_s10 + $0x28] sm:$0xff] %vm3071_vm5, %v3850_v8  ;;  %3869 = vrcp.f32 %v3031_v6 }
 0x5cb   : > { %v3854_v24 = vpop.eup %3853  ;;  %3076 = vst.msk [vmem:[%s4974_s10 + $0x20] sm:$0xff] %vm3071_vm5, %v3852_v33  ;;  %3871 = vrcp.f32 %v3034_v3 }
 0x5cc   : > { %v3856_v25 = vpop.eup %3855  ;;  %v3033_v9 = vadd.f32 1.0, %v3854_v24 }
 0x5cd   : > { %v3858_v23 = vpop.eup %3857  ;;  %v3036_v27 = vadd.f32 1.0, %v3856_v25 }
 0x5ce   : > { %v3860_v58 = vpop.eup %3859  ;;  %3079 = vst.msk [vmem:[%s4974_s10 + $0x38] sm:$0xff] %vm3071_vm5, %v3858_v23  ;;  %3873 = vrcp.f32 %v3033_v9 }
 0x5cf   : > { %3875 = vrcp.f32 %v3036_v27  ;;  %v3035_v10 = vadd.f32 1.0, %v3860_v58 }
 0x5d0   : > { %v3862_v28 = vpop.eup %3861 }
 0x5d1   : > { %v3864_v26 = vpop.eup %3863  ;;  %3078 = vst.msk [vmem:[%s4974_s10 + $0x30] sm:$0xff] %vm3071_vm5, %v3862_v28  ;;  %3877 = vrcp.f32 %v3035_v10 }
 0x5d2   : > { %v3866_v31 = vpop.eup %3865  ;;  %3081 = vst.msk [vmem:[%s4974_s10 + $0x48] sm:$0xff] %vm3071_vm5, %v3864_v26 }
 0x5d3   : > { %v3868_v12 = vpop.eup %3867  ;;  %v3038_v29 = vadd.f32 1.0, %v3866_v31 }
 0x5d4   : > { %v3870_v30 = vpop.eup %3869  ;;  %v3037_v34 = vadd.f32 1.0, %v3868_v12 }
 0x5d5   : > { %v3872_v63 = vpop.eup %3871  ;;  %3080 = vst.msk [vmem:[%s4974_s10 + $0x40] sm:$0xff] %vm3071_vm5, %v3870_v30  ;;  %3879 = vrcp.f32 %v3038_v29 }
 0x5d6   : > { %3083 = vst.msk [vmem:[%s4974_s10 + $0x58] sm:$0xff] %vm3071_vm5, %v3872_v63  ;;  %3881 = vrcp.f32 %v3037_v34 }
 0x5d8   : > { %v3874_v5 = vpop.eup %3873 }
 0x5d9   : > { %v3876_v35 = vpop.eup %3875  ;;  %3082 = vst.msk [vmem:[%s4974_s10 + $0x50] sm:$0xff] %vm3071_vm5, %v3874_v5 }
 0x5da   : > { %3085 = vst.msk [vmem:[%s4974_s10 + $0x68] sm:$0xff] %vm3071_vm5, %v3876_v35 }
 0x5db   : > { %v3878_v52 = vpop.eup %3877 }
 0x5dc   : > { %3084 = vst.msk [vmem:[%s4974_s10 + $0x60] sm:$0xff] %vm3071_vm5, %v3878_v52 }
 0x5df   : > { %v3880_v39 = vpop.eup %3879 }
 0x5e0   : > { %v3882_v53 = vpop.eup %3881  ;;  %3087 = vst.msk [vmem:[%s4974_s10 + $0x78] sm:$0xff] %vm3071_vm5, %v3880_v39 }
 0x5e1   : > { %3086 = vst.msk [vmem:[%s4974_s10 + $0x70] sm:$0xff] %vm3071_vm5, %v3882_v53 }
 0x5e2 PF: > { %s25_s17 = sadd.s32 1, %s4057_s17   ;;  %s4990_s15 = smov %s4053_s16 }
 0x5e3   : > { %p22_p1 = scmp.ge.s32.totalorder %s25_s17, 6   ;;  %s4991_s16 = smov %s4993_s25 }
 0x5e5   :  { %24 = sbr.rel (!%p22_p1) target bundleno = 7 (0x7), region = 159 }
 0x5ec   :  { %3116 = vsyncpa [#allocation13], 1 }
 0x5ed   :  { %3118 = vsyncpa [#allocation13 + $0x1], 1 }
 0x5ee   :  { %3119 = vsyncpa [#allocation15], 1 }
 0x5ef   :  { %3120 = vsyncpa [#allocation18], 1 }

</bundles_post_ra>
